<compile_context>
chip_gen: v7x
topology: tpu7x:2x2x1
jax: 0.10.0
libtpu: 0.0.40
codegen_flags: <defaults>
</compile_context>

<pallas_src>
import numpy as np

import jax
import jax.numpy as jnp
from jax.experimental import pallas as pl
from jax.experimental.pallas import tpu as pltpu

# ----------------------------- configuration --------------------------------
B, N, D = 2, 16, 32            # graphs per batch, nodes per graph, emb_dim
H = 2 * D                      # GIN MLP hidden width
NUM_TASKS = 3
NUM_LAYER = 5
MIN_LAYERS = 2
TOPK = 4
COEF = 1e-3
GATE_LAYERS = 2
EXPERT_DEPTHS = list(range(MIN_LAYERS, NUM_LAYER + 1))      # [2, 3, 4, 5]
NUM_EXPERTS = len(EXPERT_DEPTHS)
ENCODER_DEPTHS = [GATE_LAYERS] + EXPERT_DEPTHS              # gate (slot 0) + experts
NUM_ENC = len(ENCODER_DEPTHS)                               # 5
MAX_DEPTH = max(ENCODER_DEPTHS)                             # 5
NED = NUM_ENC * D                                           # packed lane width (160)
NEH = NUM_ENC * H                                           # packed hidden width (320)
BN_EPS = 1e-5
BN_SCALE = float(1.0 / (1.0 + BN_EPS) ** 0.5)               # eval-mode BN approx

# Static per-layer uniformity (lets the kernel skip masks when all encoders agree).
RELU_ALL = [all(l + 1 < d for d in ENCODER_DEPTHS) for l in range(MAX_DEPTH)]
RELU_NONE = [all(l + 1 >= d for d in ENCODER_DEPTHS) for l in range(MAX_DEPTH)]
ACT_ALL = [all(l < d for d in ENCODER_DEPTHS) for l in range(MAX_DEPTH)]


# ------------------------------ Pallas kernel ---------------------------------
def encoders_kernel(adj_ref, x_ref, pool_ref, eps_ref, relu_ref, act_ref,
                    w1_ref, b1_ref, w2_ref, b2_ref, pooled_ref):
    """All 5 GIN encoders (gate + 4 experts), block-diagonally packed.

    h is (B*N, NE*D): encoder e lives in lane columns [e*D, (e+1)*D).  Each GIN
    layer is one neighbor-aggregation matmul and one block-diagonal MLP
    (Lin -> ReLU -> Lin), BN eval scale, per-encoder inter-layer ReLU, and a
    per-encoder freeze mask for layers past that encoder's depth.  Finishes
    with masked-mean graph pooling as a single matmul.
    """
    adj = adj_ref[...]                               # (B*N, B*N)  bf16 block-diag
    h = x_ref[...]                                   # (B*N, NE*D) f32

    for l in range(MAX_DEPTH):                       # static unroll
        hb = h.astype(jnp.bfloat16)
        agg = jnp.dot(adj, hb, preferred_element_type=jnp.float32)     # A @ h
        z = eps_ref[l] * h + agg                     # (1 + eps_{e,l}) * h + agg
        m = jnp.dot(z.astype(jnp.bfloat16), w1_ref[l],
                    preferred_element_type=jnp.float32) + b1_ref[l]
        m = jnp.maximum(m, 0.0)                      # MLP hidden ReLU
        hf = (jnp.dot(m.astype(jnp.bfloat16), w2_ref[l],
                      preferred_element_type=jnp.float32) + b2_ref[l]) * BN_SCALE
        # ReLU between layers, skipped on each encoder's last layer
        # (dropout = identity in eval).
        if RELU_ALL[l]:
            hf = jnp.maximum(hf, 0.0)
        elif not RELU_NONE[l]:
            hf = jnp.where(relu_ref[l] > 0.0, jnp.maximum(hf, 0.0), hf)
        # Freeze encoders whose depth has been reached.
        if ACT_ALL[l]:
            h = hf
        else:
            h = jnp.where(act_ref[l] > 0.0, hf, h)

    # masked mean graph pooling: (B, B*N) @ (B*N, NE*D) -> (B, NE*D)
    pooled_ref[...] = jnp.dot(pool_ref[...], h.astype(jnp.bfloat16),
                              preferred_element_type=jnp.float32)


def fused_encoders(adj_bd, x_packed, pool_mat, params):
    BN, W = x_packed.shape
    Bq = pool_mat.shape[0]
    vmem = pl.BlockSpec(memory_space=pltpu.MemorySpace.VMEM)   # whole array in VMEM
    return pl.pallas_call(
        encoders_kernel,
        out_shape=jax.ShapeDtypeStruct((Bq, W), jnp.float32),
        in_specs=[vmem] * 10,
        out_specs=vmem,
    )(adj_bd, x_packed, pool_mat,
      params['eps_row'], params['relu_mask'], params['act_mask'],
      params['W1_bd'], params['b1_bd'], params['W2_bd'], params['b2_bd'])


# ------------------------------ model pieces ---------------------------------
def block_diag_batch(a):
    """(B, r, c) -> (B*r, B*c) block-diagonal matrix (static B, tiny)."""
    Bq, r, c = a.shape
    out = jnp.zeros((Bq * r, Bq * c), a.dtype)
    for b_ in range(Bq):
        out = out.at[b_ * r:(b_ + 1) * r, b_ * c:(b_ + 1) * c].set(a[b_])
    return out


def top_k_gating(logits, k):
    """Noisy-top-k gating in eval mode (no noise): sparse softmax over top-k."""
    Bq, E = logits.shape
    k = min(k, E)
    top_vals, top_idx = jax.lax.top_k(logits, k)
    top_gates = jax.nn.softmax(top_vals, axis=-1)
    gates = jnp.zeros((Bq, E), jnp.float32)
    gates = gates.at[jnp.arange(Bq)[:, None], top_idx].set(top_gates)
    return gates


def cv_squared(v):
    eps = 1e-10
    if v.shape[0] <= 1:
        return jnp.float32(0.0)
    return jnp.var(v, ddof=1) / (jnp.mean(v) ** 2 + eps)


def forward(adj, x, mask, params):
    Bq, Nq, Dq = x.shape

    # ---- tiny layout-only prep (XLA): flatten batch, block-diag operators ----
    x_flat = x.reshape(Bq * Nq, Dq)
    x_packed = jnp.tile(x_flat, (1, NUM_ENC))                         # (B*N, NE*D)
    adj_bd = block_diag_batch(adj).astype(jnp.bfloat16)               # (B*N, B*N)
    cnt = jnp.maximum(jnp.sum(mask, axis=1, keepdims=True), 1.0)      # zero-node guard
    pool_mat = block_diag_batch((mask / cnt)[:, None, :]).astype(jnp.bfloat16)  # (B, B*N)

    # ---- ONE fused Pallas kernel: all encoders + masked-mean pooling ----
    pooled = fused_encoders(adj_bd, x_packed, pool_mat, params)       # (B, NE*D)
    pooled = pooled.reshape(Bq, NUM_ENC, Dq)
    gate_pooled = pooled[:, 0]                                        # (B, D) gate slot
    expert_pooled = pooled[:, 1:]                                     # (B, E, D)

    # ---- gate head + top-k softmax gating (scalar-sized, plain XLA) ----
    logits = gate_pooled @ params['wg'] + params['bg']                # (B, E)
    gates = top_k_gating(logits, TOPK)                                # (B, E)

    # ---- gate-weighted mixture + graph_pred_linear (scalar-sized, plain XLA) ----
    hg = jnp.einsum('be,bed->bd', gates, expert_pooled)               # (B, D)
    preds = hg @ params['wp'] + params['bp']                          # (B, T)

    # ---- load-balance loss ----
    importance = gates.sum(axis=0)
    load = (gates > 0).astype(jnp.float32).sum(axis=0)
    lb_loss = COEF * (cv_squared(importance) + cv_squared(load))
    return preds, lb_loss


# ------------------------------ parameter init --------------------------------
def _linear(key, din, dout, scale=0.1):
    kw, kb = jax.random.split(key)
    w = scale * jax.random.normal(kw, (din, dout), jnp.float32)
    b = scale * jax.random.normal(kb, (1, dout), jnp.float32)
    return w, b


def init_params(key):
    keys = jax.random.split(key, 3)
    layer_keys = jax.random.split(keys[0], NUM_ENC * MAX_DEPTH)

    # Block-diagonal packed GIN MLP weights: layer-major, encoder blocks on the
    # diagonal.  Unused (encoder, layer) blocks stay zero (frozen via act mask).
    W1_bd = jnp.zeros((MAX_DEPTH, NED, NEH), jnp.float32)
    b1_bd = jnp.zeros((MAX_DEPTH, 1, NEH), jnp.float32)
    W2_bd = jnp.zeros((MAX_DEPTH, NEH, NED), jnp.float32)
    b2_bd = jnp.zeros((MAX_DEPTH, 1, NED), jnp.float32)
    for e, depth in enumerate(ENCODER_DEPTHS):
        for l in range(depth):
            k1, k2 = jax.random.split(layer_keys[e * MAX_DEPTH + l])
            w1_, b1_ = _linear(k1, D, H)
            w2_, b2_ = _linear(k2, H, D)
            W1_bd = W1_bd.at[l, e * D:(e + 1) * D, e * H:(e + 1) * H].set(w1_)
            b1_bd = b1_bd.at[l, 0, e * H:(e + 1) * H].set(b1_[0])
            W2_bd = W2_bd.at[l, e * H:(e + 1) * H, e * D:(e + 1) * D].set(w2_)
            b2_bd = b2_bd.at[l, 0, e * D:(e + 1) * D].set(b2_[0])

    # (1 + eps) multiplier per (layer, encoder) repeated across each encoder's D lanes.
    eps = np.zeros((MAX_DEPTH, NUM_ENC), np.float32)                  # GINConv eps = 0
    eps_row = jnp.asarray(np.repeat(1.0 + eps, D, axis=1).reshape(MAX_DEPTH, 1, NED))

    # Static per-layer masks: inter-layer ReLU and "layer exists for this encoder".
    relu_np = np.zeros((MAX_DEPTH, 1, NED), np.float32)
    act_np = np.zeros((MAX_DEPTH, 1, NED), np.float32)
    for e, depth in enumerate(ENCODER_DEPTHS):
        for l in range(MAX_DEPTH):
            if l + 1 < depth:
                relu_np[l, 0, e * D:(e + 1) * D] = 1.0
            if l < depth:
                act_np[l, 0, e * D:(e + 1) * D] = 1.0

    wg, bg = _linear(keys[1], D, NUM_EXPERTS)                         # gate head
    wp, bp = _linear(keys[2], D, NUM_TASKS)                           # graph_pred_linear
    return {
        'W1_bd': W1_bd.astype(jnp.bfloat16), 'b1_bd': b1_bd,
        'W2_bd': W2_bd.astype(jnp.bfloat16), 'b2_bd': b2_bd,
        'eps_row': eps_row,
        'relu_mask': jnp.asarray(relu_np), 'act_mask': jnp.asarray(act_np),
        'wg': wg, 'bg': bg, 'wp': wp, 'bp': bp,
    }


# ----------------------------------- main --------------------------------------
if __name__ == "__main__":
    key = jax.random.PRNGKey(0)
    k_x, k_a, k_p = jax.random.split(key, 3)

    # node features (stand-in for AtomEncoder output), masked to valid nodes
    n_valid = jnp.array([12, 16], jnp.int32)
    mask = (jnp.arange(N)[None, :] < n_valid[:, None]).astype(jnp.float32)   # (B, N)
    x = jax.random.normal(k_x, (B, N, D), jnp.float32) * mask[:, :, None]

    # random undirected adjacency, no self loops, restricted to valid nodes
    a_rand = (jax.random.uniform(k_a, (B, N, N)) < 0.3).astype(jnp.float32)
    a_sym = jnp.maximum(a_rand, jnp.transpose(a_rand, (0, 2, 1)))
    a_sym = a_sym * (1.0 - jnp.eye(N, dtype=jnp.float32)[None])
    adj = a_sym * mask[:, :, None] * mask[:, None, :]

    params = init_params(k_p)

    preds, lb_loss = jax.jit(forward)(adj, x, mask, params)
    jax.block_until_ready((preds, lb_loss))

    assert preds.shape == (B, NUM_TASKS)
    assert preds.dtype == jnp.float32
    assert bool(jnp.all(jnp.isfinite(preds))) and bool(jnp.isfinite(lb_loss))
    print("KERNEL_OK")
</pallas_src>

<mosaic_0001>
module attributes {stable_mosaic.version = 11 : i64} {
  func.func @encoders_kernel(%arg0: memref<32x32xbf16, #tpu.memory_space<vmem>>, %arg1: memref<32x160xf32, #tpu.memory_space<vmem>>, %arg2: memref<2x32xbf16, #tpu.memory_space<vmem>>, %arg3: memref<5x1x160xf32, #tpu.memory_space<vmem>>, %arg4: memref<5x1x160xf32, #tpu.memory_space<vmem>>, %arg5: memref<5x1x160xf32, #tpu.memory_space<vmem>>, %arg6: memref<5x160x320xbf16, #tpu.memory_space<vmem>>, %arg7: memref<5x1x320xf32, #tpu.memory_space<vmem>>, %arg8: memref<5x320x160xbf16, #tpu.memory_space<vmem>>, %arg9: memref<5x1x160xf32, #tpu.memory_space<vmem>>, %arg10: memref<2x160xf32, #tpu.memory_space<vmem>>) attributes {dimension_semantics = [], scalar_prefetch = 0 : i64, scratch_operands = 0 : i64, tpu.core_type = #tpu.core_type<tc>} {
    %c0 = arith.constant 0 : index
    %c0_0 = arith.constant 0 : index
    %0 = vector.load %arg0[%c0, %c0_0] : memref<32x32xbf16, #tpu.memory_space<vmem>>, vector<32x32xbf16>
    %c0_1 = arith.constant 0 : index
    %c0_2 = arith.constant 0 : index
    %1 = vector.load %arg1[%c0_1, %c0_2] : memref<32x160xf32, #tpu.memory_space<vmem>>, vector<32x160xf32>
    %2 = arith.truncf %1 : vector<32x160xf32> to vector<32x160xbf16>
    %cst = arith.constant dense<0.000000e+00> : vector<32x160xf32>
    %3 = tpu.matmul %0, %2, %cst {dimension_numbers = #tpu.dot_dimension_numbers<[1], [0], [0], [1], [0, 0, 1, 1], [], []>} : vector<32x32xbf16>, vector<32x160xbf16>, vector<32x160xf32> -> vector<32x160xf32>
    %c0_3 = arith.constant 0 : index
    %c0_4 = arith.constant 0 : index
    %c0_5 = arith.constant 0 : index
    %4 = vector.load %arg3[%c0_3, %c0_4, %c0_5] : memref<5x1x160xf32, #tpu.memory_space<vmem>>, vector<1x1x160xf32>
    %5 = vector.shape_cast %4 : vector<1x1x160xf32> to vector<1x160xf32>
    %6 = vector.broadcast %5 : vector<1x160xf32> to vector<32x160xf32>
    %7 = arith.mulf %6, %1 : vector<32x160xf32>
    %8 = arith.addf %7, %3 : vector<32x160xf32>
    %9 = arith.truncf %8 : vector<32x160xf32> to vector<32x160xbf16>
    %c0_6 = arith.constant 0 : index
    %c0_7 = arith.constant 0 : index
    %c0_8 = arith.constant 0 : index
    %10 = vector.load %arg6[%c0_6, %c0_7, %c0_8] : memref<5x160x320xbf16, #tpu.memory_space<vmem>>, vector<1x160x320xbf16>
    %11 = vector.shape_cast %10 : vector<1x160x320xbf16> to vector<160x320xbf16>
    %cst_9 = arith.constant dense<0.000000e+00> : vector<32x320xf32>
    %12 = tpu.matmul %9, %11, %cst_9 {dimension_numbers = #tpu.dot_dimension_numbers<[1], [0], [0], [1], [0, 0, 1, 1], [], []>} : vector<32x160xbf16>, vector<160x320xbf16>, vector<32x320xf32> -> vector<32x320xf32>
    %c0_10 = arith.constant 0 : index
    %c0_11 = arith.constant 0 : index
    %c0_12 = arith.constant 0 : index
    %13 = vector.load %arg7[%c0_10, %c0_11, %c0_12] : memref<5x1x320xf32, #tpu.memory_space<vmem>>, vector<1x1x320xf32>
    %14 = vector.shape_cast %13 : vector<1x1x320xf32> to vector<1x320xf32>
    %15 = vector.broadcast %14 : vector<1x320xf32> to vector<32x320xf32>
    %16 = arith.addf %12, %15 : vector<32x320xf32>
    %cst_13 = arith.constant 0.000000e+00 : f32
    %17 = vector.broadcast %cst_13 : f32 to vector<32x320xf32>
    %18 = arith.maximumf %16, %17 : vector<32x320xf32>
    %19 = arith.truncf %18 : vector<32x320xf32> to vector<32x320xbf16>
    %c0_14 = arith.constant 0 : index
    %c0_15 = arith.constant 0 : index
    %c0_16 = arith.constant 0 : index
    %20 = vector.load %arg8[%c0_14, %c0_15, %c0_16] : memref<5x320x160xbf16, #tpu.memory_space<vmem>>, vector<1x320x160xbf16>
    %21 = vector.shape_cast %20 : vector<1x320x160xbf16> to vector<320x160xbf16>
    %cst_17 = arith.constant dense<0.000000e+00> : vector<32x160xf32>
    %22 = tpu.matmul %19, %21, %cst_17 {dimension_numbers = #tpu.dot_dimension_numbers<[1], [0], [0], [1], [0, 0, 1, 1], [], []>} : vector<32x320xbf16>, vector<320x160xbf16>, vector<32x160xf32> -> vector<32x160xf32>
    %c0_18 = arith.constant 0 : index
    %c0_19 = arith.constant 0 : index
    %c0_20 = arith.constant 0 : index
    %23 = vector.load %arg9[%c0_18, %c0_19, %c0_20] : memref<5x1x160xf32, #tpu.memory_space<vmem>>, vector<1x1x160xf32>
    %24 = vector.shape_cast %23 : vector<1x1x160xf32> to vector<1x160xf32>
    %25 = vector.broadcast %24 : vector<1x160xf32> to vector<32x160xf32>
    %26 = arith.addf %22, %25 : vector<32x160xf32>
    %cst_21 = arith.constant 0.999994993 : f32
    %27 = vector.broadcast %cst_21 : f32 to vector<32x160xf32>
    %28 = arith.mulf %26, %27 : vector<32x160xf32>
    %cst_22 = arith.constant 0.000000e+00 : f32
    %29 = vector.broadcast %cst_22 : f32 to vector<32x160xf32>
    %30 = arith.maximumf %28, %29 : vector<32x160xf32>
    %31 = arith.truncf %30 : vector<32x160xf32> to vector<32x160xbf16>
    %cst_23 = arith.constant dense<0.000000e+00> : vector<32x160xf32>
    %32 = tpu.matmul %0, %31, %cst_23 {dimension_numbers = #tpu.dot_dimension_numbers<[1], [0], [0], [1], [0, 0, 1, 1], [], []>} : vector<32x32xbf16>, vector<32x160xbf16>, vector<32x160xf32> -> vector<32x160xf32>
    %c1 = arith.constant 1 : index
    %c0_24 = arith.constant 0 : index
    %c0_25 = arith.constant 0 : index
    %33 = vector.load %arg3[%c1, %c0_24, %c0_25] : memref<5x1x160xf32, #tpu.memory_space<vmem>>, vector<1x1x160xf32>
    %34 = vector.shape_cast %33 : vector<1x1x160xf32> to vector<1x160xf32>
    %35 = vector.broadcast %34 : vector<1x160xf32> to vector<32x160xf32>
    %36 = arith.mulf %35, %30 : vector<32x160xf32>
    %37 = arith.addf %36, %32 : vector<32x160xf32>
    %38 = arith.truncf %37 : vector<32x160xf32> to vector<32x160xbf16>
    %c1_26 = arith.constant 1 : index
    %c0_27 = arith.constant 0 : index
    %c0_28 = arith.constant 0 : index
    %39 = vector.load %arg6[%c1_26, %c0_27, %c0_28] : memref<5x160x320xbf16, #tpu.memory_space<vmem>>, vector<1x160x320xbf16>
    %40 = vector.shape_cast %39 : vector<1x160x320xbf16> to vector<160x320xbf16>
    %cst_29 = arith.constant dense<0.000000e+00> : vector<32x320xf32>
    %41 = tpu.matmul %38, %40, %cst_29 {dimension_numbers = #tpu.dot_dimension_numbers<[1], [0], [0], [1], [0, 0, 1, 1], [], []>} : vector<32x160xbf16>, vector<160x320xbf16>, vector<32x320xf32> -> vector<32x320xf32>
    %c1_30 = arith.constant 1 : index
    %c0_31 = arith.constant 0 : index
    %c0_32 = arith.constant 0 : index
    %42 = vector.load %arg7[%c1_30, %c0_31, %c0_32] : memref<5x1x320xf32, #tpu.memory_space<vmem>>, vector<1x1x320xf32>
    %43 = vector.shape_cast %42 : vector<1x1x320xf32> to vector<1x320xf32>
    %44 = vector.broadcast %43 : vector<1x320xf32> to vector<32x320xf32>
    %45 = arith.addf %41, %44 : vector<32x320xf32>
    %cst_33 = arith.constant 0.000000e+00 : f32
    %46 = vector.broadcast %cst_33 : f32 to vector<32x320xf32>
    %47 = arith.maximumf %45, %46 : vector<32x320xf32>
    %48 = arith.truncf %47 : vector<32x320xf32> to vector<32x320xbf16>
    %c1_34 = arith.constant 1 : index
    %c0_35 = arith.constant 0 : index
    %c0_36 = arith.constant 0 : index
    %49 = vector.load %arg8[%c1_34, %c0_35, %c0_36] : memref<5x320x160xbf16, #tpu.memory_space<vmem>>, vector<1x320x160xbf16>
    %50 = vector.shape_cast %49 : vector<1x320x160xbf16> to vector<320x160xbf16>
    %cst_37 = arith.constant dense<0.000000e+00> : vector<32x160xf32>
    %51 = tpu.matmul %48, %50, %cst_37 {dimension_numbers = #tpu.dot_dimension_numbers<[1], [0], [0], [1], [0, 0, 1, 1], [], []>} : vector<32x320xbf16>, vector<320x160xbf16>, vector<32x160xf32> -> vector<32x160xf32>
    %c1_38 = arith.constant 1 : index
    %c0_39 = arith.constant 0 : index
    %c0_40 = arith.constant 0 : index
    %52 = vector.load %arg9[%c1_38, %c0_39, %c0_40] : memref<5x1x160xf32, #tpu.memory_space<vmem>>, vector<1x1x160xf32>
    %53 = vector.shape_cast %52 : vector<1x1x160xf32> to vector<1x160xf32>
    %54 = vector.broadcast %53 : vector<1x160xf32> to vector<32x160xf32>
    %55 = arith.addf %51, %54 : vector<32x160xf32>
    %cst_41 = arith.constant 0.999994993 : f32
    %56 = vector.broadcast %cst_41 : f32 to vector<32x160xf32>
    %57 = arith.mulf %55, %56 : vector<32x160xf32>
    %c1_42 = arith.constant 1 : index
    %c0_43 = arith.constant 0 : index
    %c0_44 = arith.constant 0 : index
    %58 = vector.load %arg4[%c1_42, %c0_43, %c0_44] : memref<5x1x160xf32, #tpu.memory_space<vmem>>, vector<1x1x160xf32>
    %59 = vector.shape_cast %58 : vector<1x1x160xf32> to vector<1x160xf32>
    %cst_45 = arith.constant 0.000000e+00 : f32
    %60 = vector.broadcast %cst_45 : f32 to vector<1x160xf32>
    %61 = arith.cmpf ogt, %59, %60 : vector<1x160xf32>
    %cst_46 = arith.constant 0.000000e+00 : f32
    %62 = vector.broadcast %cst_46 : f32 to vector<32x160xf32>
    %63 = arith.maximumf %57, %62 : vector<32x160xf32>
    %64 = vector.shape_cast %61 : vector<1x160xi1> to vector<1x160xi1>
    %65 = vector.broadcast %64 : vector<1x160xi1> to vector<32x160xi1>
    %66 = arith.select %65, %63, %57 : vector<32x160xi1>, vector<32x160xf32>
    %67 = arith.truncf %66 : vector<32x160xf32> to vector<32x160xbf16>
    %cst_47 = arith.constant dense<0.000000e+00> : vector<32x160xf32>
    %68 = tpu.matmul %0, %67, %cst_47 {dimension_numbers = #tpu.dot_dimension_numbers<[1], [0], [0], [1], [0, 0, 1, 1], [], []>} : vector<32x32xbf16>, vector<32x160xbf16>, vector<32x160xf32> -> vector<32x160xf32>
    %c2 = arith.constant 2 : index
    %c0_48 = arith.constant 0 : index
    %c0_49 = arith.constant 0 : index
    %69 = vector.load %arg3[%c2, %c0_48, %c0_49] : memref<5x1x160xf32, #tpu.memory_space<vmem>>, vector<1x1x160xf32>
    %70 = vector.shape_cast %69 : vector<1x1x160xf32> to vector<1x160xf32>
    %71 = vector.broadcast %70 : vector<1x160xf32> to vector<32x160xf32>
    %72 = arith.mulf %71, %66 : vector<32x160xf32>
    %73 = arith.addf %72, %68 : vector<32x160xf32>
    %74 = arith.truncf %73 : vector<32x160xf32> to vector<32x160xbf16>
    %c2_50 = arith.constant 2 : index
    %c0_51 = arith.constant 0 : index
    %c0_52 = arith.constant 0 : index
    %75 = vector.load %arg6[%c2_50, %c0_51, %c0_52] : memref<5x160x320xbf16, #tpu.memory_space<vmem>>, vector<1x160x320xbf16>
    %76 = vector.shape_cast %75 : vector<1x160x320xbf16> to vector<160x320xbf16>
    %cst_53 = arith.constant dense<0.000000e+00> : vector<32x320xf32>
    %77 = tpu.matmul %74, %76, %cst_53 {dimension_numbers = #tpu.dot_dimension_numbers<[1], [0], [0], [1], [0, 0, 1, 1], [], []>} : vector<32x160xbf16>, vector<160x320xbf16>, vector<32x320xf32> -> vector<32x320xf32>
    %c2_54 = arith.constant 2 : index
    %c0_55 = arith.constant 0 : index
    %c0_56 = arith.constant 0 : index
    %78 = vector.load %arg7[%c2_54, %c0_55, %c0_56] : memref<5x1x320xf32, #tpu.memory_space<vmem>>, vector<1x1x320xf32>
    %79 = vector.shape_cast %78 : vector<1x1x320xf32> to vector<1x320xf32>
    %80 = vector.broadcast %79 : vector<1x320xf32> to vector<32x320xf32>
    %81 = arith.addf %77, %80 : vector<32x320xf32>
    %cst_57 = arith.constant 0.000000e+00 : f32
    %82 = vector.broadcast %cst_57 : f32 to vector<32x320xf32>
    %83 = arith.maximumf %81, %82 : vector<32x320xf32>
    %84 = arith.truncf %83 : vector<32x320xf32> to vector<32x320xbf16>
    %c2_58 = arith.constant 2 : index
    %c0_59 = arith.constant 0 : index
    %c0_60 = arith.constant 0 : index
    %85 = vector.load %arg8[%c2_58, %c0_59, %c0_60] : memref<5x320x160xbf16, #tpu.memory_space<vmem>>, vector<1x320x160xbf16>
    %86 = vector.shape_cast %85 : vector<1x320x160xbf16> to vector<320x160xbf16>
    %cst_61 = arith.constant dense<0.000000e+00> : vector<32x160xf32>
    %87 = tpu.matmul %84, %86, %cst_61 {dimension_numbers = #tpu.dot_dimension_numbers<[1], [0], [0], [1], [0, 0, 1, 1], [], []>} : vector<32x320xbf16>, vector<320x160xbf16>, vector<32x160xf32> -> vector<32x160xf32>
    %c2_62 = arith.constant 2 : index
    %c0_63 = arith.constant 0 : index
    %c0_64 = arith.constant 0 : index
    %88 = vector.load %arg9[%c2_62, %c0_63, %c0_64] : memref<5x1x160xf32, #tpu.memory_space<vmem>>, vector<1x1x160xf32>
    %89 = vector.shape_cast %88 : vector<1x1x160xf32> to vector<1x160xf32>
    %90 = vector.broadcast %89 : vector<1x160xf32> to vector<32x160xf32>
    %91 = arith.addf %87, %90 : vector<32x160xf32>
    %cst_65 = arith.constant 0.999994993 : f32
    %92 = vector.broadcast %cst_65 : f32 to vector<32x160xf32>
    %93 = arith.mulf %91, %92 : vector<32x160xf32>
    %c2_66 = arith.constant 2 : index
    %c0_67 = arith.constant 0 : index
    %c0_68 = arith.constant 0 : index
    %94 = vector.load %arg4[%c2_66, %c0_67, %c0_68] : memref<5x1x160xf32, #tpu.memory_space<vmem>>, vector<1x1x160xf32>
    %95 = vector.shape_cast %94 : vector<1x1x160xf32> to vector<1x160xf32>
    %cst_69 = arith.constant 0.000000e+00 : f32
    %96 = vector.broadcast %cst_69 : f32 to vector<1x160xf32>
    %97 = arith.cmpf ogt, %95, %96 : vector<1x160xf32>
    %cst_70 = arith.constant 0.000000e+00 : f32
    %98 = vector.broadcast %cst_70 : f32 to vector<32x160xf32>
    %99 = arith.maximumf %93, %98 : vector<32x160xf32>
    %100 = vector.shape_cast %97 : vector<1x160xi1> to vector<1x160xi1>
    %101 = vector.broadcast %100 : vector<1x160xi1> to vector<32x160xi1>
    %102 = arith.select %101, %99, %93 : vector<32x160xi1>, vector<32x160xf32>
    %c2_71 = arith.constant 2 : index
    %c0_72 = arith.constant 0 : index
    %c0_73 = arith.constant 0 : index
    %103 = vector.load %arg5[%c2_71, %c0_72, %c0_73] : memref<5x1x160xf32, #tpu.memory_space<vmem>>, vector<1x1x160xf32>
    %104 = vector.shape_cast %103 : vector<1x1x160xf32> to vector<1x160xf32>
    %cst_74 = arith.constant 0.000000e+00 : f32
    %105 = vector.broadcast %cst_74 : f32 to vector<1x160xf32>
    %106 = arith.cmpf ogt, %104, %105 : vector<1x160xf32>
    %107 = vector.shape_cast %106 : vector<1x160xi1> to vector<1x160xi1>
    %108 = vector.broadcast %107 : vector<1x160xi1> to vector<32x160xi1>
    %109 = arith.select %108, %102, %66 : vector<32x160xi1>, vector<32x160xf32>
    %110 = arith.truncf %109 : vector<32x160xf32> to vector<32x160xbf16>
    %cst_75 = arith.constant dense<0.000000e+00> : vector<32x160xf32>
    %111 = tpu.matmul %0, %110, %cst_75 {dimension_numbers = #tpu.dot_dimension_numbers<[1], [0], [0], [1], [0, 0, 1, 1], [], []>} : vector<32x32xbf16>, vector<32x160xbf16>, vector<32x160xf32> -> vector<32x160xf32>
    %c3 = arith.constant 3 : index
    %c0_76 = arith.constant 0 : index
    %c0_77 = arith.constant 0 : index
    %112 = vector.load %arg3[%c3, %c0_76, %c0_77] : memref<5x1x160xf32, #tpu.memory_space<vmem>>, vector<1x1x160xf32>
    %113 = vector.shape_cast %112 : vector<1x1x160xf32> to vector<1x160xf32>
    %114 = vector.broadcast %113 : vector<1x160xf32> to vector<32x160xf32>
    %115 = arith.mulf %114, %109 : vector<32x160xf32>
    %116 = arith.addf %115, %111 : vector<32x160xf32>
    %117 = arith.truncf %116 : vector<32x160xf32> to vector<32x160xbf16>
    %c3_78 = arith.constant 3 : index
    %c0_79 = arith.constant 0 : index
    %c0_80 = arith.constant 0 : index
    %118 = vector.load %arg6[%c3_78, %c0_79, %c0_80] : memref<5x160x320xbf16, #tpu.memory_space<vmem>>, vector<1x160x320xbf16>
    %119 = vector.shape_cast %118 : vector<1x160x320xbf16> to vector<160x320xbf16>
    %cst_81 = arith.constant dense<0.000000e+00> : vector<32x320xf32>
    %120 = tpu.matmul %117, %119, %cst_81 {dimension_numbers = #tpu.dot_dimension_numbers<[1], [0], [0], [1], [0, 0, 1, 1], [], []>} : vector<32x160xbf16>, vector<160x320xbf16>, vector<32x320xf32> -> vector<32x320xf32>
    %c3_82 = arith.constant 3 : index
    %c0_83 = arith.constant 0 : index
    %c0_84 = arith.constant 0 : index
    %121 = vector.load %arg7[%c3_82, %c0_83, %c0_84] : memref<5x1x320xf32, #tpu.memory_space<vmem>>, vector<1x1x320xf32>
    %122 = vector.shape_cast %121 : vector<1x1x320xf32> to vector<1x320xf32>
    %123 = vector.broadcast %122 : vector<1x320xf32> to vector<32x320xf32>
    %124 = arith.addf %120, %123 : vector<32x320xf32>
    %cst_85 = arith.constant 0.000000e+00 : f32
    %125 = vector.broadcast %cst_85 : f32 to vector<32x320xf32>
    %126 = arith.maximumf %124, %125 : vector<32x320xf32>
    %127 = arith.truncf %126 : vector<32x320xf32> to vector<32x320xbf16>
    %c3_86 = arith.constant 3 : index
    %c0_87 = arith.constant 0 : index
    %c0_88 = arith.constant 0 : index
    %128 = vector.load %arg8[%c3_86, %c0_87, %c0_88] : memref<5x320x160xbf16, #tpu.memory_space<vmem>>, vector<1x320x160xbf16>
    %129 = vector.shape_cast %128 : vector<1x320x160xbf16> to vector<320x160xbf16>
    %cst_89 = arith.constant dense<0.000000e+00> : vector<32x160xf32>
    %130 = tpu.matmul %127, %129, %cst_89 {dimension_numbers = #tpu.dot_dimension_numbers<[1], [0], [0], [1], [0, 0, 1, 1], [], []>} : vector<32x320xbf16>, vector<320x160xbf16>, vector<32x160xf32> -> vector<32x160xf32>
    %c3_90 = arith.constant 3 : index
    %c0_91 = arith.constant 0 : index
    %c0_92 = arith.constant 0 : index
    %131 = vector.load %arg9[%c3_90, %c0_91, %c0_92] : memref<5x1x160xf32, #tpu.memory_space<vmem>>, vector<1x1x160xf32>
    %132 = vector.shape_cast %131 : vector<1x1x160xf32> to vector<1x160xf32>
    %133 = vector.broadcast %132 : vector<1x160xf32> to vector<32x160xf32>
    %134 = arith.addf %130, %133 : vector<32x160xf32>
    %cst_93 = arith.constant 0.999994993 : f32
    %135 = vector.broadcast %cst_93 : f32 to vector<32x160xf32>
    %136 = arith.mulf %134, %135 : vector<32x160xf32>
    %c3_94 = arith.constant 3 : index
    %c0_95 = arith.constant 0 : index
    %c0_96 = arith.constant 0 : index
    %137 = vector.load %arg4[%c3_94, %c0_95, %c0_96] : memref<5x1x160xf32, #tpu.memory_space<vmem>>, vector<1x1x160xf32>
    %138 = vector.shape_cast %137 : vector<1x1x160xf32> to vector<1x160xf32>
    %cst_97 = arith.constant 0.000000e+00 : f32
    %139 = vector.broadcast %cst_97 : f32 to vector<1x160xf32>
    %140 = arith.cmpf ogt, %138, %139 : vector<1x160xf32>
    %cst_98 = arith.constant 0.000000e+00 : f32
    %141 = vector.broadcast %cst_98 : f32 to vector<32x160xf32>
    %142 = arith.maximumf %136, %141 : vector<32x160xf32>
    %143 = vector.shape_cast %140 : vector<1x160xi1> to vector<1x160xi1>
    %144 = vector.broadcast %143 : vector<1x160xi1> to vector<32x160xi1>
    %145 = arith.select %144, %142, %136 : vector<32x160xi1>, vector<32x160xf32>
    %c3_99 = arith.constant 3 : index
    %c0_100 = arith.constant 0 : index
    %c0_101 = arith.constant 0 : index
    %146 = vector.load %arg5[%c3_99, %c0_100, %c0_101] : memref<5x1x160xf32, #tpu.memory_space<vmem>>, vector<1x1x160xf32>
    %147 = vector.shape_cast %146 : vector<1x1x160xf32> to vector<1x160xf32>
    %cst_102 = arith.constant 0.000000e+00 : f32
    %148 = vector.broadcast %cst_102 : f32 to vector<1x160xf32>
    %149 = arith.cmpf ogt, %147, %148 : vector<1x160xf32>
    %150 = vector.shape_cast %149 : vector<1x160xi1> to vector<1x160xi1>
    %151 = vector.broadcast %150 : vector<1x160xi1> to vector<32x160xi1>
    %152 = arith.select %151, %145, %109 : vector<32x160xi1>, vector<32x160xf32>
    %153 = arith.truncf %152 : vector<32x160xf32> to vector<32x160xbf16>
    %cst_103 = arith.constant dense<0.000000e+00> : vector<32x160xf32>
    %154 = tpu.matmul %0, %153, %cst_103 {dimension_numbers = #tpu.dot_dimension_numbers<[1], [0], [0], [1], [0, 0, 1, 1], [], []>} : vector<32x32xbf16>, vector<32x160xbf16>, vector<32x160xf32> -> vector<32x160xf32>
    %c4 = arith.constant 4 : index
    %c0_104 = arith.constant 0 : index
    %c0_105 = arith.constant 0 : index
    %155 = vector.load %arg3[%c4, %c0_104, %c0_105] : memref<5x1x160xf32, #tpu.memory_space<vmem>>, vector<1x1x160xf32>
    %156 = vector.shape_cast %155 : vector<1x1x160xf32> to vector<1x160xf32>
    %157 = vector.broadcast %156 : vector<1x160xf32> to vector<32x160xf32>
    %158 = arith.mulf %157, %152 : vector<32x160xf32>
    %159 = arith.addf %158, %154 : vector<32x160xf32>
    %160 = arith.truncf %159 : vector<32x160xf32> to vector<32x160xbf16>
    %c4_106 = arith.constant 4 : index
    %c0_107 = arith.constant 0 : index
    %c0_108 = arith.constant 0 : index
    %161 = vector.load %arg6[%c4_106, %c0_107, %c0_108] : memref<5x160x320xbf16, #tpu.memory_space<vmem>>, vector<1x160x320xbf16>
    %162 = vector.shape_cast %161 : vector<1x160x320xbf16> to vector<160x320xbf16>
    %cst_109 = arith.constant dense<0.000000e+00> : vector<32x320xf32>
    %163 = tpu.matmul %160, %162, %cst_109 {dimension_numbers = #tpu.dot_dimension_numbers<[1], [0], [0], [1], [0, 0, 1, 1], [], []>} : vector<32x160xbf16>, vector<160x320xbf16>, vector<32x320xf32> -> vector<32x320xf32>
    %c4_110 = arith.constant 4 : index
    %c0_111 = arith.constant 0 : index
    %c0_112 = arith.constant 0 : index
    %164 = vector.load %arg7[%c4_110, %c0_111, %c0_112] : memref<5x1x320xf32, #tpu.memory_space<vmem>>, vector<1x1x320xf32>
    %165 = vector.shape_cast %164 : vector<1x1x320xf32> to vector<1x320xf32>
    %166 = vector.broadcast %165 : vector<1x320xf32> to vector<32x320xf32>
    %167 = arith.addf %163, %166 : vector<32x320xf32>
    %cst_113 = arith.constant 0.000000e+00 : f32
    %168 = vector.broadcast %cst_113 : f32 to vector<32x320xf32>
    %169 = arith.maximumf %167, %168 : vector<32x320xf32>
    %170 = arith.truncf %169 : vector<32x320xf32> to vector<32x320xbf16>
    %c4_114 = arith.constant 4 : index
    %c0_115 = arith.constant 0 : index
    %c0_116 = arith.constant 0 : index
    %171 = vector.load %arg8[%c4_114, %c0_115, %c0_116] : memref<5x320x160xbf16, #tpu.memory_space<vmem>>, vector<1x320x160xbf16>
    %172 = vector.shape_cast %171 : vector<1x320x160xbf16> to vector<320x160xbf16>
    %cst_117 = arith.constant dense<0.000000e+00> : vector<32x160xf32>
    %173 = tpu.matmul %170, %172, %cst_117 {dimension_numbers = #tpu.dot_dimension_numbers<[1], [0], [0], [1], [0, 0, 1, 1], [], []>} : vector<32x320xbf16>, vector<320x160xbf16>, vector<32x160xf32> -> vector<32x160xf32>
    %c4_118 = arith.constant 4 : index
    %c0_119 = arith.constant 0 : index
    %c0_120 = arith.constant 0 : index
    %174 = vector.load %arg9[%c4_118, %c0_119, %c0_120] : memref<5x1x160xf32, #tpu.memory_space<vmem>>, vector<1x1x160xf32>
    %175 = vector.shape_cast %174 : vector<1x1x160xf32> to vector<1x160xf32>
    %176 = vector.broadcast %175 : vector<1x160xf32> to vector<32x160xf32>
    %177 = arith.addf %173, %176 : vector<32x160xf32>
    %cst_121 = arith.constant 0.999994993 : f32
    %178 = vector.broadcast %cst_121 : f32 to vector<32x160xf32>
    %179 = arith.mulf %177, %178 : vector<32x160xf32>
    %c4_122 = arith.constant 4 : index
    %c0_123 = arith.constant 0 : index
    %c0_124 = arith.constant 0 : index
    %180 = vector.load %arg5[%c4_122, %c0_123, %c0_124] : memref<5x1x160xf32, #tpu.memory_space<vmem>>, vector<1x1x160xf32>
    %181 = vector.shape_cast %180 : vector<1x1x160xf32> to vector<1x160xf32>
    %cst_125 = arith.constant 0.000000e+00 : f32
    %182 = vector.broadcast %cst_125 : f32 to vector<1x160xf32>
    %183 = arith.cmpf ogt, %181, %182 : vector<1x160xf32>
    %184 = vector.shape_cast %183 : vector<1x160xi1> to vector<1x160xi1>
    %185 = vector.broadcast %184 : vector<1x160xi1> to vector<32x160xi1>
    %186 = arith.select %185, %179, %152 : vector<32x160xi1>, vector<32x160xf32>
    %c0_126 = arith.constant 0 : index
    %c0_127 = arith.constant 0 : index
    %187 = vector.load %arg2[%c0_126, %c0_127] : memref<2x32xbf16, #tpu.memory_space<vmem>>, vector<2x32xbf16>
    %188 = arith.truncf %186 : vector<32x160xf32> to vector<32x160xbf16>
    %cst_128 = arith.constant dense<0.000000e+00> : vector<2x160xf32>
    %189 = tpu.matmul %187, %188, %cst_128 {dimension_numbers = #tpu.dot_dimension_numbers<[1], [0], [0], [1], [0, 0, 1, 1], [], []>} : vector<2x32xbf16>, vector<32x160xbf16>, vector<2x160xf32> -> vector<2x160xf32>
    %c0_129 = arith.constant 0 : index
    %c0_130 = arith.constant 0 : index
    %190 = vector.load %arg10[%c0_129, %c0_130] : memref<2x160xf32, #tpu.memory_space<vmem>>, vector<2x160xf32>
    tpu.vector_store %arg10[%c0_129, %c0_130], %189 {strides = array<i32>} : memref<2x160xf32, #tpu.memory_space<vmem>>, vector<2x160xf32>,
    return
  }
}

</mosaic_0001>

<bundles_post_ra>
// kernel: forward.1
= control target key start
LH: loop header
LB: loop body
LE: loop exit
PB: predicated region body
PF: predicated region fallthrough
CT: control target
= control target key end

     0   :  { %v5663_v2 = vmov 0   ;;  %vm62_vm0 = vcmask 261120   ;;  %v124_v47 = vlaneseq  ;;  %vm749_vm1 = vcmask 523264   ;;  %s7420_s1 = inlined_call_operand.vmem [shape: f32[32,160], index: 1, kind: input, shape index: {}]   ;;  %s7421_s0 = inlined_call_operand.vmem [shape: bf16[32,32], index: 0, kind: input, shape index: {}]   ;;  %s7422_s6 = inlined_call_operand.vmem [shape: bf16[5,160,320], index: 6, kind: input, shape index: {}]   ;;  %s7423_s8 = inlined_call_operand.vmem [shape: bf16[5,320,160], index: 8, kind: input, shape index: {}]   ;;  %s7424_s3 = inlined_call_operand.vmem [shape: f32[5,1,160], index: 3, kind: input, shape index: {}]   ;;  %s7425_s7 = inlined_call_operand.vmem [shape: f32[5,1,320], index: 7, kind: input, shape index: {}]   ;;  %s7426_s9 = inlined_call_operand.vmem [shape: f32[5,1,160], index: 9, kind: input, shape index: {}]   ;;  %s7427_s4 = inlined_call_operand.vmem [shape: f32[5,1,160], index: 4, kind: input, shape index: {}]   ;;  %s7428_s5 = inlined_call_operand.vmem [shape: f32[5,1,160], index: 5, kind: input, shape index: {}]   ;;  %s7429_s2 = inlined_call_operand.vmem [shape: bf16[2,32], index: 2, kind: input, shape index: {}]   ;;  %s7430_s10 = inlined_call_operand.vmem [shape: f32[2,160], index: 10, kind: output, shape index: {}]  }
   0x1   :  { %v41_v0 = vld [vmem:[%s7420_s1 + $0x8] sm:$0xff]  ;;  %v43_v1 = vld [vmem:[%s7420_s1 + $0x18] sm:$0xff]  ;;  %101 = vmatprep.mubr.bf16.mxu0 %v5663_v2  ;;  %v5730_v4 = vld [vmem:[%s7420_s1] sm:$0xff] }
   0x2   :  { %v49_v3 = vpack.c.bf16 %v43_v1, %v41_v0  ;;  %v5735_v5 = vld [vmem:[%s7420_s1 + $0x10] sm:$0xff]  ;;  %v45_v6 = vld [vmem:[%s7420_s1 + $0x28] sm:$0xff]  ;;  %v47_v8 = vld [vmem:[%s7420_s1 + $0x38] sm:$0xff]  ;;  %v5866_v48 = vshrl.u32 %v124_v47, 7 }
   0x3   :  { %v48_v7 = vpack.c.bf16 %v5735_v5, %v5730_v4  ;;  %v44_v9 = vld [vmem:[%s7420_s1 + $0x20] sm:$0xff]  ;;  %v46_v10 = vld [vmem:[%s7420_s1 + $0x30] sm:$0xff]  ;;  %v51_v11 = vpack.c.bf16 %v47_v8, %v45_v6  ;;  %v5157_v17 = vld [vmem:[%s7422_s6 + $0x1c] ss:$12 sps:$4 sm:$0xff]  }
   0x4   :  { %69 = vmatprep.subr.bf16.mxu0 %v49_v3  ;;  %v50_v12 = vpack.c.bf16 %v46_v10, %v44_v9  ;;  %v5153_v13 = vld [vmem:[%s7422_s6 + $0x4] ss:$12 sps:$4 sm:$0xff]   ;;  %v5155_v14 = vld [vmem:[%s7422_s6] ss:$12 sps:$4 sm:$0xff]   ;;  %v5156_v16 = vld [vmem:[%s7422_s6 + $0x8] ss:$12 sps:$4 sm:$0xff]  }
   0x5   :  { %70 = vmatpush1.bf16.msra.mxu0 %v48_v7  ;;  %v5151_v15 = vld [vmem:[%s7421_s0] sm:$0xff]   ;;  %377 = vmatprep.subr.bf16.mxu1 %v5153_v13  ;;  %v5163_v21 = vld [vmem:[%s7422_s6 + $0x30] ss:$12 sps:$4 sm:$0xff]   ;;  %v5165_v22 = vld [vmem:[%s7422_s6 + $0x4c] ss:$12 sps:$4 sm:$0xff]   ;;  %v5869_v49 = vsub.s32 1, %v5866_v48 }
   0x6   :  { %71 = vmatprep.subr.bf16.mxu0 %v51_v11  ;;  %378 = vmatpush1.bf16.msra.mxu1 %v5155_v14  ;;  %v5159_v18 = vld [vmem:[%s7422_s6 + $0x18] ss:$12 sps:$4 sm:$0xff]   ;;  %v5161_v19 = vld [vmem:[%s7422_s6 + $0x34] ss:$12 sps:$4 sm:$0xff]   ;;  %v5152_v23 = vld [vmem:[%s7421_s0 + $0x8] sm:$0xff]   ;;  %v5875_v51 = vsub.s32 0, %v5866_v48 }
   0x7   :  { %379 = vmatprep.subr.bf16.mxu1 %v5157_v17  ;;  %v5160_v20 = vld [vmem:[%s7422_s6 + $0x20] ss:$12 sps:$4 sm:$0xff]   ;;  %v5164_v24 = vld [vmem:[%s7422_s6 + $0x38] ss:$12 sps:$4 sm:$0xff]   ;;  %v5167_v25 = vld [vmem:[%s7422_s6 + $0x48] ss:$12 sps:$4 sm:$0xff]  }
   0x8   :  { %v5169_v26 = vld [vmem:[%s7422_s6 + $0x64] ss:$12 sps:$4 sm:$0xff]   ;;  %v5171_v28 = vld [vmem:[%s7422_s6 + $0x60] ss:$12 sps:$4 sm:$0xff]   ;;  %v5172_v29 = vld [vmem:[%s7422_s6 + $0x68] ss:$12 sps:$4 sm:$0xff]  }
   0x9   :  { %72 = vmatpush1.bf16.msra.mxu0 %v50_v12  ;;  %v5168_v27 = vld [vmem:[%s7422_s6 + $0x50] ss:$12 sps:$4 sm:$0xff]   ;;  %v5175_v31 = vld [vmem:[%s7422_s6 + $0x78] ss:$12 sps:$4 sm:$0xff]   ;;  %v5177_v32 = vld [vmem:[%s7422_s6 + $0x94] ss:$12 sps:$4 sm:$0xff]  }
   0xa   :  { %430 = vmatprep.subr.bf16.mxu0 %v5663_v2  ;;  %380 = vmatpush1.bf16.msra.mxu1 %v5159_v18  ;;  %v5173_v30 = vld [vmem:[%s7422_s6 + $0x7c] ss:$12 sps:$4 sm:$0xff]   ;;  %v5176_v33 = vld [vmem:[%s7422_s6 + $0x80] ss:$12 sps:$4 sm:$0xff]   ;;  %v5180_v36 = vld [vmem:[%s7422_s6 + $0x98] ss:$12 sps:$4 sm:$0xff]  }
   0xb   :  { %381 = vmatprep.subr.bf16.mxu1 %v5161_v19  ;;  %v5179_v34 = vld [vmem:[%s7422_s6 + $0x90] ss:$12 sps:$4 sm:$0xff]   ;;  %v5181_v35 = vld [vmem:[%s7422_s6 + $0xac] ss:$12 sps:$4 sm:$0xff]   ;;  %v5183_v37 = vld [vmem:[%s7422_s6 + $0xa8] ss:$12 sps:$4 sm:$0xff]  }
   0xc   :  { %4340 = vmatmul.mubr.msk.bf16.vlgmr.msra.gmra.mrb[0].mxu0 %vm62_vm0, %v5151_v15  ;;  %v5184_v38 = vld [vmem:[%s7422_s6 + $0xb0] ss:$12 sps:$4 sm:$0xff]   ;;  %v5187_v40 = vld [vmem:[%s7422_s6 + $0xc0] ss:$12 sps:$4 sm:$0xff]   ;;  %v5188_v41 = vld [vmem:[%s7422_s6 + $0xc8] ss:$12 sps:$4 sm:$0xff]  }
   0xd   :  { %111 = vmatprep.mubr.bf16.mxu0 %v5663_v2  ;;  %431 = vmatpush1.bf16.msra.mxu0 %v5156_v16  ;;  %v5185_v39 = vld [vmem:[%s7422_s6 + $0xc4] ss:$12 sps:$4 sm:$0xff]   ;;  %v5189_v42 = vld [vmem:[%s7422_s6 + $0xdc] ss:$12 sps:$4 sm:$0xff]   ;;  %v5192_v44 = vld [vmem:[%s7422_s6 + $0xe0] ss:$12 sps:$4 sm:$0xff]  }
   0xe   :  { %432 = vmatprep.subr.bf16.mxu0 %v5663_v2  ;;  %382 = vmatpush1.bf16.msra.mxu1 %v5163_v21  ;;  %v5191_v43 = vld [vmem:[%s7422_s6 + $0xd8] ss:$12 sps:$4 sm:$0xff]   ;;  %v122_v50 = vld [vmem:[%s7424_s3] sm:$0x3]  ;;  %v5653_v54 = vld [vmem:[%s7420_s1 + $0x8] sm:$0xff] }
   0xf   :  { %383 = vmatprep.subr.bf16.mxu1 %v5165_v22  ;;  %v5195_v45 = vld [vmem:[%s7423_s8 + $0x4] ss:$8 sps:$4 sm:$0xff]   ;;  %v131_v52 = vrot.slane %v122_v50, %v5869_v49  ;;  %v127_v53 = vrot.slane %v122_v50, %v5875_v51  ;;  %v5654_v58 = vld [vmem:[%s7420_s1 + $0x18] sm:$0xff]  ;;  %v5656_v11 = vld [vmem:[%s7420_s1 + $0x30] sm:$0xff] }
  0x10   :  { %v5231_v46 = vld [vmem:[%s7423_s8 + $0x104] ss:$8 sps:$4 sm:$0xff]   ;;  %v5198_v13 = vld [vmem:[%s7423_s8 + $0x14] ss:$8 sps:$4 sm:$0xff]   ;;  %v5196_v22 = vld [vmem:[%s7423_s8 + $0x10] ss:$8 sps:$4 sm:$0xff]  }
  0x11   :  { %433 = vmatpush1.bf16.msra.mxu0 %v5160_v20  ;;  %v135_v55 = vmul.f32 %v5653_v54, %v131_v52  ;;  %v134_v56 = vmul.f32 %v127_v53, %v5730_v4  ;;  %v136_v57 = vmul.f32 %v127_v53, %v5735_v5  ;;  %v137_v59 = vmul.f32 %v5654_v58, %v131_v52  ;;  %v5193_v4 = vld [vmem:[%s7423_s8] ss:$8 sps:$4 sm:$0xff]   ;;  %v5237_v14 = vld [vmem:[%s7423_s8 + $0x114] ss:$8 sps:$4 sm:$0xff]   ;;  %v5225_v47 = vld [vmem:[%s7423_s8 + $0xa4] ss:$8 sps:$4 sm:$0xff]  }
  0x12   :  { %434 = vmatprep.subr.bf16.mxu0 %v5663_v2  ;;  %384 = vmatpush1.bf16.msra.mxu1 %v5167_v25  ;;  %v5229_v5 = vld [vmem:[%s7423_s8 + $0x100] ss:$8 sps:$4 sm:$0xff]   ;;  %v140_v12 = vmul.f32 %v5656_v11, %v127_v53  ;;  %v5658_v18 = vld [vmem:[%s7420_s1 + $0x38] sm:$0xff]  ;;  %v5234_v54 = vld [vmem:[%s7423_s8 + $0xc4] ss:$8 sps:$4 sm:$0xff]  }
  0x13   :  { %385 = vmatprep.subr.bf16.mxu1 %v5169_v26  ;;  %v5655_v9 = vld [vmem:[%s7420_s1 + $0x20] sm:$0xff]  ;;  %v5657_v16 = vld [vmem:[%s7420_s1 + $0x28] sm:$0xff]  ;;  %v141_v19 = vmul.f32 %v5658_v18, %v131_v52 }
  0x14   :  { %4341 = vmatmul.mubr.msk.bf16.gmra.mrb[4].mxu0 %vm62_vm0, %v5152_v23  ;;  %v138_v10 = vmul.f32 %v5655_v9, %v127_v53  ;;  %v139_v17 = vmul.f32 %v5657_v16, %v131_v52  ;;  %v5235_v23 = vld [vmem:[%s7423_s8 + $0x110] ss:$8 sps:$4 sm:$0xff]   ;;  %v5223_v50 = vld [vmem:[%s7423_s8 + $0xa0] ss:$8 sps:$4 sm:$0xff]   ;;  %v5228_v52 = vld [vmem:[%s7423_s8 + $0xb4] ss:$8 sps:$4 sm:$0xff]  }
  0x15   :  { %435 = vmatpush1.bf16.msra.mxu0 %v5164_v24  ;;  %v5226_v53 = vld [vmem:[%s7423_s8 + $0xb0] ss:$8 sps:$4 sm:$0xff]   ;;  %v5243_v58 = vld [vmem:[%s7423_s8 + $0x124] ss:$8 sps:$4 sm:$0xff]  }
  0x16   :  { %436 = vmatprep.subr.bf16.mxu0 %v5663_v2  ;;  %386 = vmatpush1.bf16.msra.mxu1 %v5171_v28 }
  0x17   :  { %387 = vmatprep.subr.bf16.mxu1 %v5173_v30 }
  0x19   :  { %437 = vmatpush1.bf16.msra.mxu0 %v5168_v27  ;;  %v5201_v27 = vld [vmem:[%s7423_s8 + $0x24] ss:$8 sps:$4 sm:$0xff]  }
  0x1a   :  { %438 = vmatprep.subr.bf16.mxu0 %v5663_v2  ;;  %388 = vmatpush1.bf16.msra.mxu1 %v5175_v31 }
  0x1b   :  { %389 = vmatprep.subr.bf16.mxu1 %v5177_v32  ;;  %v5199_v32 = vld [vmem:[%s7423_s8 + $0x20] ss:$8 sps:$4 sm:$0xff]  }
  0x1d   :  { %439 = vmatpush1.bf16.msra.mxu0 %v5172_v29 }
  0x1e   :  { %440 = vmatprep.subr.bf16.mxu0 %v5663_v2  ;;  %390 = vmatpush1.bf16.msra.mxu1 %v5179_v34  ;;  %v5202_v34 = vld [vmem:[%s7423_s8 + $0x30] ss:$8 sps:$4 sm:$0xff]  }
  0x1f   :  { %391 = vmatprep.subr.bf16.mxu1 %v5181_v35  ;;  %v5207_v35 = vld [vmem:[%s7423_s8 + $0x44] ss:$8 sps:$4 sm:$0xff]  }
  0x21   :  { %441 = vmatpush1.bf16.msra.mxu0 %v5176_v33  ;;  %v5204_v33 = vld [vmem:[%s7423_s8 + $0x34] ss:$8 sps:$4 sm:$0xff]  }
  0x22   :  { %442 = vmatprep.subr.bf16.mxu0 %v5663_v2  ;;  %392 = vmatpush1.bf16.msra.mxu1 %v5183_v37  ;;  %v5210_v37 = vld [vmem:[%s7423_s8 + $0x54] ss:$8 sps:$4 sm:$0xff]  }
  0x23   :  { %393 = vmatprep.subr.bf16.mxu1 %v5185_v39  ;;  %v5213_v39 = vld [vmem:[%s7423_s8 + $0x64] ss:$8 sps:$4 sm:$0xff]  }
  0x25   :  { %443 = vmatpush1.bf16.msra.mxu0 %v5180_v36  ;;  %v5205_v36 = vld [vmem:[%s7423_s8 + $0x40] ss:$8 sps:$4 sm:$0xff]  }
  0x26   :  { %444 = vmatprep.subr.bf16.mxu0 %v5663_v2  ;;  %394 = vmatpush1.bf16.msra.mxu1 %v5187_v40  ;;  %v5211_v40 = vld [vmem:[%s7423_s8 + $0x60] ss:$8 sps:$4 sm:$0xff]  }
  0x27   :  { %395 = vmatprep.subr.bf16.mxu1 %v5189_v42  ;;  %v5214_v42 = vld [vmem:[%s7423_s8 + $0x70] ss:$8 sps:$4 sm:$0xff]  }
  0x29   :  { %445 = vmatpush1.bf16.msra.mxu0 %v5184_v38  ;;  %v5208_v38 = vld [vmem:[%s7423_s8 + $0x50] ss:$8 sps:$4 sm:$0xff]  }
  0x2a   :  { %446 = vmatprep.subr.bf16.mxu0 %v5663_v2  ;;  %396 = vmatpush1.bf16.msra.mxu1 %v5191_v43  ;;  %v5219_v43 = vld [vmem:[%s7423_s8 + $0x84] ss:$8 sps:$4 sm:$0xff]  }
  0x2b   :  { %756 = vmatprep.subr.bf16.mxu1 %v5195_v45  ;;  %v5222_v45 = vld [vmem:[%s7423_s8 + $0x94] ss:$8 sps:$4 sm:$0xff]  }
  0x2d   :  { %447 = vmatpush1.bf16.msra.mxu0 %v5188_v41  ;;  %v5216_v41 = vld [vmem:[%s7423_s8 + $0x74] ss:$8 sps:$4 sm:$0xff]  }
  0x2e   :  { %448 = vmatprep.subr.bf16.mxu0 %v5663_v2 }
  0x31   :  { %449 = vmatpush1.bf16.msra.mxu0 %v5192_v44  ;;  %v5217_v44 = vld [vmem:[%s7423_s8 + $0x80] ss:$8 sps:$4 sm:$0xff]  }
  0x32   :  { %809 = vmatprep.subr.bf16.mxu0 %v5231_v46  ;;  %v5220_v46 = vld [vmem:[%s7423_s8 + $0x90] ss:$8 sps:$4 sm:$0xff]  }
  0xdf   :  { %v103_v60 = vpop.f32.mrb[0].mxu0 }
  0xe0   :  { %v105_v61 = vpop.f32.mrb[1].mxu0  ;;  %v142_v0 = vadd.f32 %v134_v56, %v103_v60  ;;  %v5240_v56 = vld [vmem:[%s7423_s8 + $0xd4] ss:$8 sps:$4 sm:$0xff]   ;;  %v5246_v60 = vld [vmem:[%s7423_s8 + $0xe4] ss:$8 sps:$4 sm:$0xff]  }
  0xe1   :  { %v143_v62 = vadd.f32 %v135_v55, %v105_v61  ;;  %v107_v63 = vpop.f32.mrb[2].mxu0  ;;  %v5232_v55 = vld [vmem:[%s7423_s8 + $0xc0] ss:$8 sps:$4 sm:$0xff]  }
  0xe2   :  { %v144_v1 = vadd.f32 %v136_v57, %v107_v63  ;;  %v109_v3 = vpop.f32.mrb[3].mxu0  ;;  %v5238_v57 = vld [vmem:[%s7423_s8 + $0xd0] ss:$8 sps:$4 sm:$0xff]   ;;  %v5244_v61 = vld [vmem:[%s7423_s8 + $0xe0] ss:$8 sps:$4 sm:$0xff]  }
  0xe3   :  { %v145_v6 = vadd.f32 %v137_v59, %v109_v3  ;;  %v5241_v59 = vld [vmem:[%s7423_s8 + $0x120] ss:$8 sps:$4 sm:$0xff]   ;;  %v5247_v63 = vld [vmem:[%s7423_s8 + $0x130] ss:$8 sps:$4 sm:$0xff]   ;;  %v6019_v3 = vsub.s32 2, %v5866_v48 }
  0xe4   :  { %v150_v7 = vpack.c.bf16 %v144_v1, %v142_v0  ;;  %v5252_v0 = vld [vmem:[%s7423_s8 + $0xf4] ss:$8 sps:$4 sm:$0xff]   ;;  %v5250_v1 = vld [vmem:[%s7423_s8 + $0xf0] ss:$8 sps:$4 sm:$0xff]  }
  0xe5   :  { %v151_v8 = vpack.c.bf16 %v145_v6, %v143_v62  ;;  %v5249_v62 = vld [vmem:[%s7423_s8 + $0x134] ss:$8 sps:$4 sm:$0xff]   ;;  %v194_v6 = vld [vmem:[%s7425_s7] sm:$0x7] }
  0xe7   :  { %v113_v15 = vpop.f32.mrb[4].mxu0  ;;  %4372 = vmatprep.mubr.msk.bf16.mxu1 %vm62_vm0, %v151_v8  ;;  %4374 = vmatprep.mubr.msk.bf16.mxu0 %vm62_vm0, %v151_v8  ;;  %v207_v8 = vrot.slane %v194_v6, %v6019_v3 }
  0xe8   :  { %v115_v20 = vpop.f32.mrb[5].mxu0  ;;  %410 = vmatmul.mubr.bf16.vlgmr.msra.gmra.mrb[0].mxu1 %v150_v7  ;;  %463 = vmatmul.mubr.bf16.vlgmr.msra.gmra.mrb[8].mxu0 %v150_v7  ;;  %v146_v24 = vadd.f32 %v138_v10, %v113_v15  ;;  %v199_v7 = vrot.slane %v194_v6, %v5875_v51 }
  0xe9   :  { %v117_v21 = vpop.f32.mrb[6].mxu0  ;;  %757 = vmatpush1.bf16.msra.mxu1 %v5193_v4  ;;  %810 = vmatpush1.bf16.msra.mxu0 %v5229_v5  ;;  %v147_v28 = vadd.f32 %v139_v17, %v115_v20  ;;  %v203_v4 = vrot.slane %v194_v6, %v5869_v49 }
  0xea   :  { %v148_v25 = vadd.f32 %v140_v12, %v117_v21  ;;  %v119_v26 = vpop.f32.mrb[7].mxu0  ;;  %758 = vmatprep.subr.bf16.mxu1 %v5198_v13  ;;  %811 = vmatprep.subr.bf16.mxu0 %v5237_v14 }
  0xeb   :  { %v149_v29 = vadd.f32 %v141_v19, %v119_v26 }
  0xec   :  { %v152_v30 = vpack.c.bf16 %v148_v25, %v146_v24 }
  0xed   :  { %v153_v31 = vpack.c.bf16 %v149_v29, %v147_v28  ;;  %759 = vmatpush1.bf16.msra.mxu1 %v5196_v22  ;;  %812 = vmatpush1.bf16.msra.mxu0 %v5235_v23 }
  0xee   :  { %760 = vmatprep.subr.bf16.mxu1 %v5201_v27  ;;  %813 = vmatprep.subr.bf16.mxu0 %v5243_v58 }
  0xef   :  { %4373 = vmatprep.mubr.msk.bf16.mxu1 %vm62_vm0, %v153_v31  ;;  %4375 = vmatprep.mubr.msk.bf16.mxu0 %vm62_vm0, %v153_v31 }
  0xf0   :  { %420 = vmatmul.mubr.bf16.gmra.mrb[4].mxu1 %v152_v30  ;;  %471 = vmatmul.mubr.bf16.gmra.mrb[12].mxu0 %v152_v30 }
  0xf1   :  { %761 = vmatpush1.bf16.msra.mxu1 %v5199_v32  ;;  %841 = vmatprep.mubr.bf16.mxu0 %v5663_v2 }
  0xf2   :  { %762 = vmatprep.subr.bf16.mxu1 %v5204_v33  ;;  %814 = vmatpush1.bf16.msra.mxu0 %v5241_v59 }
  0xf3   :  { %815 = vmatprep.subr.bf16.mxu0 %v5249_v62 }
  0xf5   :  { %763 = vmatpush1.bf16.msra.mxu1 %v5202_v34 }
  0xf6   :  { %764 = vmatprep.subr.bf16.mxu1 %v5207_v35  ;;  %816 = vmatpush1.bf16.msra.mxu0 %v5247_v63 }
  0xf9   :  { %765 = vmatpush1.bf16.msra.mxu1 %v5205_v36 }
  0xfa   :  { %766 = vmatprep.subr.bf16.mxu1 %v5210_v37 }
  0xfd   :  { %767 = vmatpush1.bf16.msra.mxu1 %v5208_v38 }
  0xfe   :  { %768 = vmatprep.subr.bf16.mxu1 %v5213_v39 }
 0x101   :  { %769 = vmatpush1.bf16.msra.mxu1 %v5211_v40 }
 0x102   :  { %770 = vmatprep.subr.bf16.mxu1 %v5216_v41 }
 0x105   :  { %771 = vmatpush1.bf16.msra.mxu1 %v5214_v42 }
 0x106   :  { %772 = vmatprep.subr.bf16.mxu1 %v5219_v43 }
 0x109   :  { %773 = vmatpush1.bf16.msra.mxu1 %v5217_v44 }
 0x10a   :  { %774 = vmatprep.subr.bf16.mxu1 %v5222_v45 }
 0x10d   :  { %775 = vmatpush1.bf16.msra.mxu1 %v5220_v46 }
 0x10e   :  { %776 = vmatprep.subr.bf16.mxu1 %v5225_v47 }
 0x111   :  { %777 = vmatpush1.bf16.msra.mxu1 %v5223_v50 }
 0x112   :  { %778 = vmatprep.subr.bf16.mxu1 %v5228_v52 }
 0x115   :  { %779 = vmatpush1.bf16.msra.mxu1 %v5226_v53 }
 0x116   :  { %780 = vmatprep.subr.bf16.mxu1 %v5234_v54 }
 0x119   :  { %781 = vmatpush1.bf16.msra.mxu1 %v5232_v55 }
 0x11a   :  { %782 = vmatprep.subr.bf16.mxu1 %v5240_v56 }
 0x11d   :  { %783 = vmatpush1.bf16.msra.mxu1 %v5238_v57  ;;  %v537_v57 = vld [vmem:[%s7426_s9] sm:$0x3] }
 0x11e   :  { %784 = vmatprep.subr.bf16.mxu1 %v5246_v60  ;;  %v542_v58 = vrot.slane %v537_v57, %v5875_v51  ;;  %v546_v60 = vrot.slane %v537_v57, %v5869_v49  ;;  %v5256_v57 = vld [vmem:[%s7422_s6 + $0x108] ss:$12 sps:$4 sm:$0xff]  }
 0x121   :  { %785 = vmatpush1.bf16.msra.mxu1 %v5244_v61 }
 0x122   :  { %786 = vmatprep.subr.bf16.mxu1 %v5252_v0 }
 0x125   :  { %787 = vmatpush1.bf16.msra.mxu1 %v5250_v1 }
 0x1bb   :  { %v411_v5 = vpop.f32.mrb[0].mxu1  ;;  %v464_v9 = vpop.f32.mrb[8].mxu0 }
 0x1bc   :  { %v412_v10 = vadd.f32 %v411_v5, %v199_v7  ;;  %v465_v11 = vadd.f32 %v464_v9, %v207_v8  ;;  %v413_v12 = vpop.f32.mrb[1].mxu1  ;;  %v466_v13 = vpop.f32.mrb[9].mxu0 }
 0x1bd   :  { %v414_v14 = vadd.f32 %v413_v12, %v203_v4  ;;  %v415_v15 = vpop.f32.mrb[2].mxu1  ;;  %v467_v16 = vpop.f32.mrb[10].mxu0 }
 0x1be   :  { %v416_v17 = vadd.f32 %v415_v15, %v199_v7  ;;  %v468_v18 = vadd.f32 %v467_v16, %v207_v8  ;;  %v417_v19 = vpop.f32.mrb[3].mxu1  ;;  %v469_v20 = vpop.f32.mrb[11].mxu0  ;;  %v479_v22 = vmax.f32 %v412_v10, 0.0  ;;  %v481_v23 = vmax.f32 %v465_v11, 0.0 }
 0x1bf   :  { %v418_v21 = vadd.f32 %v417_v19, %v203_v4  ;;  %v480_v26 = vmax.f32 %v414_v14, 0.0 }
 0x1c0   :  { %v482_v24 = vmax.f32 %v416_v17, 0.0  ;;  %v484_v25 = vmax.f32 %v468_v18, 0.0 }
 0x1c1   :  { %v483_v27 = vmax.f32 %v418_v21, 0.0 }
 0x1c2   :  { %v491_v28 = vpack.c.bf16 %v482_v24, %v479_v22  ;;  %v493_v29 = vpack.c.bf16 %v484_v25, %v481_v23 }
 0x1c3   :  { %v492_v30 = vpack.c.bf16 %v483_v27, %v480_v26  ;;  %v421_v31 = vpop.f32.mrb[4].mxu1  ;;  %v472_v32 = vpop.f32.mrb[12].mxu0 }
 0x1c4   :  { %v422_v33 = vadd.f32 %v421_v31, %v199_v7  ;;  %v473_v34 = vadd.f32 %v472_v32, %v207_v8  ;;  %v423_v35 = vpop.f32.mrb[5].mxu1  ;;  %v474_v36 = vpop.f32.mrb[13].mxu0  ;;  %4416 = vmatmul.mubr.msk.bf16.vlgmr.msra.gmra.mrb[16].mxu0 %vm749_vm1, %v493_v29 }
 0x1c5   :  { %v424_v37 = vadd.f32 %v423_v35, %v203_v4  ;;  %v425_v38 = vpop.f32.mrb[6].mxu1  ;;  %v475_v39 = vpop.f32.mrb[14].mxu0  ;;  %788 = vmatprep.mubr.bf16.mxu1 %v492_v30  ;;  %851 = vmatprep.mubr.bf16.mxu0 %v5663_v2 }
 0x1c6   :  { %v426_v40 = vadd.f32 %v425_v38, %v199_v7  ;;  %v476_v41 = vadd.f32 %v475_v39, %v207_v8  ;;  %v427_v42 = vpop.f32.mrb[7].mxu1  ;;  %v477_v43 = vpop.f32.mrb[15].mxu0  ;;  %789 = vmatmul.mubr.bf16.vlgmr.msra.gmra.mrb[8].mxu1 %v491_v28  ;;  %v485_v45 = vmax.f32 %v422_v33, 0.0  ;;  %v487_v46 = vmax.f32 %v473_v34, 0.0 }
 0x1c7   :  { %v428_v44 = vadd.f32 %v427_v42, %v203_v4  ;;  %v486_v52 = vmax.f32 %v424_v37, 0.0 }
 0x1c8   :  { %v488_v47 = vmax.f32 %v426_v40, 0.0  ;;  %v490_v50 = vmax.f32 %v476_v41, 0.0 }
 0x1c9   :  { %v489_v53 = vmax.f32 %v428_v44, 0.0 }
 0x1ca   :  { %v494_v54 = vpack.c.bf16 %v488_v47, %v485_v45  ;;  %v496_v55 = vpack.c.bf16 %v490_v50, %v487_v46 }
 0x1cb   :  { %v495_v56 = vpack.c.bf16 %v489_v53, %v486_v52  ;;  %v5255_v53 = vld [vmem:[%s7422_s6 + $0xf4] ss:$12 sps:$4 sm:$0xff]  }
 0x1cc   :  { %4417 = vmatmul.mubr.msk.bf16.gmra.mrb[20].mxu0 %vm749_vm1, %v496_v55  ;;  %v5258_v55 = vld [vmem:[%s7422_s6 + $0x10c] ss:$12 sps:$4 sm:$0xff]  }
 0x1cd   :  { %798 = vmatprep.mubr.bf16.mxu1 %v495_v56  ;;  %914 = vmatprep.mubr.bf16.mxu0 %v5663_v2  ;;  %v6088_v56 = vld [vmem:[%s7421_s0] sm:$0xff]  }
 0x1ce   :  { %799 = vmatmul.mubr.bf16.gmra.mrb[12].mxu1 %v494_v54  ;;  %v5253_v54 = vld [vmem:[%s7422_s6 + $0xf0] ss:$12 sps:$4 sm:$0xff]  }
 0x297   :  { %v843_v59 = vpop.f32.mrb[16].mxu0 }
 0x298   :  { %v845_v61 = vpop.f32.mrb[17].mxu0 }
 0x299   :  { %v790_v62 = vpop.f32.mrb[8].mxu1  ;;  %v847_v63 = vpop.f32.mrb[18].mxu0 }
 0x29a   :  { %v791_v0 = vadd.f32 %v790_v62, %v542_v58  ;;  %v792_v1 = vpop.f32.mrb[9].mxu1  ;;  %v849_v6 = vpop.f32.mrb[19].mxu0  ;;  %v5262_v62 = vld [vmem:[%s7422_s6 + $0x138] ss:$12 sps:$4 sm:$0xff]  }
 0x29b   :  { %v793_v7 = vadd.f32 %v792_v1, %v546_v60  ;;  %v794_v8 = vpop.f32.mrb[10].mxu1  ;;  %v5270_v1 = vld [vmem:[%s7422_s6 + $0x16c] ss:$12 sps:$4 sm:$0xff]  }
 0x29c   :  { %v844_v4 = vadd.f32 %v843_v59, %v791_v0  ;;  %v795_v5 = vadd.f32 %v794_v8, %v542_v58  ;;  %v796_v9 = vpop.f32.mrb[11].mxu1  ;;  %v5259_v59 = vld [vmem:[%s7422_s6 + $0x120] ss:$12 sps:$4 sm:$0xff]   ;;  %v5265_v0 = vld [vmem:[%s7422_s6 + $0x150] ss:$12 sps:$4 sm:$0xff]  }
 0x29d   :  { %v846_v10 = vadd.f32 %v845_v61, %v793_v7  ;;  %v797_v11 = vadd.f32 %v796_v9, %v546_v60  ;;  %v6108_v61 = vld [vmem:[%s7421_s0 + $0x8] sm:$0xff]   ;;  %v5273_v7 = vld [vmem:[%s7422_s6 + $0x184] ss:$12 sps:$4 sm:$0xff]   ;;  %v5279_v9 = vld [vmem:[%s7422_s6 + $0x1b4] ss:$12 sps:$4 sm:$0xff]  }
 0x29e   :  { %v6036_v12 = vmul.f32 0.999995, %v844_v4  ;;  %v848_v13 = vadd.f32 %v847_v63, %v795_v5  ;;  %v5267_v63 = vld [vmem:[%s7422_s6 + $0x154] ss:$12 sps:$4 sm:$0xff]   ;;  %v5276_v4 = vld [vmem:[%s7422_s6 + $0x19c] ss:$12 sps:$4 sm:$0xff]  }
 0x29f   :  { %v6038_v14 = vmul.f32 0.999995, %v846_v10  ;;  %v850_v15 = vadd.f32 %v849_v6, %v797_v11  ;;  %v853_v16 = vpop.f32.mrb[20].mxu0  ;;  %v5268_v6 = vld [vmem:[%s7422_s6 + $0x168] ss:$12 sps:$4 sm:$0xff]  }
 0x2a0   :  { %v6040_v17 = vmul.f32 0.999995, %v848_v13  ;;  %v855_v18 = vpop.f32.mrb[21].mxu0  ;;  %v870_v22 = vmax.f32 %v6036_v12, 0.0  ;;  %v5271_v8 = vld [vmem:[%s7422_s6 + $0x180] ss:$12 sps:$4 sm:$0xff]  }
 0x2a1   :  { %v6042_v19 = vmul.f32 0.999995, %v850_v15  ;;  %v800_v20 = vpop.f32.mrb[12].mxu1  ;;  %v857_v21 = vpop.f32.mrb[22].mxu0  ;;  %v871_v27 = vmax.f32 %v6038_v14, 0.0 }
 0x2a2   :  { %v872_v23 = vmax.f32 %v6040_v17, 0.0  ;;  %v801_v24 = vadd.f32 %v800_v20, %v542_v58  ;;  %v802_v25 = vpop.f32.mrb[13].mxu1  ;;  %v859_v26 = vpop.f32.mrb[23].mxu0  ;;  %v5274_v5 = vld [vmem:[%s7422_s6 + $0x198] ss:$12 sps:$4 sm:$0xff]  }
 0x2a3   :  { %v873_v28 = vmax.f32 %v6042_v19, 0.0  ;;  %v803_v29 = vadd.f32 %v802_v25, %v546_v60  ;;  %v804_v30 = vpop.f32.mrb[14].mxu1  ;;  %v5277_v10 = vld [vmem:[%s7422_s6 + $0x1b0] ss:$12 sps:$4 sm:$0xff]   ;;  %v5282_v11 = vld [vmem:[%s7422_s6 + $0x1cc] ss:$12 sps:$4 sm:$0xff]  }
 0x2a4   :  { %v878_v31 = vpack.c.bf16 %v872_v23, %v870_v22  ;;  %v854_v32 = vadd.f32 %v853_v16, %v801_v24  ;;  %v805_v33 = vadd.f32 %v804_v30, %v542_v58  ;;  %v806_v34 = vpop.f32.mrb[15].mxu1  ;;  %v5261_v58 = vld [vmem:[%s7422_s6 + $0x124] ss:$12 sps:$4 sm:$0xff]   ;;  %v5280_v13 = vld [vmem:[%s7422_s6 + $0x1c8] ss:$12 sps:$4 sm:$0xff]  }
 0x2a5   :  { %v856_v35 = vadd.f32 %v855_v18, %v803_v29  ;;  %v807_v36 = vadd.f32 %v806_v34, %v546_v60  ;;  %v879_v37 = vpack.c.bf16 %v873_v28, %v871_v27  ;;  %v5264_v60 = vld [vmem:[%s7422_s6 + $0x13c] ss:$12 sps:$4 sm:$0xff]   ;;  %v5295_v16 = vld [vmem:[%s7423_s8 + $0x144] ss:$8 sps:$4 sm:$0xff]   ;;  %v5296_v20 = vld [vmem:[%s7423_s8 + $0x150] ss:$8 sps:$4 sm:$0xff]  }
 0x2a6   :  { %v6056_v38 = vmul.f32 0.999995, %v854_v32  ;;  %v858_v39 = vadd.f32 %v857_v21, %v805_v33  ;;  %v5293_v15 = vld [vmem:[%s7423_s8 + $0x140] ss:$8 sps:$4 sm:$0xff]   ;;  %v5298_v18 = vld [vmem:[%s7423_s8 + $0x154] ss:$8 sps:$4 sm:$0xff]   ;;  %1573 = vmatprep.subr.bf16.mxu1 %v5295_v16 }
 0x2a7   :  { %v6058_v40 = vmul.f32 0.999995, %v856_v35  ;;  %v860_v41 = vadd.f32 %v859_v26, %v807_v36  ;;  %882 = vmatprep.subr.bf16.mxu0 %v879_v37  ;;  %1574 = vmatpush1.bf16.msra.mxu1 %v5293_v15  ;;  %v5301_v21 = vld [vmem:[%s7423_s8 + $0x164] ss:$8 sps:$4 sm:$0xff]   ;;  %v5299_v24 = vld [vmem:[%s7423_s8 + $0x160] ss:$8 sps:$4 sm:$0xff]  }
 0x2a8   :  { %v6060_v42 = vmul.f32 0.999995, %v858_v39  ;;  %883 = vmatpush1.bf16.msra.mxu0 %v878_v31  ;;  %v874_v44 = vmax.f32 %v6056_v38, 0.0  ;;  %1575 = vmatprep.subr.bf16.mxu1 %v5298_v18  ;;  %v5304_v25 = vld [vmem:[%s7423_s8 + $0x174] ss:$8 sps:$4 sm:$0xff]  }
 0x2a9   :  { %v6062_v43 = vmul.f32 0.999995, %v860_v41  ;;  %v875_v46 = vmax.f32 %v6058_v40, 0.0  ;;  %v5302_v26 = vld [vmem:[%s7423_s8 + $0x170] ss:$8 sps:$4 sm:$0xff]  }
 0x2aa   :  { %v876_v45 = vmax.f32 %v6060_v42, 0.0  ;;  %v5307_v29 = vld [vmem:[%s7423_s8 + $0x184] ss:$8 sps:$4 sm:$0xff]   ;;  %v5305_v30 = vld [vmem:[%s7423_s8 + $0x180] ss:$8 sps:$4 sm:$0xff]  }
 0x2ab   :  { %v877_v47 = vmax.f32 %v6062_v43, 0.0  ;;  %1576 = vmatpush1.bf16.msra.mxu1 %v5296_v20  ;;  %v5310_v31 = vld [vmem:[%s7423_s8 + $0x194] ss:$8 sps:$4 sm:$0xff]   ;;  %v5308_v32 = vld [vmem:[%s7423_s8 + $0x190] ss:$8 sps:$4 sm:$0xff]  }
 0x2ac   :  { %v880_v50 = vpack.c.bf16 %v876_v45, %v874_v44  ;;  %1577 = vmatprep.subr.bf16.mxu1 %v5301_v21  ;;  %v5313_v33 = vld [vmem:[%s7423_s8 + $0x1a4] ss:$8 sps:$4 sm:$0xff]   ;;  %v5311_v34 = vld [vmem:[%s7423_s8 + $0x1a0] ss:$8 sps:$4 sm:$0xff]   ;;  %v5316_v35 = vld [vmem:[%s7423_s8 + $0x1b4] ss:$8 sps:$4 sm:$0xff]  }
 0x2ad   :  { %v881_v52 = vpack.c.bf16 %v877_v47, %v875_v46  ;;  %v5314_v36 = vld [vmem:[%s7423_s8 + $0x1b0] ss:$8 sps:$4 sm:$0xff]   ;;  %v5319_v37 = vld [vmem:[%s7423_s8 + $0x1c4] ss:$8 sps:$4 sm:$0xff]   ;;  %v5317_v39 = vld [vmem:[%s7423_s8 + $0x1c0] ss:$8 sps:$4 sm:$0xff]  }
 0x2ae   :  { %v5322_v41 = vld [vmem:[%s7423_s8 + $0x1d4] ss:$8 sps:$4 sm:$0xff]   ;;  %v5283_v14 = vld [vmem:[%s7422_s6 + $0xf8] ss:$12 sps:$4 sm:$0xff]   ;;  %v5286_v43 = vld [vmem:[%s7422_s6 + $0x140] ss:$12 sps:$4 sm:$0xff]  }
 0x2af   :  { %884 = vmatprep.subr.bf16.mxu0 %v881_v52  ;;  %1578 = vmatpush1.bf16.msra.mxu1 %v5299_v24  ;;  %v5325_v52 = vld [vmem:[%s7423_s8 + $0x1e4] ss:$8 sps:$4 sm:$0xff]   ;;  %v5284_v38 = vld [vmem:[%s7422_s6 + $0x110] ss:$12 sps:$4 sm:$0xff]   ;;  %v5285_v42 = vld [vmem:[%s7422_s6 + $0x128] ss:$12 sps:$4 sm:$0xff]  }
 0x2b0   :  { %885 = vmatpush1.bf16.msra.mxu0 %v880_v50  ;;  %1579 = vmatprep.subr.bf16.mxu1 %v5304_v25  ;;  %v5320_v50 = vld [vmem:[%s7423_s8 + $0x1d0] ss:$8 sps:$4 sm:$0xff]  }
 0x2b1   :  { %1193 = vmatprep.subr.bf16.mxu0 %v5255_v53  ;;  %v5323_v53 = vld [vmem:[%s7423_s8 + $0x1e0] ss:$8 sps:$4 sm:$0xff]  }
 0x2b3   :  { %4418 = vmatmul.mubr.msk.bf16.vlgmr.msra.gmra.mrb[24].mxu0 %vm62_vm0, %v6088_v56  ;;  %1580 = vmatpush1.bf16.msra.mxu1 %v5302_v26 }
 0x2b4   :  { %924 = vmatprep.mubr.bf16.mxu0 %v5663_v2  ;;  %1194 = vmatpush1.bf16.msra.mxu0 %v5253_v54  ;;  %v5328_v54 = vld [vmem:[%s7423_s8 + $0x1f4] ss:$8 sps:$4 sm:$0xff]  }
 0x2b5   :  { %1195 = vmatprep.subr.bf16.mxu0 %v5258_v55  ;;  %1581 = vmatprep.subr.bf16.mxu1 %v5307_v29  ;;  %v5326_v55 = vld [vmem:[%s7423_s8 + $0x1f0] ss:$8 sps:$4 sm:$0xff]   ;;  %v5289_v29 = vld [vmem:[%s7422_s6 + $0x188] ss:$12 sps:$4 sm:$0xff]  }
 0x2b7   :  { %1582 = vmatpush1.bf16.msra.mxu1 %v5305_v30  ;;  %v5290_v30 = vld [vmem:[%s7422_s6 + $0x1a0] ss:$12 sps:$4 sm:$0xff]  }
 0x2b8   :  { %1196 = vmatpush1.bf16.msra.mxu0 %v5256_v57  ;;  %1583 = vmatprep.subr.bf16.mxu1 %v5310_v31  ;;  %v5331_v57 = vld [vmem:[%s7423_s8 + $0x204] ss:$8 sps:$4 sm:$0xff]  }
 0x2b9   :  { %1197 = vmatprep.subr.bf16.mxu0 %v5261_v58  ;;  %v5329_v58 = vld [vmem:[%s7423_s8 + $0x200] ss:$8 sps:$4 sm:$0xff]   ;;  %v5291_v31 = vld [vmem:[%s7422_s6 + $0x1b8] ss:$12 sps:$4 sm:$0xff]  }
 0x2bb   :  { %4419 = vmatmul.mubr.msk.bf16.gmra.mrb[28].mxu0 %vm62_vm0, %v6108_v61  ;;  %1584 = vmatpush1.bf16.msra.mxu1 %v5308_v32  ;;  %v5292_v32 = vld [vmem:[%s7422_s6 + $0x1d0] ss:$12 sps:$4 sm:$0xff]  }
 0x2bc   :  { %1198 = vmatpush1.bf16.msra.mxu0 %v5259_v59  ;;  %1585 = vmatprep.subr.bf16.mxu1 %v5313_v33  ;;  %v5334_v59 = vld [vmem:[%s7423_s8 + $0x214] ss:$8 sps:$4 sm:$0xff]   ;;  %v5337_v33 = vld [vmem:[%s7423_s8 + $0x224] ss:$8 sps:$4 sm:$0xff]  }
 0x2bd   :  { %1199 = vmatprep.subr.bf16.mxu0 %v5264_v60  ;;  %v5332_v60 = vld [vmem:[%s7423_s8 + $0x210] ss:$8 sps:$4 sm:$0xff]  }
 0x2bf   :  { %1586 = vmatpush1.bf16.msra.mxu1 %v5311_v34  ;;  %v5335_v34 = vld [vmem:[%s7423_s8 + $0x220] ss:$8 sps:$4 sm:$0xff]  }
 0x2c0   :  { %1200 = vmatpush1.bf16.msra.mxu0 %v5262_v62  ;;  %1587 = vmatprep.subr.bf16.mxu1 %v5316_v35  ;;  %v4420_v62 = vld [vmem:[%s7424_s3 + $0x2] sm:$0x3]  ;;  %v5340_v35 = vld [vmem:[%s7423_s8 + $0x234] ss:$8 sps:$4 sm:$0xff]  }
 0x2c1   :  { %1201 = vmatprep.subr.bf16.mxu0 %v5267_v63  ;;  %v941_v63 = vrot.slane %v4420_v62, %v5875_v51 }
 0x2c3   :  { %1588 = vmatpush1.bf16.msra.mxu1 %v5314_v36  ;;  %v5338_v36 = vld [vmem:[%s7423_s8 + $0x230] ss:$8 sps:$4 sm:$0xff]  }
 0x2c4   :  { %1202 = vmatpush1.bf16.msra.mxu0 %v5265_v0  ;;  %1589 = vmatprep.subr.bf16.mxu1 %v5319_v37  ;;  %v945_v0 = vrot.slane %v4420_v62, %v5869_v49  ;;  %v5343_v37 = vld [vmem:[%s7423_s8 + $0x244] ss:$8 sps:$4 sm:$0xff]  }
 0x2c5   :  { %1203 = vmatprep.subr.bf16.mxu0 %v5270_v1  ;;  %v948_v1 = vmul.f32 %v941_v63, %v870_v22  ;;  %v952_v22 = vmul.f32 %v941_v63, %v874_v44 }
 0x2c6   :  { %v953_v17 = vmul.f32 %v945_v0, %v875_v46  ;;  %v955_v24 = vmul.f32 %v945_v0, %v877_v47  ;;  %v5288_v47 = vld [vmem:[%s7422_s6 + $0x170] ss:$12 sps:$4 sm:$0xff]  }
 0x2c7   :  { %1590 = vmatpush1.bf16.msra.mxu1 %v5317_v39  ;;  %v4461_v39 = vld [vmem:[%s7425_s7 + $0x3] sm:$0x7] }
 0x2c8   :  { %1204 = vmatpush1.bf16.msra.mxu0 %v5268_v6  ;;  %1591 = vmatprep.subr.bf16.mxu1 %v5322_v41  ;;  %v1015_v41 = vrot.slane %v4461_v39, %v5875_v51 }
 0x2c9   :  { %1205 = vmatprep.subr.bf16.mxu0 %v5273_v7  ;;  %v949_v7 = vmul.f32 %v945_v0, %v871_v27 }
 0x2cb   :  { %1592 = vmatpush1.bf16.msra.mxu1 %v5320_v50  ;;  %v1019_v50 = vrot.slane %v4461_v39, %v5869_v49 }
 0x2cc   :  { %1206 = vmatpush1.bf16.msra.mxu0 %v5271_v8  ;;  %1593 = vmatprep.subr.bf16.mxu1 %v5325_v52 }
 0x2cd   :  { %1207 = vmatprep.subr.bf16.mxu0 %v5276_v4 }
 0x2cf   :  { %1594 = vmatpush1.bf16.msra.mxu1 %v5323_v53 }
 0x2d0   :  { %1208 = vmatpush1.bf16.msra.mxu0 %v5274_v5  ;;  %1595 = vmatprep.subr.bf16.mxu1 %v5328_v54  ;;  %v950_v5 = vmul.f32 %v941_v63, %v872_v23 }
 0x2d1   :  { %1209 = vmatprep.subr.bf16.mxu0 %v5279_v9 }
 0x2d3   :  { %1596 = vmatpush1.bf16.msra.mxu1 %v5326_v55 }
 0x2d4   :  { %1210 = vmatpush1.bf16.msra.mxu0 %v5277_v10  ;;  %1597 = vmatprep.subr.bf16.mxu1 %v5331_v57 }
 0x2d5   :  { %1211 = vmatprep.subr.bf16.mxu0 %v5282_v11  ;;  %v951_v11 = vmul.f32 %v945_v0, %v873_v28  ;;  %v954_v28 = vmul.f32 %v941_v63, %v876_v45  ;;  %v5287_v45 = vld [vmem:[%s7422_s6 + $0x158] ss:$12 sps:$4 sm:$0xff]  }
 0x2d7   :  { %1598 = vmatpush1.bf16.msra.mxu1 %v5329_v58 }
 0x2d8   :  { %1212 = vmatpush1.bf16.msra.mxu0 %v5280_v13  ;;  %1599 = vmatprep.subr.bf16.mxu1 %v5334_v59 }
 0x2d9   :  { %1246 = vmatprep.subr.bf16.mxu0 %v5663_v2 }
 0x2db   :  { %1600 = vmatpush1.bf16.msra.mxu1 %v5332_v60 }
 0x2dc   :  { %1601 = vmatprep.subr.bf16.mxu1 %v5337_v33 }
 0x2df   :  { %1602 = vmatpush1.bf16.msra.mxu1 %v5335_v34 }
 0x2e0   :  { %1603 = vmatprep.subr.bf16.mxu1 %v5340_v35 }
 0x2e3   :  { %1604 = vmatpush1.bf16.msra.mxu1 %v5338_v36 }
 0x2e4   :  { %1626 = vmatprep.subr.bf16.mxu1 %v5343_v37 }
 0x386   :  { %v916_v6 = vpop.f32.mrb[24].mxu0 }
 0x387   :  { %v956_v8 = vadd.f32 %v948_v1, %v916_v6  ;;  %v918_v4 = vpop.f32.mrb[25].mxu0 }
 0x388   :  { %v957_v9 = vadd.f32 %v949_v7, %v918_v4  ;;  %v920_v10 = vpop.f32.mrb[26].mxu0  ;;  %v5341_v4 = vld [vmem:[%s7423_s8 + $0x240] ss:$8 sps:$4 sm:$0xff]  }
 0x389   :  { %v958_v13 = vadd.f32 %v950_v5, %v920_v10  ;;  %v922_v15 = vpop.f32.mrb[27].mxu0  ;;  %v5346_v10 = vld [vmem:[%s7423_s8 + $0x254] ss:$8 sps:$4 sm:$0xff]  }
 0x38a   :  { %v959_v16 = vadd.f32 %v951_v11, %v922_v15 }
 0x38b   :  { %v964_v18 = vpack.c.bf16 %v958_v13, %v956_v8 }
 0x38c   :  { %v965_v12 = vpack.c.bf16 %v959_v16, %v957_v9 }
 0x38e   :  { %v926_v27 = vpop.f32.mrb[28].mxu0  ;;  %4492 = vmatprep.mubr.msk.bf16.mxu0 %vm62_vm0, %v965_v12 }
 0x38f   :  { %v960_v19 = vadd.f32 %v952_v22, %v926_v27  ;;  %v928_v23 = vpop.f32.mrb[29].mxu0  ;;  %1226 = vmatmul.mubr.bf16.vlgmr.msra.gmra.mrb[32].mxu0 %v964_v18  ;;  %v5349_v27 = vld [vmem:[%s7423_s8 + $0x264] ss:$8 sps:$4 sm:$0xff]  }
 0x390   :  { %v961_v20 = vadd.f32 %v953_v17, %v928_v23  ;;  %1247 = vmatpush1.bf16.msra.mxu0 %v5283_v14  ;;  %v930_v21 = vpop.f32.mrb[30].mxu0 }
 0x391   :  { %v962_v44 = vadd.f32 %v954_v28, %v930_v21  ;;  %v932_v25 = vpop.f32.mrb[31].mxu0  ;;  %1248 = vmatprep.subr.bf16.mxu0 %v5663_v2  ;;  %v5352_v21 = vld [vmem:[%s7423_s8 + $0x274] ss:$8 sps:$4 sm:$0xff]  }
 0x392   :  { %v963_v40 = vadd.f32 %v955_v24, %v932_v25  ;;  %v5350_v24 = vld [vmem:[%s7423_s8 + $0x270] ss:$8 sps:$4 sm:$0xff]  }
 0x393   :  { %v966_v46 = vpack.c.bf16 %v962_v44, %v960_v19 }
 0x394   :  { %v967_v26 = vpack.c.bf16 %v963_v40, %v961_v20  ;;  %1249 = vmatpush1.bf16.msra.mxu0 %v5284_v38  ;;  %v5347_v20 = vld [vmem:[%s7423_s8 + $0x260] ss:$8 sps:$4 sm:$0xff]   ;;  %v1023_v38 = vrot.slane %v4461_v39, %v6019_v3 }
 0x395   :  { %1250 = vmatprep.subr.bf16.mxu0 %v5663_v2  ;;  %v4536_v39 = vld [vmem:[%s7426_s9 + $0x2] sm:$0x3] }
 0x396   :  { %4493 = vmatprep.mubr.msk.bf16.mxu0 %vm62_vm0, %v967_v26 }
 0x397   :  { %1236 = vmatmul.mubr.bf16.gmra.mrb[36].mxu0 %v966_v46 }
 0x398   :  { %1251 = vmatpush1.bf16.msra.mxu0 %v5285_v42  ;;  %4494 = vmatprep.mubr.msk.bf16.mxu0 %vm62_vm0, %v965_v12  ;;  %v5344_v12 = vld [vmem:[%s7423_s8 + $0x250] ss:$8 sps:$4 sm:$0xff]  }
 0x399   :  { %1252 = vmatprep.subr.bf16.mxu0 %v5663_v2 }
 0x39c   :  { %1253 = vmatpush1.bf16.msra.mxu0 %v5286_v43 }
 0x39d   :  { %1254 = vmatprep.subr.bf16.mxu0 %v5663_v2 }
 0x3a0   :  { %1255 = vmatpush1.bf16.msra.mxu0 %v5287_v45 }
 0x3a1   :  { %1256 = vmatprep.subr.bf16.mxu0 %v5663_v2 }
 0x3a4   :  { %1257 = vmatpush1.bf16.msra.mxu0 %v5288_v47 }
 0x3a5   :  { %1258 = vmatprep.subr.bf16.mxu0 %v5663_v2 }
 0x3a8   :  { %1259 = vmatpush1.bf16.msra.mxu0 %v5289_v29 }
 0x3a9   :  { %1260 = vmatprep.subr.bf16.mxu0 %v5663_v2 }
 0x3ac   :  { %1261 = vmatpush1.bf16.msra.mxu0 %v5290_v30 }
 0x3ad   :  { %1262 = vmatprep.subr.bf16.mxu0 %v5663_v2 }
 0x3b0   :  { %1263 = vmatpush1.bf16.msra.mxu0 %v5291_v31 }
 0x3b1   :  { %1264 = vmatprep.subr.bf16.mxu0 %v5663_v2 }
 0x3b4   :  { %1265 = vmatpush1.bf16.msra.mxu0 %v5292_v32 }
 0x3b7   :  { %1279 = vmatmul.mubr.bf16.vlgmr.msra.gmra.mrb[40].mxu0 %v964_v18 }
 0x3b8   :  { %4495 = vmatprep.mubr.msk.bf16.mxu0 %vm62_vm0, %v967_v26 }
 0x3bf   :  { %1287 = vmatmul.mubr.bf16.gmra.mrb[44].mxu0 %v966_v46 }
 0x3c0   :  { %1753 = vmatprep.mubr.bf16.mxu0 %v5663_v2 }
 0x462   :  { %v1227_v52 = vpop.f32.mrb[32].mxu0 }
 0x463   :  { %v1228_v53 = vadd.f32 %v1227_v52, %v1015_v41  ;;  %v1229_v54 = vpop.f32.mrb[33].mxu0  ;;  %v1364_v52 = vrot.slane %v4536_v39, %v5869_v49 }
 0x464   :  { %v1230_v55 = vadd.f32 %v1229_v54, %v1019_v50  ;;  %v1231_v57 = vpop.f32.mrb[34].mxu0 }
 0x465   :  { %v1232_v58 = vadd.f32 %v1231_v57, %v1015_v41  ;;  %v1233_v59 = vpop.f32.mrb[35].mxu0  ;;  %v1295_v62 = vmax.f32 %v1228_v53, 0.0 }
 0x466   :  { %v1234_v60 = vadd.f32 %v1233_v59, %v1019_v50  ;;  %v1296_v0 = vmax.f32 %v1230_v55, 0.0 }
 0x467   :  { %v1298_v63 = vmax.f32 %v1232_v58, 0.0 }
 0x468   :  { %v1299_v1 = vmax.f32 %v1234_v60, 0.0 }
 0x469   :  { %v1307_v6 = vpack.c.bf16 %v1298_v63, %v1295_v62 }
 0x46a   :  { %v1308_v7 = vpack.c.bf16 %v1299_v1, %v1296_v0  ;;  %v1237_v8 = vpop.f32.mrb[36].mxu0 }
 0x46b   :  { %v1238_v5 = vadd.f32 %v1237_v8, %v1015_v41  ;;  %v1239_v9 = vpop.f32.mrb[37].mxu0 }
 0x46c   :  { %v1240_v11 = vadd.f32 %v1239_v9, %v1019_v50  ;;  %v1241_v13 = vpop.f32.mrb[38].mxu0  ;;  %1605 = vmatprep.mubr.bf16.mxu1 %v1308_v7 }
 0x46d   :  { %v1242_v15 = vadd.f32 %v1241_v13, %v1015_v41  ;;  %v1243_v16 = vpop.f32.mrb[39].mxu0  ;;  %1606 = vmatmul.mubr.bf16.vlgmr.msra.gmra.mrb[16].mxu1 %v1307_v6  ;;  %v1301_v14 = vmax.f32 %v1238_v5, 0.0  ;;  %v4579_v41 = vld [vmem:[%s7427_s4 + $0x2] sm:$0x3] }
 0x46e   :  { %v1244_v18 = vadd.f32 %v1243_v16, %v1019_v50  ;;  %1627 = vmatpush1.bf16.msra.mxu1 %v5341_v4  ;;  %v1302_v17 = vmax.f32 %v1240_v11, 0.0  ;;  %v1360_v50 = vrot.slane %v4536_v39, %v5875_v51  ;;  %vm1689_vm2 = vcmp.gt.f32.partialorder %v4579_v41, 0.0  ;;  %v5361_v39 = vld [vmem:[%s7422_s6 + $0x214] ss:$12 sps:$4 sm:$0xff]   ;;  %v5359_v41 = vld [vmem:[%s7422_s6 + $0x210] ss:$12 sps:$4 sm:$0xff]  }
 0x46f   :  { %v1304_v22 = vmax.f32 %v1242_v15, 0.0  ;;  %1628 = vmatprep.subr.bf16.mxu1 %v5346_v10  ;;  %v1698_v54 = vsel %vm1689_vm2, 1, %v5663_v2  ;;  %v5402_v10 = vld [vmem:[%s7423_s8 + $0x2b0] ss:$8 sps:$4 sm:$0xff]   ;;  %v5405_v13 = vld [vmem:[%s7423_s8 + $0x2c0] ss:$8 sps:$4 sm:$0xff]  }
 0x470   :  { %v1305_v19 = vmax.f32 %v1244_v18, 0.0  ;;  %v1706_v62 = vrot.slane %v1698_v54, %v5869_v49  ;;  %v1702_v1 = vrot.slane %v1698_v54, %v5875_v51  ;;  %v5368_v54 = vld [vmem:[%s7422_s6 + $0x258] ss:$12 sps:$4 sm:$0xff]  }
 0x471   :  { %v1310_v23 = vpack.c.bf16 %v1304_v22, %v1301_v14 }
 0x472   :  { %v1311_v28 = vpack.c.bf16 %v1305_v19, %v1302_v17  ;;  %1629 = vmatpush1.bf16.msra.mxu1 %v5344_v12  ;;  %vm6358_vm3 = vcmp.eq.s32.totalorder %v1706_v62, 1  ;;  %vm6362_vm4 = vcmp.eq.s32.totalorder %v1702_v1, 1  ;;  %v5377_v62 = vld [vmem:[%s7422_s6 + $0x2a0] ss:$12 sps:$4 sm:$0xff]  }
 0x473   :  { %1630 = vmatprep.subr.bf16.mxu1 %v5349_v27  ;;  %v5393_v1 = vld [vmem:[%s7423_s8 + $0x280] ss:$8 sps:$4 sm:$0xff]  }
 0x474   :  { %1615 = vmatprep.mubr.bf16.mxu1 %v1311_v28 }
 0x475   :  { %1616 = vmatmul.mubr.bf16.gmra.mrb[20].mxu1 %v1310_v23 }
 0x476   :  { %1631 = vmatpush1.bf16.msra.mxu1 %v5347_v20  ;;  %1658 = vmatprep.mubr.bf16.mxu1 %v5663_v2 }
 0x477   :  { %1632 = vmatprep.subr.bf16.mxu1 %v5352_v21 }
 0x47a   :  { %1633 = vmatpush1.bf16.msra.mxu1 %v5350_v24 }
 0x48a   :  { %v1280_v44 = vpop.f32.mrb[40].mxu0 }
 0x48b   :  { %v1281_v25 = vadd.f32 %v1280_v44, %v1023_v38  ;;  %v1282_v40 = vpop.f32.mrb[41].mxu0 }
 0x48c   :  { %v1283_v46 = vpop.f32.mrb[42].mxu0 }
 0x48d   :  { %v1284_v26 = vadd.f32 %v1283_v46, %v1023_v38  ;;  %v1285_v42 = vpop.f32.mrb[43].mxu0  ;;  %v1297_v43 = vmax.f32 %v1281_v25, 0.0 }
 0x48f   :  { %v1300_v45 = vmax.f32 %v1284_v26, 0.0 }
 0x491   :  { %v1309_v47 = vpack.c.bf16 %v1300_v45, %v1297_v43 }
 0x492   :  { %v1288_v29 = vpop.f32.mrb[44].mxu0 }
 0x493   :  { %v1289_v30 = vadd.f32 %v1288_v29, %v1023_v38  ;;  %v1290_v31 = vpop.f32.mrb[45].mxu0  ;;  %4577 = vmatmul.mubr.msk.bf16.vlgmr.msra.gmra.mrb[16].mxu1 %vm749_vm1, %v1309_v47 }
 0x494   :  { %v1291_v32 = vpop.f32.mrb[46].mxu0  ;;  %1668 = vmatprep.mubr.bf16.mxu1 %v5663_v2 }
 0x495   :  { %v1292_v33 = vadd.f32 %v1291_v32, %v1023_v38  ;;  %v1293_v34 = vpop.f32.mrb[47].mxu0  ;;  %v1303_v35 = vmax.f32 %v1289_v30, 0.0 }
 0x497   :  { %v1306_v36 = vmax.f32 %v1292_v33, 0.0  ;;  %v5355_v33 = vld [vmem:[%s7422_s6 + $0x1e4] ss:$12 sps:$4 sm:$0xff]  }
 0x499   :  { %v1312_v37 = vpack.c.bf16 %v1306_v36, %v1303_v35  ;;  %v5353_v35 = vld [vmem:[%s7422_s6 + $0x1e0] ss:$12 sps:$4 sm:$0xff]   ;;  %v5358_v36 = vld [vmem:[%s7422_s6 + $0x1fc] ss:$12 sps:$4 sm:$0xff]  }
 0x49b   :  { %4578 = vmatmul.mubr.msk.bf16.gmra.mrb[20].mxu1 %vm749_vm1, %v1312_v37  ;;  %v5356_v37 = vld [vmem:[%s7422_s6 + $0x1f8] ss:$12 sps:$4 sm:$0xff]  }
 0x566   :  { %v1660_v53 = vpop.f32.mrb[16].mxu1 }
 0x567   :  { %v5085_v55 = vadd.f32 %v1660_v53, %v1360_v50  ;;  %v1662_v57 = vpop.f32.mrb[17].mxu1  ;;  %v5365_v53 = vld [vmem:[%s7422_s6 + $0x240] ss:$12 sps:$4 sm:$0xff]  }
 0x568   :  { %v5086_v58 = vadd.f32 %v1662_v57, %v1364_v52  ;;  %v1664_v59 = vpop.f32.mrb[18].mxu1  ;;  %v5371_v57 = vld [vmem:[%s7422_s6 + $0x270] ss:$12 sps:$4 sm:$0xff]  }
 0x569   :  { %v1679_v60 = vmul.f32 0.999995, %v5085_v55  ;;  %v5087_v63 = vadd.f32 %v1664_v59, %v1360_v50  ;;  %v1666_v0 = vpop.f32.mrb[19].mxu1  ;;  %v5373_v55 = vld [vmem:[%s7422_s6 + $0x274] ss:$12 sps:$4 sm:$0xff]  }
 0x56a   :  { %v1680_v6 = vmul.f32 0.999995, %v5086_v58  ;;  %v5088_v7 = vadd.f32 %v1666_v0, %v1364_v52  ;;  %v5376_v58 = vld [vmem:[%s7422_s6 + $0x28c] ss:$12 sps:$4 sm:$0xff]   ;;  %v5374_v59 = vld [vmem:[%s7422_s6 + $0x288] ss:$12 sps:$4 sm:$0xff]  }
 0x56b   :  { %v1681_v8 = vmul.f32 0.999995, %v5087_v63  ;;  %v1690_v9 = vmax.f32 %v1679_v60, 0.0  ;;  %v5382_v63 = vld [vmem:[%s7422_s6 + $0x2bc] ss:$12 sps:$4 sm:$0xff]  }
 0x56c   :  { %v1691_v4 = vmax.f32 %v1680_v6, 0.0  ;;  %v1682_v5 = vmul.f32 0.999995, %v5088_v7  ;;  %v5380_v0 = vld [vmem:[%s7422_s6 + $0x2b8] ss:$12 sps:$4 sm:$0xff]  }
 0x56d   :  { %v1692_v11 = vmax.f32 %v1681_v8, 0.0  ;;  %v6380_v23 = vsel %vm6362_vm4, %v1690_v9, %v1679_v60  ;;  %v5379_v60 = vld [vmem:[%s7422_s6 + $0x2a4] ss:$12 sps:$4 sm:$0xff]   ;;  %v5398_v7 = vld [vmem:[%s7423_s8 + $0x294] ss:$8 sps:$4 sm:$0xff]  }
 0x56e   :  { %v1693_v15 = vmax.f32 %v1682_v5, 0.0  ;;  %v1670_v16 = vpop.f32.mrb[20].mxu1  ;;  %v6372_v22 = vsel %vm6358_vm3, %v1691_v4, %v1680_v6  ;;  %v5395_v6 = vld [vmem:[%s7423_s8 + $0x284] ss:$8 sps:$4 sm:$0xff]   ;;  %v5404_v9 = vld [vmem:[%s7423_s8 + $0x2b4] ss:$8 sps:$4 sm:$0xff]  }
 0x56f   :  { %v6368_v18 = vsel %vm6362_vm4, %v1692_v11, %v1681_v8  ;;  %v5089_v12 = vadd.f32 %v1670_v16, %v1360_v50  ;;  %v1672_v14 = vpop.f32.mrb[21].mxu1  ;;  %2412 = vmatprep.subr.bf16.mxu1 %v5395_v6  ;;  %v5396_v8 = vld [vmem:[%s7423_s8 + $0x290] ss:$8 sps:$4 sm:$0xff]   ;;  %v5401_v4 = vld [vmem:[%s7423_s8 + $0x2a4] ss:$8 sps:$4 sm:$0xff]  }
 0x570   :  { %v6376_v27 = vsel %vm6358_vm3, %v1693_v15, %v1682_v5  ;;  %v5090_v17 = vadd.f32 %v1672_v14, %v1364_v52  ;;  %v1674_v19 = vpop.f32.mrb[22].mxu1  ;;  %v1717_v25 = vpack.c.bf16 %v6368_v18, %v6380_v23  ;;  %2413 = vmatpush1.bf16.msra.mxu1 %v5393_v1  ;;  %v5399_v5 = vld [vmem:[%s7423_s8 + $0x2a0] ss:$8 sps:$4 sm:$0xff]   ;;  %v5407_v11 = vld [vmem:[%s7423_s8 + $0x2c4] ss:$8 sps:$4 sm:$0xff]  }
 0x571   :  { %v1683_v28 = vmul.f32 0.999995, %v5089_v12  ;;  %v5091_v20 = vadd.f32 %v1674_v19, %v1360_v50  ;;  %v1676_v21 = vpop.f32.mrb[23].mxu1  ;;  %v1718_v24 = vpack.c.bf16 %v6376_v27, %v6372_v22  ;;  %v5362_v50 = vld [vmem:[%s7422_s6 + $0x228] ss:$12 sps:$4 sm:$0xff]   ;;  %2414 = vmatprep.subr.bf16.mxu1 %v5398_v7 }
 0x572   :  { %v1684_v38 = vmul.f32 0.999995, %v5090_v17  ;;  %v5092_v44 = vadd.f32 %v1676_v21, %v1364_v52  ;;  %v5367_v52 = vld [vmem:[%s7422_s6 + $0x244] ss:$12 sps:$4 sm:$0xff]   ;;  %v5410_v15 = vld [vmem:[%s7423_s8 + $0x2d4] ss:$8 sps:$4 sm:$0xff]  }
 0x573   :  { %v1685_v40 = vmul.f32 0.999995, %v5091_v20  ;;  %1721 = vmatprep.subr.bf16.mxu0 %v1718_v24  ;;  %v1694_v42 = vmax.f32 %v1683_v28, 0.0  ;;  %v5408_v16 = vld [vmem:[%s7423_s8 + $0x2d0] ss:$8 sps:$4 sm:$0xff]  }
 0x574   :  { %v1695_v46 = vmax.f32 %v1684_v38, 0.0  ;;  %v1686_v26 = vmul.f32 0.999995, %v5092_v44  ;;  %1722 = vmatpush1.bf16.msra.mxu0 %v1717_v25  ;;  %2415 = vmatpush1.bf16.msra.mxu1 %v5396_v8  ;;  %v5413_v12 = vld [vmem:[%s7423_s8 + $0x2e4] ss:$8 sps:$4 sm:$0xff]  }
 0x575   :  { %v1696_v43 = vmax.f32 %v1685_v40, 0.0  ;;  %v6400_v31 = vsel %vm6362_vm4, %v1694_v42, %v1683_v28  ;;  %2416 = vmatprep.subr.bf16.mxu1 %v5401_v4  ;;  %v5411_v14 = vld [vmem:[%s7423_s8 + $0x2e0] ss:$8 sps:$4 sm:$0xff]   ;;  %v5416_v17 = vld [vmem:[%s7423_s8 + $0x2f4] ss:$8 sps:$4 sm:$0xff]  }
 0x576   :  { %v1697_v45 = vmax.f32 %v1686_v26, 0.0  ;;  %v6392_v29 = vsel %vm6358_vm3, %v1695_v46, %v1684_v38  ;;  %v5414_v19 = vld [vmem:[%s7423_s8 + $0x2f0] ss:$8 sps:$4 sm:$0xff]   ;;  %v5419_v28 = vld [vmem:[%s7423_s8 + $0x304] ss:$8 sps:$4 sm:$0xff]  }
 0x577   :  { %v6388_v47 = vsel %vm6362_vm4, %v1696_v43, %v1685_v40  ;;  %v5417_v20 = vld [vmem:[%s7423_s8 + $0x300] ss:$8 sps:$4 sm:$0xff]   ;;  %v5422_v21 = vld [vmem:[%s7423_s8 + $0x314] ss:$8 sps:$4 sm:$0xff]   ;;  %v5420_v24 = vld [vmem:[%s7423_s8 + $0x310] ss:$8 sps:$4 sm:$0xff]  }
 0x578   :  { %v6396_v30 = vsel %vm6358_vm3, %v1697_v45, %v1686_v26  ;;  %v1719_v34 = vpack.c.bf16 %v6388_v47, %v6400_v31  ;;  %2417 = vmatpush1.bf16.msra.mxu1 %v5399_v5  ;;  %v5425_v38 = vld [vmem:[%s7423_s8 + $0x324] ss:$8 sps:$4 sm:$0xff]   ;;  %v5423_v44 = vld [vmem:[%s7423_s8 + $0x320] ss:$8 sps:$4 sm:$0xff]   ;;  %v5428_v25 = vld [vmem:[%s7423_s8 + $0x334] ss:$8 sps:$4 sm:$0xff]  }
 0x579   :  { %v1720_v32 = vpack.c.bf16 %v6396_v30, %v6392_v29  ;;  %2418 = vmatprep.subr.bf16.mxu1 %v5404_v9  ;;  %v5426_v40 = vld [vmem:[%s7423_s8 + $0x330] ss:$8 sps:$4 sm:$0xff]   ;;  %v5431_v46 = vld [vmem:[%s7423_s8 + $0x344] ss:$8 sps:$4 sm:$0xff]   ;;  %v5429_v26 = vld [vmem:[%s7423_s8 + $0x340] ss:$8 sps:$4 sm:$0xff]  }
 0x57a   :  { %v5434_v42 = vld [vmem:[%s7423_s8 + $0x354] ss:$8 sps:$4 sm:$0xff]   ;;  %v5432_v43 = vld [vmem:[%s7423_s8 + $0x350] ss:$8 sps:$4 sm:$0xff]   ;;  %v4582_v45 = vld [vmem:[%s7424_s3 + $0x4] sm:$0x3] }
 0x57b   :  { %1723 = vmatprep.subr.bf16.mxu0 %v1720_v32  ;;  %v1780_v32 = vrot.slane %v4582_v45, %v5875_v51  ;;  %v5384_v7 = vld [vmem:[%s7422_s6 + $0x200] ss:$12 sps:$4 sm:$0xff]  }
 0x57c   :  { %1724 = vmatpush1.bf16.msra.mxu0 %v1719_v34  ;;  %2419 = vmatpush1.bf16.msra.mxu1 %v5402_v10 }
 0x57d   :  { %2032 = vmatprep.subr.bf16.mxu0 %v5355_v33  ;;  %2420 = vmatprep.subr.bf16.mxu1 %v5407_v11  ;;  %v1784_v33 = vrot.slane %v4582_v45, %v5869_v49 }
 0x57f   :  { %4580 = vmatmul.mubr.msk.bf16.vlgmr.msra.gmra.mrb[48].mxu0 %vm62_vm0, %v6088_v56  ;;  %v5364_v56 = vld [vmem:[%s7422_s6 + $0x22c] ss:$12 sps:$4 sm:$0xff]   ;;  %v1794_v6 = vmul.f32 %v1784_v33, %v6396_v30 }
 0x580   :  { %1763 = vmatprep.mubr.bf16.mxu0 %v5663_v2  ;;  %2033 = vmatpush1.bf16.msra.mxu0 %v5353_v35  ;;  %v1787_v35 = vmul.f32 %v1780_v32, %v6380_v23 }
 0x581   :  { %2034 = vmatprep.subr.bf16.mxu0 %v5358_v36  ;;  %2421 = vmatpush1.bf16.msra.mxu1 %v5405_v13 }
 0x582   :  { %2422 = vmatprep.subr.bf16.mxu1 %v5410_v15  ;;  %v5385_v15 = vld [vmem:[%s7422_s6 + $0x218] ss:$12 sps:$4 sm:$0xff]  }
 0x584   :  { %2035 = vmatpush1.bf16.msra.mxu0 %v5356_v37  ;;  %v1789_v37 = vmul.f32 %v1780_v32, %v6368_v18 }
 0x585   :  { %2036 = vmatprep.subr.bf16.mxu0 %v5361_v39  ;;  %2423 = vmatpush1.bf16.msra.mxu1 %v5408_v16  ;;  %v1788_v39 = vmul.f32 %v1784_v33, %v6372_v22  ;;  %v5386_v16 = vld [vmem:[%s7422_s6 + $0x230] ss:$12 sps:$4 sm:$0xff]  }
 0x586   :  { %2424 = vmatprep.subr.bf16.mxu1 %v5413_v12  ;;  %v5387_v12 = vld [vmem:[%s7422_s6 + $0x248] ss:$12 sps:$4 sm:$0xff]  }
 0x587   :  { %4581 = vmatmul.mubr.msk.bf16.gmra.mrb[52].mxu0 %vm62_vm0, %v6108_v61  ;;  %v5370_v61 = vld [vmem:[%s7422_s6 + $0x25c] ss:$12 sps:$4 sm:$0xff]  }
 0x588   :  { %2037 = vmatpush1.bf16.msra.mxu0 %v5359_v41 }
 0x589   :  { %2038 = vmatprep.subr.bf16.mxu0 %v5364_v56  ;;  %2425 = vmatpush1.bf16.msra.mxu1 %v5411_v14  ;;  %v1790_v56 = vmul.f32 %v1784_v33, %v6376_v27  ;;  %v5388_v14 = vld [vmem:[%s7422_s6 + $0x260] ss:$12 sps:$4 sm:$0xff]  }
 0x58a   :  { %2426 = vmatprep.subr.bf16.mxu1 %v5416_v17  ;;  %v5389_v17 = vld [vmem:[%s7422_s6 + $0x278] ss:$12 sps:$4 sm:$0xff]  }
 0x58c   :  { %2039 = vmatpush1.bf16.msra.mxu0 %v5362_v50 }
 0x58d   :  { %2040 = vmatprep.subr.bf16.mxu0 %v5367_v52  ;;  %2427 = vmatpush1.bf16.msra.mxu1 %v5414_v19  ;;  %v5390_v19 = vld [vmem:[%s7422_s6 + $0x290] ss:$12 sps:$4 sm:$0xff]  }
 0x58e   :  { %2428 = vmatprep.subr.bf16.mxu1 %v5419_v28  ;;  %v5391_v28 = vld [vmem:[%s7422_s6 + $0x2a8] ss:$12 sps:$4 sm:$0xff]  }
 0x590   :  { %2041 = vmatpush1.bf16.msra.mxu0 %v5365_v53 }
 0x591   :  { %2042 = vmatprep.subr.bf16.mxu0 %v5370_v61  ;;  %2429 = vmatpush1.bf16.msra.mxu1 %v5417_v20  ;;  %v5392_v20 = vld [vmem:[%s7422_s6 + $0x2c0] ss:$12 sps:$4 sm:$0xff]  }
 0x592   :  { %2430 = vmatprep.subr.bf16.mxu1 %v5422_v21  ;;  %v5437_v21 = vld [vmem:[%s7423_s8 + $0x364] ss:$8 sps:$4 sm:$0xff]  }
 0x594   :  { %2043 = vmatpush1.bf16.msra.mxu0 %v5368_v54 }
 0x595   :  { %2044 = vmatprep.subr.bf16.mxu0 %v5373_v55  ;;  %2431 = vmatpush1.bf16.msra.mxu1 %v5420_v24  ;;  %v5435_v24 = vld [vmem:[%s7423_s8 + $0x360] ss:$8 sps:$4 sm:$0xff]  }
 0x596   :  { %2432 = vmatprep.subr.bf16.mxu1 %v5425_v38  ;;  %v5440_v38 = vld [vmem:[%s7423_s8 + $0x374] ss:$8 sps:$4 sm:$0xff]  }
 0x598   :  { %2045 = vmatpush1.bf16.msra.mxu0 %v5371_v57 }
 0x599   :  { %2046 = vmatprep.subr.bf16.mxu0 %v5376_v58  ;;  %2433 = vmatpush1.bf16.msra.mxu1 %v5423_v44  ;;  %v5383_v58 = vld [vmem:[%s7422_s6 + $0x1e8] ss:$12 sps:$4 sm:$0xff]   ;;  %v5438_v44 = vld [vmem:[%s7423_s8 + $0x370] ss:$8 sps:$4 sm:$0xff]  }
 0x59a   :  { %2434 = vmatprep.subr.bf16.mxu1 %v5428_v25  ;;  %v5443_v25 = vld [vmem:[%s7423_s8 + $0x384] ss:$8 sps:$4 sm:$0xff]  }
 0x59c   :  { %2047 = vmatpush1.bf16.msra.mxu0 %v5374_v59 }
 0x59d   :  { %2048 = vmatprep.subr.bf16.mxu0 %v5379_v60  ;;  %2435 = vmatpush1.bf16.msra.mxu1 %v5426_v40  ;;  %v1791_v60 = vmul.f32 %v1780_v32, %v6400_v31  ;;  %v4623_v40 = vld [vmem:[%s7425_s7 + $0x6] sm:$0x7] }
 0x59e   :  { %2436 = vmatprep.subr.bf16.mxu1 %v5431_v46  ;;  %v1854_v46 = vrot.slane %v4623_v40, %v5875_v51 }
 0x5a0   :  { %2049 = vmatpush1.bf16.msra.mxu0 %v5377_v62 }
 0x5a1   :  { %2050 = vmatprep.subr.bf16.mxu0 %v5382_v63  ;;  %2437 = vmatpush1.bf16.msra.mxu1 %v5429_v26  ;;  %v1793_v63 = vmul.f32 %v1780_v32, %v6388_v47  ;;  %v1858_v26 = vrot.slane %v4623_v40, %v5869_v49 }
 0x5a2   :  { %2438 = vmatprep.subr.bf16.mxu1 %v5434_v42 }
 0x5a4   :  { %2051 = vmatpush1.bf16.msra.mxu0 %v5380_v0  ;;  %v1792_v0 = vmul.f32 %v1784_v33, %v6392_v29 }
 0x5a5   :  { %2085 = vmatprep.subr.bf16.mxu0 %v5663_v2  ;;  %2439 = vmatpush1.bf16.msra.mxu1 %v5432_v43 }
 0x5a6   :  { %2440 = vmatprep.subr.bf16.mxu1 %v5437_v21 }
 0x5a9   :  { %2441 = vmatpush1.bf16.msra.mxu1 %v5435_v24 }
 0x5aa   :  { %2442 = vmatprep.subr.bf16.mxu1 %v5440_v38 }
 0x5ad   :  { %2443 = vmatpush1.bf16.msra.mxu1 %v5438_v44 }
 0x5ae   :  { %2465 = vmatprep.subr.bf16.mxu1 %v5443_v25 }
 0x652   :  { %v1755_v34 = vpop.f32.mrb[48].mxu0 }
 0x653   :  { %v1757_v36 = vpop.f32.mrb[49].mxu0  ;;  %v1795_v50 = vadd.f32 %v1787_v35, %v1755_v34 }
 0x654   :  { %v1759_v41 = vpop.f32.mrb[50].mxu0  ;;  %v1796_v61 = vadd.f32 %v1788_v39, %v1757_v36 }
 0x655   :  { %v1797_v52 = vadd.f32 %v1789_v37, %v1759_v41  ;;  %v1761_v53 = vpop.f32.mrb[51].mxu0 }
 0x656   :  { %v1798_v54 = vadd.f32 %v1790_v56, %v1761_v53 }
 0x657   :  { %v1803_v55 = vpack.c.bf16 %v1797_v52, %v1795_v50 }
 0x658   :  { %v1804_v57 = vpack.c.bf16 %v1798_v54, %v1796_v61  ;;  %v5441_v61 = vld [vmem:[%s7423_s8 + $0x380] ss:$8 sps:$4 sm:$0xff]  }
 0x65a   :  { %v1765_v59 = vpop.f32.mrb[52].mxu0  ;;  %4654 = vmatprep.mubr.msk.bf16.mxu0 %vm62_vm0, %v1804_v57 }
 0x65b   :  { %v1767_v62 = vpop.f32.mrb[53].mxu0  ;;  %2065 = vmatmul.mubr.bf16.vlgmr.msra.gmra.mrb[56].mxu0 %v1803_v55  ;;  %v1799_v8 = vadd.f32 %v1791_v60, %v1765_v59 }
 0x65c   :  { %2086 = vmatpush1.bf16.msra.mxu0 %v5383_v58  ;;  %v1769_v1 = vpop.f32.mrb[54].mxu0  ;;  %v1800_v9 = vadd.f32 %v1792_v0, %v1767_v62  ;;  %v5444_v0 = vld [vmem:[%s7423_s8 + $0x390] ss:$8 sps:$4 sm:$0xff]  }
 0x65d   :  { %v1801_v4 = vadd.f32 %v1793_v63, %v1769_v1  ;;  %v1771_v5 = vpop.f32.mrb[55].mxu0  ;;  %2087 = vmatprep.subr.bf16.mxu0 %v5663_v2 }
 0x65e   :  { %v1802_v10 = vadd.f32 %v1794_v6, %v1771_v5 }
 0x65f   :  { %v1805_v11 = vpack.c.bf16 %v1801_v4, %v1799_v8 }
 0x660   :  { %v1806_v13 = vpack.c.bf16 %v1802_v10, %v1800_v9  ;;  %2088 = vmatpush1.bf16.msra.mxu0 %v5384_v7  ;;  %v5449_v7 = vld [vmem:[%s7423_s8 + $0x3a4] ss:$8 sps:$4 sm:$0xff]   ;;  %v5447_v10 = vld [vmem:[%s7423_s8 + $0x3a0] ss:$8 sps:$4 sm:$0xff]  }
 0x661   :  { %2089 = vmatprep.subr.bf16.mxu0 %v5663_v2 }
 0x662   :  { %4655 = vmatprep.mubr.msk.bf16.mxu0 %vm62_vm0, %v1806_v13 }
 0x663   :  { %2075 = vmatmul.mubr.bf16.gmra.mrb[60].mxu0 %v1805_v11 }
 0x664   :  { %2090 = vmatpush1.bf16.msra.mxu0 %v5385_v15  ;;  %4656 = vmatprep.mubr.msk.bf16.mxu0 %vm62_vm0, %v1804_v57  ;;  %v5446_v57 = vld [vmem:[%s7423_s8 + $0x394] ss:$8 sps:$4 sm:$0xff]   ;;  %v1862_v15 = vrot.slane %v4623_v40, %v6019_v3 }
 0x665   :  { %2091 = vmatprep.subr.bf16.mxu0 %v5663_v2 }
 0x668   :  { %2092 = vmatpush1.bf16.msra.mxu0 %v5386_v16 }
 0x669   :  { %2093 = vmatprep.subr.bf16.mxu0 %v5663_v2 }
 0x66c   :  { %2094 = vmatpush1.bf16.msra.mxu0 %v5387_v12 }
 0x66d   :  { %2095 = vmatprep.subr.bf16.mxu0 %v5663_v2 }
 0x670   :  { %2096 = vmatpush1.bf16.msra.mxu0 %v5388_v14 }
 0x671   :  { %2097 = vmatprep.subr.bf16.mxu0 %v5663_v2 }
 0x674   :  { %2098 = vmatpush1.bf16.msra.mxu0 %v5389_v17 }
 0x675   :  { %2099 = vmatprep.subr.bf16.mxu0 %v5663_v2 }
 0x678   :  { %2100 = vmatpush1.bf16.msra.mxu0 %v5390_v19 }
 0x679   :  { %2101 = vmatprep.subr.bf16.mxu0 %v5663_v2 }
 0x67c   :  { %2102 = vmatpush1.bf16.msra.mxu0 %v5391_v28 }
 0x67d   :  { %2103 = vmatprep.subr.bf16.mxu0 %v5663_v2 }
 0x680   :  { %2104 = vmatpush1.bf16.msra.mxu0 %v5392_v20 }
 0x683   :  { %2118 = vmatmul.mubr.bf16.vlgmr.msra.gmra.mrb[64].mxu0 %v1803_v55 }
 0x684   :  { %4657 = vmatprep.mubr.msk.bf16.mxu0 %vm62_vm0, %v1806_v13  ;;  %v5450_v13 = vld [vmem:[%s7423_s8 + $0x3b0] ss:$8 sps:$4 sm:$0xff]  }
 0x68b   :  { %2126 = vmatmul.mubr.bf16.gmra.mrb[68].mxu0 %v1805_v11  ;;  %v5452_v11 = vld [vmem:[%s7423_s8 + $0x3b4] ss:$8 sps:$4 sm:$0xff]  }
 0x68c   :  { %2614 = vmatprep.mubr.bf16.mxu0 %v5663_v2 }
 0x72e   :  { %v2066_v42 = vpop.f32.mrb[56].mxu0 }
 0x72f   :  { %v2067_v43 = vadd.f32 %v2066_v42, %v1854_v46  ;;  %v2068_v45 = vpop.f32.mrb[57].mxu0 }
 0x730   :  { %v2069_v32 = vadd.f32 %v2068_v45, %v1858_v26  ;;  %v2070_v33 = vpop.f32.mrb[58].mxu0 }
 0x731   :  { %v2071_v34 = vadd.f32 %v2070_v33, %v1854_v46  ;;  %v2072_v35 = vpop.f32.mrb[59].mxu0  ;;  %v2134_v37 = vmax.f32 %v2067_v43, 0.0  ;;  %v5460_v33 = vld [vmem:[%s7422_s6 + $0x2f0] ss:$12 sps:$4 sm:$0xff]  }
 0x732   :  { %v2073_v36 = vadd.f32 %v2072_v35, %v1858_v26  ;;  %v2135_v41 = vmax.f32 %v2069_v32, 0.0  ;;  %v5456_v32 = vld [vmem:[%s7422_s6 + $0x2d8] ss:$12 sps:$4 sm:$0xff]   ;;  %v5468_v35 = vld [vmem:[%s7422_s6 + $0x320] ss:$12 sps:$4 sm:$0xff]  }
 0x733   :  { %v2137_v39 = vmax.f32 %v2071_v34, 0.0  ;;  %v5464_v34 = vld [vmem:[%s7422_s6 + $0x308] ss:$12 sps:$4 sm:$0xff]  }
 0x734   :  { %v2138_v56 = vmax.f32 %v2073_v36, 0.0  ;;  %v5472_v36 = vld [vmem:[%s7422_s6 + $0x338] ss:$12 sps:$4 sm:$0xff]  }
 0x735   :  { %v2146_v50 = vpack.c.bf16 %v2137_v39, %v2134_v37  ;;  %v5476_v37 = vld [vmem:[%s7422_s6 + $0x350] ss:$12 sps:$4 sm:$0xff]   ;;  %v5480_v39 = vld [vmem:[%s7422_s6 + $0x368] ss:$12 sps:$4 sm:$0xff]  }
 0x736   :  { %v2147_v52 = vpack.c.bf16 %v2138_v56, %v2135_v41  ;;  %v2076_v53 = vpop.f32.mrb[60].mxu0  ;;  %v5484_v41 = vld [vmem:[%s7422_s6 + $0x380] ss:$12 sps:$4 sm:$0xff]   ;;  %v4741_v56 = vld [vmem:[%s7427_s4 + $0x4] sm:$0x3] }
 0x737   :  { %v2077_v54 = vadd.f32 %v2076_v53, %v1854_v46  ;;  %v2078_v55 = vpop.f32.mrb[61].mxu0  ;;  %vm2528_vm5 = vcmp.gt.f32.partialorder %v4741_v56, 0.0 }
 0x738   :  { %v2079_v58 = vadd.f32 %v2078_v55, %v1858_v26  ;;  %v2080_v59 = vpop.f32.mrb[62].mxu0  ;;  %2444 = vmatprep.mubr.bf16.mxu1 %v2147_v52  ;;  %v4742_v52 = vld [vmem:[%s7428_s5 + $0x4] sm:$0x3] }
 0x739   :  { %v2081_v60 = vadd.f32 %v2080_v59, %v1854_v46  ;;  %v2082_v62 = vpop.f32.mrb[63].mxu0  ;;  %2445 = vmatmul.mubr.bf16.vlgmr.msra.gmra.mrb[24].mxu1 %v2146_v50  ;;  %v2140_v1 = vmax.f32 %v2077_v54, 0.0  ;;  %v4698_v50 = vld [vmem:[%s7426_s9 + $0x4] sm:$0x3]  ;;  %vm2558_vm6 = vcmp.gt.f32.partialorder %v4742_v52, 0.0 }
 0x73a   :  { %v2083_v63 = vadd.f32 %v2082_v62, %v1858_v26  ;;  %2466 = vmatpush1.bf16.msra.mxu1 %v5441_v61  ;;  %v2141_v8 = vmax.f32 %v2079_v58, 0.0  ;;  %v2199_v53 = vrot.slane %v4698_v50, %v5875_v51  ;;  %v2537_v61 = vsel %vm2528_vm5, 1, %v5663_v2 }
 0x73b   :  { %v2143_v6 = vmax.f32 %v2081_v60, 0.0  ;;  %2467 = vmatprep.subr.bf16.mxu1 %v5446_v57  ;;  %v2203_v54 = vrot.slane %v4698_v50, %v5869_v49  ;;  %v2559_v58 = vsel %vm2558_vm6, 1, %v5663_v2  ;;  %v2545_v60 = vrot.slane %v2537_v61, %v5869_v49 }
 0x73c   :  { %v2144_v4 = vmax.f32 %v2083_v63, 0.0  ;;  %v2541_v62 = vrot.slane %v2537_v61, %v5875_v51  ;;  %vm4330_vm5 = vcmask 1041408   ;;  %vm4331_vm6 = vcmask 257026  }
 0x73d   :  { %v2149_v5 = vpack.c.bf16 %v2143_v6, %v2140_v1  ;;  %vm6709_vm7 = vcmp.eq.s32.totalorder %v2545_v60, 1  ;;  %v5455_v60 = vld [vmem:[%s7422_s6 + $0x2d4] ss:$12 sps:$4 sm:$0xff]  }
 0x73e   :  { %v2150_v9 = vpack.c.bf16 %v2144_v4, %v2141_v8  ;;  %2468 = vmatpush1.bf16.msra.mxu1 %v5444_v0  ;;  %vm6713_vm8 = vcmp.eq.s32.totalorder %v2541_v62, 1  ;;  %v6801_v62 = vld [vmem:[%s7421_s0] sm:$0xff]  }
 0x73f   :  { %2469 = vmatprep.subr.bf16.mxu1 %v5449_v7 }
 0x740   :  { %2454 = vmatprep.mubr.bf16.mxu1 %v2150_v9 }
 0x741   :  { %2455 = vmatmul.mubr.bf16.gmra.mrb[28].mxu1 %v2149_v5  ;;  %v2567_v5 = vrot.slane %v2559_v58, %v5869_v49 }
 0x742   :  { %2470 = vmatpush1.bf16.msra.mxu1 %v5447_v10  ;;  %2497 = vmatprep.mubr.bf16.mxu1 %v5663_v2  ;;  %v2563_v10 = vrot.slane %v2559_v58, %v5875_v51 }
 0x743   :  { %2471 = vmatprep.subr.bf16.mxu1 %v5452_v11  ;;  %vm6719_vm9 = vcmp.eq.s32.totalorder %v2567_v5, 1  ;;  %v5469_v5 = vld [vmem:[%s7422_s6 + $0x330] ss:$12 sps:$4 sm:$0xff]  }
 0x744   :  { %vm6725_vm10 = vcmp.eq.s32.totalorder %v2563_v10, 1  ;;  %v5473_v10 = vld [vmem:[%s7422_s6 + $0x348] ss:$12 sps:$4 sm:$0xff]   ;;  %v5479_v11 = vld [vmem:[%s7422_s6 + $0x364] ss:$12 sps:$4 sm:$0xff]  }
 0x746   :  { %2472 = vmatpush1.bf16.msra.mxu1 %v5450_v13 }
 0x747   :  { %2946 = vmatprep.subr.bf16.mxu1 %v5663_v2 }
 0x756   :  { %v2119_v16 = vpop.f32.mrb[64].mxu0 }
 0x757   :  { %v2120_v12 = vadd.f32 %v2119_v16, %v1862_v15  ;;  %v2121_v14 = vpop.f32.mrb[65].mxu0 }
 0x758   :  { %v2122_v17 = vpop.f32.mrb[66].mxu0 }
 0x759   :  { %v2123_v19 = vadd.f32 %v2122_v17, %v1862_v15  ;;  %v2124_v28 = vpop.f32.mrb[67].mxu0  ;;  %v2136_v20 = vmax.f32 %v2120_v12, 0.0 }
 0x75b   :  { %v2139_v21 = vmax.f32 %v2123_v19, 0.0 }
 0x75d   :  { %v2148_v24 = vpack.c.bf16 %v2139_v21, %v2136_v20  ;;  %v5492_v20 = vld [vmem:[%s7422_s6 + $0x3b0] ss:$12 sps:$4 sm:$0xff]  }
 0x75e   :  { %v2127_v38 = vpop.f32.mrb[68].mxu0 }
 0x75f   :  { %v2128_v44 = vadd.f32 %v2127_v38, %v1862_v15  ;;  %v2129_v25 = vpop.f32.mrb[69].mxu0  ;;  %4739 = vmatmul.mubr.msk.bf16.vlgmr.msra.gmra.mrb[24].mxu1 %vm749_vm1, %v2148_v24  ;;  %v4745_v24 = vld [vmem:[%s7424_s3 + $0x6] sm:$0x3] }
 0x760   :  { %v2130_v46 = vpop.f32.mrb[70].mxu0  ;;  %2507 = vmatprep.mubr.bf16.mxu1 %v5663_v2  ;;  %2947 = vmatpush1.bf16.msra.mxu1 %v5456_v32 }
 0x761   :  { %v2131_v26 = vadd.f32 %v2130_v46, %v1862_v15  ;;  %v2132_v42 = vpop.f32.mrb[71].mxu0  ;;  %v2142_v40 = vmax.f32 %v2128_v44, 0.0  ;;  %2948 = vmatprep.subr.bf16.mxu1 %v5663_v2  ;;  %v5483_v15 = vld [vmem:[%s7422_s6 + $0x37c] ss:$12 sps:$4 sm:$0xff]  }
 0x763   :  { %v2145_v43 = vmax.f32 %v2131_v26, 0.0 }
 0x764   :  { %2949 = vmatpush1.bf16.msra.mxu1 %v5460_v33 }
 0x765   :  { %v2151_v45 = vpack.c.bf16 %v2145_v43, %v2142_v40  ;;  %2950 = vmatprep.subr.bf16.mxu1 %v5663_v2 }
 0x767   :  { %4740 = vmatmul.mubr.msk.bf16.gmra.mrb[28].mxu1 %vm749_vm1, %v2151_v45 }
 0x768   :  { %2951 = vmatpush1.bf16.msra.mxu1 %v5464_v34 }
 0x769   :  { %2952 = vmatprep.subr.bf16.mxu1 %v5663_v2 }
 0x76c   :  { %2953 = vmatpush1.bf16.msra.mxu1 %v5468_v35 }
 0x76d   :  { %2954 = vmatprep.subr.bf16.mxu1 %v5663_v2 }
 0x770   :  { %2955 = vmatpush1.bf16.msra.mxu1 %v5472_v36 }
 0x771   :  { %2956 = vmatprep.subr.bf16.mxu1 %v5663_v2 }
 0x774   :  { %2957 = vmatpush1.bf16.msra.mxu1 %v5476_v37 }
 0x775   :  { %2958 = vmatprep.subr.bf16.mxu1 %v5663_v2 }
 0x778   :  { %2959 = vmatpush1.bf16.msra.mxu1 %v5480_v39 }
 0x779   :  { %2960 = vmatprep.subr.bf16.mxu1 %v5663_v2 }
 0x77c   :  { %2961 = vmatpush1.bf16.msra.mxu1 %v5484_v41 }
 0x77d   :  { %2962 = vmatprep.subr.bf16.mxu1 %v5663_v2 }
 0x832   :  { %v2499_v55 = vpop.f32.mrb[24].mxu1 }
 0x833   :  { %v5093_v57 = vadd.f32 %v2499_v55, %v2199_v53  ;;  %v2501_v59 = vpop.f32.mrb[25].mxu1 }
 0x834   :  { %v5094_v63 = vadd.f32 %v2501_v59, %v2203_v54  ;;  %v2503_v0 = vpop.f32.mrb[26].mxu1 }
 0x835   :  { %v2518_v1 = vmul.f32 0.999995, %v5093_v57  ;;  %v5095_v6 = vadd.f32 %v2503_v0, %v2199_v53  ;;  %v2505_v7 = vpop.f32.mrb[27].mxu1  ;;  %v5463_v0 = vld [vmem:[%s7422_s6 + $0x304] ss:$12 sps:$4 sm:$0xff]  }
 0x836   :  { %v2519_v8 = vmul.f32 0.999995, %v5094_v63  ;;  %v5096_v4 = vadd.f32 %v2505_v7, %v2203_v54  ;;  %v5457_v63 = vld [vmem:[%s7422_s6 + $0x2e8] ss:$12 sps:$4 sm:$0xff]  }
 0x837   :  { %v2529_v9 = vmax.f32 %v2518_v1, 0.0  ;;  %v2520_v13 = vmul.f32 0.999995, %v5095_v6  ;;  %v5467_v6 = vld [vmem:[%s7422_s6 + $0x31c] ss:$12 sps:$4 sm:$0xff]  }
 0x838   :  { %v2530_v16 = vmax.f32 %v2519_v8, 0.0  ;;  %v2521_v12 = vmul.f32 0.999995, %v5096_v4  ;;  %v6821_v7 = vld [vmem:[%s7421_s0 + $0x8] sm:$0xff]   ;;  %v5471_v4 = vld [vmem:[%s7422_s6 + $0x334] ss:$12 sps:$4 sm:$0xff]  }
 0x839   :  { %v2531_v14 = vmax.f32 %v2520_v13, 0.0  ;;  %v2548_v21 = vsel %vm6713_vm8, %v2529_v9, %v2518_v1  ;;  %v5461_v1 = vld [vmem:[%s7422_s6 + $0x300] ss:$12 sps:$4 sm:$0xff]  }
 0x83a   :  { %v2549_v17 = vsel %vm6709_vm7, %v2530_v16, %v2519_v8  ;;  %v2532_v19 = vmax.f32 %v2521_v12, 0.0  ;;  %v2509_v28 = vpop.f32.mrb[28].mxu1  ;;  %v5465_v8 = vld [vmem:[%s7422_s6 + $0x318] ss:$12 sps:$4 sm:$0xff]  }
 0x83b   :  { %v2550_v38 = vsel %vm6713_vm8, %v2531_v14, %v2520_v13  ;;  %v5097_v44 = vadd.f32 %v2509_v28, %v2199_v53  ;;  %v2511_v25 = vpop.f32.mrb[29].mxu1  ;;  %v6741_v33 = vsel %vm6719_vm9, %v2549_v17, %v6372_v22  ;;  %v5475_v9 = vld [vmem:[%s7422_s6 + $0x34c] ss:$12 sps:$4 sm:$0xff]   ;;  %v5485_v14 = vld [vmem:[%s7422_s6 + $0x390] ss:$12 sps:$4 sm:$0xff]  }
 0x83c   :  { %v6734_v46 = vsel %vm6725_vm10, %v2550_v38, %v6368_v18  ;;  %v2551_v26 = vsel %vm6709_vm7, %v2532_v19, %v2521_v12  ;;  %v5098_v42 = vadd.f32 %v2511_v25, %v2203_v54  ;;  %v2513_v40 = vpop.f32.mrb[30].mxu1  ;;  %v6751_v18 = vsel %vm6725_vm10, %v2548_v21, %v6380_v23  ;;  %v5477_v13 = vld [vmem:[%s7422_s6 + $0x360] ss:$12 sps:$4 sm:$0xff]   ;;  %v5481_v16 = vld [vmem:[%s7422_s6 + $0x378] ss:$12 sps:$4 sm:$0xff]  }
 0x83d   :  { %v2522_v43 = vmul.f32 0.999995, %v5097_v44  ;;  %v5099_v45 = vadd.f32 %v2513_v40, %v2199_v53  ;;  %v2515_v32 = vpop.f32.mrb[31].mxu1  ;;  %v6746_v34 = vsel %vm6719_vm9, %v2551_v26, %v6376_v27  ;;  %v2578_v22 = vpack.c.bf16 %v6734_v46, %v6751_v18  ;;  %v5487_v12 = vld [vmem:[%s7422_s6 + $0x394] ss:$12 sps:$4 sm:$0xff]  }
 0x83e   :  { %v2523_v35 = vmul.f32 0.999995, %v5098_v42  ;;  %v5100_v36 = vadd.f32 %v2515_v32, %v2203_v54  ;;  %v2579_v37 = vpack.c.bf16 %v6746_v34, %v6741_v33  ;;  %v5488_v17 = vld [vmem:[%s7422_s6 + $0x398] ss:$12 sps:$4 sm:$0xff]   ;;  %v5489_v28 = vld [vmem:[%s7422_s6 + $0x3a8] ss:$12 sps:$4 sm:$0xff]   ;;  %v2641_v38 = vrot.slane %v4745_v24, %v5875_v51 }
 0x83f   :  { %v2533_v39 = vmax.f32 %v2522_v43, 0.0  ;;  %v2524_v41 = vmul.f32 0.999995, %v5099_v45  ;;  %2963 = vmatpush1.bf16.msra.mxu1 %v5488_v17  ;;  %v5491_v19 = vld [vmem:[%s7422_s6 + $0x3ac] ss:$12 sps:$4 sm:$0xff]   ;;  %v2645_v44 = vrot.slane %v4745_v24, %v5869_v49 }
 0x840   :  { %v2534_v56 = vmax.f32 %v2523_v35, 0.0  ;;  %v2525_v50 = vmul.f32 0.999995, %v5100_v36  ;;  %2582 = vmatprep.subr.bf16.mxu0 %v2579_v37  ;;  %2964 = vmatprep.subr.bf16.mxu1 %v5663_v2  ;;  %v5495_v21 = vld [vmem:[%s7423_s8 + $0x3c4] ss:$8 sps:$4 sm:$0xff]   ;;  %v2648_v26 = vmul.f32 %v2641_v38, %v6751_v18  ;;  %v2650_v40 = vmul.f32 %v2641_v38, %v6734_v46 }
 0x841   :  { %v2535_v27 = vmax.f32 %v2524_v41, 0.0  ;;  %2583 = vmatpush1.bf16.msra.mxu0 %v2578_v22  ;;  %v2552_v53 = vsel %vm6713_vm8, %v2533_v39, %v2522_v43  ;;  %v2649_v43 = vmul.f32 %v2645_v44, %v6741_v33  ;;  %v2651_v32 = vmul.f32 %v2645_v44, %v6746_v34  ;;  %v5516_v17 = vld [vmem:[%s7423_s8 + $0x434] ss:$8 sps:$4 sm:$0xff]   ;;  %v5520_v24 = vld [vmem:[%s7423_s8 + $0x450] ss:$8 sps:$4 sm:$0xff]  }
 0x842   :  { %v2553_v52 = vsel %vm6709_vm7, %v2534_v56, %v2523_v35  ;;  %v2536_v23 = vmax.f32 %v2525_v50, 0.0  ;;  %v6783_v59 = vsel %vm6725_vm10, %v2552_v53, %v6400_v31  ;;  %v5459_v31 = vld [vmem:[%s7422_s6 + $0x2ec] ss:$12 sps:$4 sm:$0xff]  }
 0x843   :  { %v2554_v61 = vsel %vm6713_vm8, %v2535_v27, %v2524_v41  ;;  %v6773_v57 = vsel %vm6719_vm9, %v2553_v52, %v6392_v29  ;;  %2965 = vmatpush1.bf16.msra.mxu1 %v5492_v20  ;;  %v5498_v27 = vld [vmem:[%s7423_s8 + $0x3d4] ss:$8 sps:$4 sm:$0xff]   ;;  %v5517_v20 = vld [vmem:[%s7423_s8 + $0x440] ss:$8 sps:$4 sm:$0xff]  }
 0x844   :  { %v6766_v54 = vsel %vm6725_vm10, %v2554_v61, %v6388_v47  ;;  %v2555_v55 = vsel %vm6709_vm7, %v2536_v23, %v2525_v50  ;;  %v5493_v50 = vld [vmem:[%s7423_s8 + $0x3c0] ss:$8 sps:$4 sm:$0xff]   ;;  %v2652_v23 = vmul.f32 %v2641_v38, %v6783_v59  ;;  %vm4332_vm7 = vmor %vm4331_vm6, %vm4330_vm5 }
 0x845   :  { %v6778_v58 = vsel %vm6719_vm9, %v2555_v55, %v6396_v30  ;;  %v2580_v29 = vpack.c.bf16 %v6766_v54, %v6783_v59  ;;  %v5453_v30 = vld [vmem:[%s7422_s6 + $0x2d0] ss:$12 sps:$4 sm:$0xff]   ;;  %v2654_v61 = vmul.f32 %v2641_v38, %v6766_v54  ;;  %v2653_v55 = vmul.f32 %v2645_v44, %v6773_v57  ;;  %v5525_v38 = vld [vmem:[%s7423_s8 + $0x464] ss:$8 sps:$4 sm:$0xff]  }
 0x846   :  { %v2581_v47 = vpack.c.bf16 %v6778_v58, %v6773_v57 }
 0x848   :  { %2584 = vmatprep.subr.bf16.mxu0 %v2581_v47 }
 0x849   :  { %2585 = vmatpush1.bf16.msra.mxu0 %v2580_v29  ;;  %v5496_v29 = vld [vmem:[%s7423_s8 + $0x3d0] ss:$8 sps:$4 sm:$0xff]  }
 0x84a   :  { %2893 = vmatprep.subr.bf16.mxu0 %v5455_v60  ;;  %v2655_v60 = vmul.f32 %v2645_v44, %v6778_v58  ;;  %v5523_v44 = vld [vmem:[%s7423_s8 + $0x460] ss:$8 sps:$4 sm:$0xff]  }
 0x84c   :  { %4743 = vmatmul.mubr.msk.bf16.vlgmr.msra.gmra.mrb[72].mxu0 %vm62_vm0, %v6801_v62 }
 0x84d   :  { %2624 = vmatprep.mubr.bf16.mxu0 %v5663_v2  ;;  %2894 = vmatpush1.bf16.msra.mxu0 %v5453_v30 }
 0x84e   :  { %2895 = vmatprep.subr.bf16.mxu0 %v5459_v31 }
 0x851   :  { %2896 = vmatpush1.bf16.msra.mxu0 %v5457_v63 }
 0x852   :  { %2897 = vmatprep.subr.bf16.mxu0 %v5463_v0  ;;  %v5501_v0 = vld [vmem:[%s7423_s8 + $0x3e4] ss:$8 sps:$4 sm:$0xff]  }
 0x854   :  { %4744 = vmatmul.mubr.msk.bf16.gmra.mrb[76].mxu0 %vm62_vm0, %v6821_v7 }
 0x855   :  { %2898 = vmatpush1.bf16.msra.mxu0 %v5461_v1 }
 0x856   :  { %2899 = vmatprep.subr.bf16.mxu0 %v5467_v6 }
 0x859   :  { %2900 = vmatpush1.bf16.msra.mxu0 %v5465_v8 }
 0x85a   :  { %2901 = vmatprep.subr.bf16.mxu0 %v5471_v4 }
 0x85d   :  { %2902 = vmatpush1.bf16.msra.mxu0 %v5469_v5  ;;  %v5499_v5 = vld [vmem:[%s7423_s8 + $0x3e0] ss:$8 sps:$4 sm:$0xff]  }
 0x85e   :  { %2903 = vmatprep.subr.bf16.mxu0 %v5475_v9  ;;  %v5504_v9 = vld [vmem:[%s7423_s8 + $0x3f4] ss:$8 sps:$4 sm:$0xff]  }
 0x861   :  { %2904 = vmatpush1.bf16.msra.mxu0 %v5473_v10  ;;  %v5502_v10 = vld [vmem:[%s7423_s8 + $0x3f0] ss:$8 sps:$4 sm:$0xff]  }
 0x862   :  { %2905 = vmatprep.subr.bf16.mxu0 %v5479_v11  ;;  %v5507_v11 = vld [vmem:[%s7423_s8 + $0x404] ss:$8 sps:$4 sm:$0xff]  }
 0x865   :  { %2906 = vmatpush1.bf16.msra.mxu0 %v5477_v13  ;;  %v5505_v13 = vld [vmem:[%s7423_s8 + $0x400] ss:$8 sps:$4 sm:$0xff]  }
 0x866   :  { %2907 = vmatprep.subr.bf16.mxu0 %v5483_v15  ;;  %v5510_v15 = vld [vmem:[%s7423_s8 + $0x414] ss:$8 sps:$4 sm:$0xff]  }
 0x869   :  { %2908 = vmatpush1.bf16.msra.mxu0 %v5481_v16  ;;  %v5508_v16 = vld [vmem:[%s7423_s8 + $0x410] ss:$8 sps:$4 sm:$0xff]  }
 0x86a   :  { %2909 = vmatprep.subr.bf16.mxu0 %v5487_v12  ;;  %v5513_v12 = vld [vmem:[%s7423_s8 + $0x424] ss:$8 sps:$4 sm:$0xff]  }
 0x86d   :  { %2910 = vmatpush1.bf16.msra.mxu0 %v5485_v14  ;;  %v5511_v14 = vld [vmem:[%s7423_s8 + $0x420] ss:$8 sps:$4 sm:$0xff]  }
 0x86e   :  { %2911 = vmatprep.subr.bf16.mxu0 %v5491_v19  ;;  %v5514_v19 = vld [vmem:[%s7423_s8 + $0x430] ss:$8 sps:$4 sm:$0xff]  }
 0x871   :  { %2912 = vmatpush1.bf16.msra.mxu0 %v5489_v28  ;;  %v5519_v28 = vld [vmem:[%s7423_s8 + $0x444] ss:$8 sps:$4 sm:$0xff]  }
 0x872   :  { %3273 = vmatprep.subr.bf16.mxu0 %v5495_v21  ;;  %v5522_v21 = vld [vmem:[%s7423_s8 + $0x454] ss:$8 sps:$4 sm:$0xff]  }
 0x91f   :  { %v2616_v25 = vpop.f32.mrb[72].mxu0 }
 0x920   :  { %v2618_v42 = vpop.f32.mrb[73].mxu0  ;;  %v2656_v35 = vadd.f32 %v2648_v26, %v2616_v25  ;;  %v5528_v25 = vld [vmem:[%s7423_s8 + $0x474] ss:$8 sps:$4 sm:$0xff]   ;;  %v5526_v26 = vld [vmem:[%s7423_s8 + $0x470] ss:$8 sps:$4 sm:$0xff]  }
 0x921   :  { %v2620_v45 = vpop.f32.mrb[74].mxu0  ;;  %v2657_v39 = vadd.f32 %v2649_v43, %v2618_v42  ;;  %v5531_v42 = vld [vmem:[%s7423_s8 + $0x484] ss:$8 sps:$4 sm:$0xff]   ;;  %v5534_v43 = vld [vmem:[%s7423_s8 + $0x494] ss:$8 sps:$4 sm:$0xff]  }
 0x922   :  { %v2658_v36 = vadd.f32 %v2650_v40, %v2620_v45  ;;  %v2622_v37 = vpop.f32.mrb[75].mxu0  ;;  %v5529_v40 = vld [vmem:[%s7423_s8 + $0x480] ss:$8 sps:$4 sm:$0xff]   ;;  %v5532_v45 = vld [vmem:[%s7423_s8 + $0x490] ss:$8 sps:$4 sm:$0xff]  }
 0x923   :  { %v2659_v41 = vadd.f32 %v2651_v32, %v2622_v37  ;;  %v5537_v32 = vld [vmem:[%s7423_s8 + $0x4a4] ss:$8 sps:$4 sm:$0xff]   ;;  %v5538_v37 = vld [vmem:[%s7423_s8 + $0x4b0] ss:$8 sps:$4 sm:$0xff]  }
 0x924   :  { %v2664_v22 = vpack.c.bf16 %v2658_v36, %v2656_v35  ;;  %v5535_v35 = vld [vmem:[%s7423_s8 + $0x4a0] ss:$8 sps:$4 sm:$0xff]   ;;  %v5540_v36 = vld [vmem:[%s7423_s8 + $0x4b4] ss:$8 sps:$4 sm:$0xff]  }
 0x925   :  { %v2665_v56 = vpack.c.bf16 %v2659_v41, %v2657_v39  ;;  %v5543_v39 = vld [vmem:[%s7423_s8 + $0x4c4] ss:$8 sps:$4 sm:$0xff]   ;;  %v4786_v41 = vld [vmem:[%s7425_s7 + $0x9] sm:$0x7] }
 0x927   :  { %v2626_v52 = vpop.f32.mrb[76].mxu0  ;;  %4817 = vmatprep.mubr.msk.bf16.mxu0 %vm62_vm0, %v2665_v56  ;;  %4819 = vmatprep.mubr.msk.bf16.mxu1 %vm62_vm0, %v2665_v56  ;;  %v2723_v56 = vrot.slane %v4786_v41, %v6019_v3 }
 0x928   :  { %v2628_v53 = vpop.f32.mrb[77].mxu0  ;;  %2926 = vmatmul.mubr.bf16.vlgmr.msra.gmra.mrb[80].mxu0 %v2664_v22  ;;  %2979 = vmatmul.mubr.bf16.vlgmr.msra.gmra.mrb[32].mxu1 %v2664_v22  ;;  %v2660_v30 = vadd.f32 %v2652_v23, %v2626_v52  ;;  %v2715_v22 = vrot.slane %v4786_v41, %v5875_v51 }
 0x929   :  { %v2630_v47 = vpop.f32.mrb[78].mxu0  ;;  %3274 = vmatpush1.bf16.msra.mxu0 %v5493_v50  ;;  %v2661_v1 = vadd.f32 %v2653_v55, %v2628_v53  ;;  %v2719_v50 = vrot.slane %v4786_v41, %v5869_v49 }
 0x92a   :  { %v2662_v31 = vadd.f32 %v2654_v61, %v2630_v47  ;;  %v2632_v63 = vpop.f32.mrb[79].mxu0  ;;  %3275 = vmatprep.subr.bf16.mxu0 %v5498_v27 }
 0x92b   :  { %v2663_v6 = vadd.f32 %v2655_v60, %v2632_v63 }
 0x92c   :  { %v2666_v8 = vpack.c.bf16 %v2662_v31, %v2660_v30 }
 0x92d   :  { %v2667_v4 = vpack.c.bf16 %v2663_v6, %v2661_v1  ;;  %3276 = vmatpush1.bf16.msra.mxu0 %v5496_v29 }
 0x92e   :  { %3277 = vmatprep.subr.bf16.mxu0 %v5501_v0 }
 0x92f   :  { %4818 = vmatprep.mubr.msk.bf16.mxu0 %vm62_vm0, %v2667_v4  ;;  %4820 = vmatprep.mubr.msk.bf16.mxu1 %vm62_vm0, %v2667_v4 }
 0x930   :  { %2936 = vmatmul.mubr.bf16.gmra.mrb[84].mxu0 %v2666_v8  ;;  %2987 = vmatmul.mubr.bf16.gmra.mrb[36].mxu1 %v2666_v8 }
 0x931   :  { %3278 = vmatpush1.bf16.msra.mxu0 %v5499_v5  ;;  %3475 = vmatprep.mubr.bf16.mxu1 %v5663_v2 }
 0x932   :  { %3279 = vmatprep.subr.bf16.mxu0 %v5504_v9 }
 0x935   :  { %3280 = vmatpush1.bf16.msra.mxu0 %v5502_v10 }
 0x936   :  { %3281 = vmatprep.subr.bf16.mxu0 %v5507_v11 }
 0x939   :  { %3282 = vmatpush1.bf16.msra.mxu0 %v5505_v13 }
 0x93a   :  { %3283 = vmatprep.subr.bf16.mxu0 %v5510_v15 }
 0x93d   :  { %3284 = vmatpush1.bf16.msra.mxu0 %v5508_v16 }
 0x93e   :  { %3285 = vmatprep.subr.bf16.mxu0 %v5513_v12 }
 0x941   :  { %3286 = vmatpush1.bf16.msra.mxu0 %v5511_v14  ;;  %v5541_v14 = vld [vmem:[%s7423_s8 + $0x4c0] ss:$8 sps:$4 sm:$0xff]  }
 0x942   :  { %3287 = vmatprep.subr.bf16.mxu0 %v5516_v17 }
 0x945   :  { %3288 = vmatpush1.bf16.msra.mxu0 %v5514_v19 }
 0x946   :  { %3289 = vmatprep.subr.bf16.mxu0 %v5519_v28 }
 0x949   :  { %3290 = vmatpush1.bf16.msra.mxu0 %v5517_v20 }
 0x94a   :  { %3291 = vmatprep.subr.bf16.mxu0 %v5522_v21  ;;  %v5546_v21 = vld [vmem:[%s7423_s8 + $0x4d4] ss:$8 sps:$4 sm:$0xff]  }
 0x94d   :  { %3292 = vmatpush1.bf16.msra.mxu0 %v5520_v24 }
 0x94e   :  { %3293 = vmatprep.subr.bf16.mxu0 %v5525_v38 }
 0x951   :  { %3294 = vmatpush1.bf16.msra.mxu0 %v5523_v44 }
 0x952   :  { %3295 = vmatprep.subr.bf16.mxu0 %v5528_v25 }
 0x955   :  { %3296 = vmatpush1.bf16.msra.mxu0 %v5526_v26 }
 0x956   :  { %3297 = vmatprep.subr.bf16.mxu0 %v5531_v42 }
 0x959   :  { %3298 = vmatpush1.bf16.msra.mxu0 %v5529_v40 }
 0x95a   :  { %3299 = vmatprep.subr.bf16.mxu0 %v5534_v43 }
 0x95d   :  { %3300 = vmatpush1.bf16.msra.mxu0 %v5532_v45  ;;  %v5544_v45 = vld [vmem:[%s7423_s8 + $0x4d0] ss:$8 sps:$4 sm:$0xff]  }
 0x95e   :  { %3301 = vmatprep.subr.bf16.mxu0 %v5537_v32 }
 0x961   :  { %3302 = vmatpush1.bf16.msra.mxu0 %v5535_v35 }
 0x962   :  { %3303 = vmatprep.subr.bf16.mxu0 %v5540_v36 }
 0x965   :  { %3304 = vmatpush1.bf16.msra.mxu0 %v5538_v37 }
 0x966   :  { %3326 = vmatprep.subr.bf16.mxu0 %v5543_v39  ;;  %v5549_v39 = vld [vmem:[%s7423_s8 + $0x4e4] ss:$8 sps:$4 sm:$0xff]  }
 0x9fb   :  { %v2927_v27 = vpop.f32.mrb[80].mxu0  ;;  %v2980_v52 = vpop.f32.mrb[32].mxu1 }
 0x9fc   :  { %v2928_v23 = vadd.f32 %v2927_v27, %v2715_v22  ;;  %v2981_v53 = vadd.f32 %v2980_v52, %v2723_v56  ;;  %v2929_v61 = vpop.f32.mrb[81].mxu0  ;;  %v2982_v55 = vpop.f32.mrb[33].mxu1 }
 0x9fd   :  { %v2930_v47 = vadd.f32 %v2929_v61, %v2719_v50  ;;  %v2931_v60 = vpop.f32.mrb[82].mxu0  ;;  %v2983_v29 = vpop.f32.mrb[34].mxu1  ;;  %v5556_v61 = vld [vmem:[%s7422_s6 + $0x3c8] ss:$12 sps:$4 sm:$0xff]   ;;  %v5560_v55 = vld [vmem:[%s7422_s6 + $0x3e0] ss:$12 sps:$4 sm:$0xff]  }
 0x9fe   :  { %v2932_v30 = vadd.f32 %v2931_v60, %v2715_v22  ;;  %v2984_v31 = vadd.f32 %v2983_v29, %v2723_v56  ;;  %v2933_v63 = vpop.f32.mrb[83].mxu0  ;;  %v2985_v0 = vpop.f32.mrb[35].mxu1  ;;  %v2995_v6 = vmax.f32 %v2928_v23, 0.0  ;;  %v2997_v8 = vmax.f32 %v2981_v53, 0.0  ;;  %v5552_v23 = vld [vmem:[%s7423_s8 + $0x4f4] ss:$8 sps:$4 sm:$0xff]  }
 0x9ff   :  { %v2934_v1 = vadd.f32 %v2933_v63, %v2719_v50  ;;  %v2996_v9 = vmax.f32 %v2930_v47, 0.0  ;;  %v5550_v53 = vld [vmem:[%s7423_s8 + $0x4f0] ss:$8 sps:$4 sm:$0xff]   ;;  %v5572_v29 = vld [vmem:[%s7422_s6 + $0x428] ss:$12 sps:$4 sm:$0xff]  }
 0xa00   :  { %v2998_v4 = vmax.f32 %v2932_v30, 0.0  ;;  %v3000_v5 = vmax.f32 %v2984_v31, 0.0  ;;  %v5564_v47 = vld [vmem:[%s7422_s6 + $0x3f8] ss:$12 sps:$4 sm:$0xff]   ;;  %v5568_v60 = vld [vmem:[%s7422_s6 + $0x410] ss:$12 sps:$4 sm:$0xff]  }
 0xa01   :  { %v2999_v10 = vmax.f32 %v2934_v1, 0.0  ;;  %v5576_v30 = vld [vmem:[%s7422_s6 + $0x440] ss:$12 sps:$4 sm:$0xff]   ;;  %v5580_v31 = vld [vmem:[%s7422_s6 + $0x458] ss:$12 sps:$4 sm:$0xff]  }
 0xa02   :  { %v3007_v11 = vpack.c.bf16 %v2998_v4, %v2995_v6  ;;  %v3009_v13 = vpack.c.bf16 %v3000_v5, %v2997_v8  ;;  %v5584_v63 = vld [vmem:[%s7422_s6 + $0x470] ss:$12 sps:$4 sm:$0xff]   ;;  %v4904_v0 = vld [vmem:[%s7427_s4 + $0x6] sm:$0x3] }
 0xa03   :  { %v3008_v15 = vpack.c.bf16 %v2999_v10, %v2996_v9  ;;  %v2937_v16 = vpop.f32.mrb[84].mxu0  ;;  %v2988_v12 = vpop.f32.mrb[36].mxu1  ;;  %v4861_v1 = vld [vmem:[%s7426_s9 + $0x6] sm:$0x3]  ;;  %vm3389_vm11 = vcmp.gt.f32.partialorder %v4904_v0, 0.0 }
 0xa04   :  { %v2938_v17 = vadd.f32 %v2937_v16, %v2715_v22  ;;  %v2989_v19 = vadd.f32 %v2988_v12, %v2723_v56  ;;  %v2939_v28 = vpop.f32.mrb[85].mxu0  ;;  %v2990_v20 = vpop.f32.mrb[37].mxu1  ;;  %v4905_v6 = vld [vmem:[%s7428_s5 + $0x6] sm:$0x3]  ;;  %v3060_v8 = vrot.slane %v4861_v1, %v5875_v51  ;;  %v3398_v4 = vsel %vm3389_vm11, 1, %v5663_v2 }
 0xa05   :  { %v2940_v24 = vadd.f32 %v2939_v28, %v2719_v50  ;;  %v2941_v38 = vpop.f32.mrb[86].mxu0  ;;  %v2991_v44 = vpop.f32.mrb[38].mxu1  ;;  %3305 = vmatprep.mubr.bf16.mxu0 %v3008_v15  ;;  %vm3419_vm12 = vcmp.gt.f32.partialorder %v4905_v6, 0.0  ;;  %v3064_v5 = vrot.slane %v4861_v1, %v5869_v49  ;;  %v3406_v15 = vrot.slane %v3398_v4, %v5869_v49 }
 0xa06   :  { %v2942_v25 = vadd.f32 %v2941_v38, %v2715_v22  ;;  %v2992_v26 = vadd.f32 %v2991_v44, %v2723_v56  ;;  %v2943_v42 = vpop.f32.mrb[87].mxu0  ;;  %v2993_v40 = vpop.f32.mrb[39].mxu1  ;;  %3306 = vmatmul.mubr.bf16.vlgmr.msra.gmra.mrb[88].mxu0 %v3007_v11  ;;  %v3001_v32 = vmax.f32 %v2938_v17, 0.0  ;;  %v3003_v35 = vmax.f32 %v2989_v19, 0.0 }
 0xa07   :  { %v2944_v43 = vadd.f32 %v2943_v42, %v2719_v50  ;;  %3327 = vmatpush1.bf16.msra.mxu0 %v5541_v14  ;;  %v3002_v41 = vmax.f32 %v2940_v24, 0.0  ;;  %v5547_v50 = vld [vmem:[%s7423_s8 + $0x4e0] ss:$8 sps:$4 sm:$0xff]   ;;  %v3420_v11 = vsel %vm3419_vm12, 1, %v5663_v2  ;;  %v3402_v16 = vrot.slane %v3398_v4, %v5875_v51  ;;  %v5587_v42 = vld [vmem:[%s7422_s6 + $0x484] ss:$12 sps:$4 sm:$0xff]  }
 0xa08   :  { %v3004_v36 = vmax.f32 %v2942_v25, 0.0  ;;  %v3006_v37 = vmax.f32 %v2992_v26, 0.0  ;;  %3328 = vmatprep.subr.bf16.mxu0 %v5546_v21  ;;  %v3428_v24 = vrot.slane %v3420_v11, %v5869_v49  ;;  %v3424_v44 = vrot.slane %v3420_v11, %v5875_v51  ;;  %v5583_v25 = vld [vmem:[%s7422_s6 + $0x46c] ss:$12 sps:$4 sm:$0xff]  }
 0xa09   :  { %v3005_v22 = vmax.f32 %v2944_v43, 0.0  ;;  %vm7069_vm13 = vcmp.eq.s32.totalorder %v3406_v15, 1  ;;  %vm7073_vm14 = vcmp.eq.s32.totalorder %v3402_v16, 1 }
 0xa0a   :  { %v3010_v56 = vpack.c.bf16 %v3004_v36, %v3001_v32  ;;  %v3012_v27 = vpack.c.bf16 %v3006_v37, %v3003_v35  ;;  %vm7079_vm15 = vcmp.eq.s32.totalorder %v3428_v24, 1  ;;  %vm7085_vm2 = vcmp.eq.s32.totalorder %v3424_v44, 1  ;;  %v5573_v24 = vld [vmem:[%s7422_s6 + $0x438] ss:$12 sps:$4 sm:$0xff]   ;;  %v5577_v44 = vld [vmem:[%s7422_s6 + $0x450] ss:$12 sps:$4 sm:$0xff]  }
 0xa0b   :  { %v3011_v52 = vpack.c.bf16 %v3005_v22, %v3002_v41  ;;  %3329 = vmatpush1.bf16.msra.mxu0 %v5544_v45  ;;  %v4908_v37 = vld [vmem:[%s7424_s3 + $0x8] sm:$0x3] }
 0xa0c   :  { %3330 = vmatprep.subr.bf16.mxu0 %v5549_v39  ;;  %v3506_v41 = vrot.slane %v4908_v37, %v5869_v49 }
 0xa0d   :  { %3315 = vmatprep.mubr.bf16.mxu0 %v3011_v52 }
 0xa0e   :  { %3316 = vmatmul.mubr.bf16.gmra.mrb[92].mxu0 %v3010_v56 }
 0xa0f   :  { %3331 = vmatpush1.bf16.msra.mxu0 %v5547_v50  ;;  %3358 = vmatprep.mubr.bf16.mxu0 %v5663_v2 }
 0xa10   :  { %3332 = vmatprep.subr.bf16.mxu0 %v5552_v23 }
 0xa13   :  { %3333 = vmatpush1.bf16.msra.mxu0 %v5550_v53 }
 0xa14   :  { %3807 = vmatprep.subr.bf16.mxu0 %v5663_v2 }
 0xa16   :  { %4902 = vmatmul.mubr.msk.bf16.vlgmr.msra.gmra.mrb[88].mxu0 %vm749_vm1, %v3009_v13 }
 0xa17   :  { %3368 = vmatprep.mubr.bf16.mxu0 %v5663_v2  ;;  %3808 = vmatpush1.bf16.msra.mxu0 %v5556_v61 }
 0xa18   :  { %3809 = vmatprep.subr.bf16.mxu0 %v5663_v2 }
 0xa1b   :  { %3810 = vmatpush1.bf16.msra.mxu0 %v5560_v55 }
 0xa1c   :  { %3811 = vmatprep.subr.bf16.mxu0 %v5663_v2 }
 0xa1e   :  { %4903 = vmatmul.mubr.msk.bf16.gmra.mrb[92].mxu0 %vm749_vm1, %v3012_v27 }
 0xa1f   :  { %3812 = vmatpush1.bf16.msra.mxu0 %v5564_v47 }
 0xa20   :  { %3813 = vmatprep.subr.bf16.mxu0 %v5663_v2 }
 0xa23   :  { %3814 = vmatpush1.bf16.msra.mxu0 %v5568_v60 }
 0xa24   :  { %3815 = vmatprep.subr.bf16.mxu0 %v5663_v2 }
 0xa27   :  { %3816 = vmatpush1.bf16.msra.mxu0 %v5572_v29 }
 0xa28   :  { %3817 = vmatprep.subr.bf16.mxu0 %v5663_v2 }
 0xa2b   :  { %3818 = vmatpush1.bf16.msra.mxu0 %v5576_v30 }
 0xa2c   :  { %3819 = vmatprep.subr.bf16.mxu0 %v5663_v2 }
 0xa2f   :  { %3820 = vmatpush1.bf16.msra.mxu0 %v5580_v31 }
 0xa30   :  { %3821 = vmatprep.subr.bf16.mxu0 %v5663_v2 }
 0xa33   :  { %3822 = vmatpush1.bf16.msra.mxu0 %v5584_v63 }
 0xa34   :  { %3823 = vmatprep.subr.bf16.mxu0 %v5663_v2 }
 0xae9   :  { %v3360_v9 = vpop.f32.mrb[88].mxu0 }
 0xaea   :  { %v5101_v10 = vadd.f32 %v3360_v9, %v3060_v8  ;;  %v3362_v13 = vpop.f32.mrb[89].mxu0 }
 0xaeb   :  { %v5102_v12 = vadd.f32 %v3362_v13, %v3064_v5  ;;  %v3364_v14 = vpop.f32.mrb[90].mxu0 }
 0xaec   :  { %v3379_v17 = vmul.f32 0.999995, %v5101_v10  ;;  %v5103_v19 = vadd.f32 %v3364_v14, %v3060_v8  ;;  %v3366_v28 = vpop.f32.mrb[91].mxu0  ;;  %v5557_v14 = vld [vmem:[%s7422_s6 + $0x3d8] ss:$12 sps:$4 sm:$0xff]  }
 0xaed   :  { %v3380_v20 = vmul.f32 0.999995, %v5102_v12  ;;  %v5104_v21 = vadd.f32 %v3366_v28, %v3064_v5  ;;  %v5555_v12 = vld [vmem:[%s7422_s6 + $0x3c4] ss:$12 sps:$4 sm:$0xff]   ;;  %v5565_v28 = vld [vmem:[%s7422_s6 + $0x408] ss:$12 sps:$4 sm:$0xff]  }
 0xaee   :  { %v3390_v38 = vmax.f32 %v3379_v17, 0.0  ;;  %v3381_v26 = vmul.f32 0.999995, %v5103_v19  ;;  %v5561_v19 = vld [vmem:[%s7422_s6 + $0x3f0] ss:$12 sps:$4 sm:$0xff]  }
 0xaef   :  { %v3391_v40 = vmax.f32 %v3380_v20, 0.0  ;;  %v3382_v43 = vmul.f32 0.999995, %v5104_v21  ;;  %v5569_v21 = vld [vmem:[%s7422_s6 + $0x420] ss:$12 sps:$4 sm:$0xff]  }
 0xaf0   :  { %v3392_v45 = vmax.f32 %v3381_v26, 0.0  ;;  %v3409_v39 = vsel %vm7073_vm14, %v3390_v38, %v3379_v17  ;;  %v5563_v17 = vld [vmem:[%s7422_s6 + $0x3f4] ss:$12 sps:$4 sm:$0xff]  }
 0xaf1   :  { %v3410_v32 = vsel %vm7069_vm13, %v3391_v40, %v3380_v20  ;;  %v3393_v35 = vmax.f32 %v3382_v43, 0.0  ;;  %v3370_v36 = vpop.f32.mrb[92].mxu0  ;;  %v5571_v20 = vld [vmem:[%s7422_s6 + $0x424] ss:$12 sps:$4 sm:$0xff]   ;;  %v5579_v38 = vld [vmem:[%s7422_s6 + $0x454] ss:$12 sps:$4 sm:$0xff]  }
 0xaf2   :  { %v3411_v22 = vsel %vm7073_vm14, %v3392_v45, %v3381_v26  ;;  %v5105_v56 = vadd.f32 %v3370_v36, %v3060_v8  ;;  %v3372_v27 = vpop.f32.mrb[93].mxu0  ;;  %v7101_v60 = vsel %vm7079_vm15, %v3410_v32, %v6741_v33  ;;  %v5581_v26 = vld [vmem:[%s7422_s6 + $0x468] ss:$12 sps:$4 sm:$0xff]   ;;  %v5585_v40 = vld [vmem:[%s7422_s6 + $0x480] ss:$12 sps:$4 sm:$0xff]  }
 0xaf3   :  { %v7094_v52 = vsel %vm7085_vm2, %v3411_v22, %v6734_v46  ;;  %v3412_v50 = vsel %vm7069_vm13, %v3393_v35, %v3382_v43  ;;  %v5106_v23 = vadd.f32 %v3372_v27, %v3064_v5  ;;  %v3374_v53 = vpop.f32.mrb[94].mxu0  ;;  %v7111_v46 = vsel %vm7085_vm2, %v3409_v39, %v6751_v18  ;;  %v5588_v43 = vld [vmem:[%s7422_s6 + $0x488] ss:$12 sps:$4 sm:$0xff]   ;;  %v5589_v32 = vld [vmem:[%s7422_s6 + $0x498] ss:$12 sps:$4 sm:$0xff]  }
 0xaf4   :  { %v3383_v61 = vmul.f32 0.999995, %v5105_v56  ;;  %v5107_v55 = vadd.f32 %v3374_v53, %v3060_v8  ;;  %v3376_v47 = vpop.f32.mrb[95].mxu0  ;;  %v7106_v29 = vsel %vm7079_vm15, %v3412_v50, %v6746_v34  ;;  %v3439_v33 = vpack.c.bf16 %v7094_v52, %v7111_v46  ;;  %3824 = vmatpush1.bf16.msra.mxu0 %v5588_v43  ;;  %v5591_v45 = vld [vmem:[%s7422_s6 + $0x49c] ss:$12 sps:$4 sm:$0xff]  }
 0xaf5   :  { %v3384_v30 = vmul.f32 0.999995, %v5106_v23  ;;  %v5108_v31 = vadd.f32 %v3376_v47, %v3064_v5  ;;  %v3440_v63 = vpack.c.bf16 %v7106_v29, %v7101_v60  ;;  %3825 = vmatprep.subr.bf16.mxu0 %v5663_v2  ;;  %v5592_v35 = vld [vmem:[%s7422_s6 + $0x4a0] ss:$12 sps:$4 sm:$0xff]   ;;  %v3502_v39 = vrot.slane %v4908_v37, %v5875_v51 }
 0xaf6   :  { %v3394_v0 = vmax.f32 %v3383_v61, 0.0  ;;  %v3385_v1 = vmul.f32 0.999995, %v5107_v55  ;;  %v5595_v36 = vld [vmem:[%s7423_s8 + $0x504] ss:$8 sps:$4 sm:$0xff]   ;;  %v3510_v23 = vmul.f32 %v3506_v41, %v7101_v60 }
 0xaf7   :  { %v3395_v6 = vmax.f32 %v3384_v30, 0.0  ;;  %v3386_v8 = vmul.f32 0.999995, %v5108_v31  ;;  %3443 = vmatprep.subr.bf16.mxu1 %v3440_v63  ;;  %v3509_v56 = vmul.f32 %v3502_v39, %v7111_v46  ;;  %v3511_v50 = vmul.f32 %v3502_v39, %v7094_v52  ;;  %v5619_v43 = vld [vmem:[%s7423_s8 + $0x584] ss:$8 sps:$4 sm:$0xff]  }
 0xaf8   :  { %v3396_v34 = vmax.f32 %v3385_v1, 0.0  ;;  %3444 = vmatpush1.bf16.msra.mxu1 %v3439_v33  ;;  %v3413_v5 = vsel %vm7073_vm14, %v3394_v0, %v3383_v61  ;;  %3826 = vmatpush1.bf16.msra.mxu0 %v5592_v35  ;;  %v3512_v61 = vmul.f32 %v3506_v41, %v7106_v29  ;;  %v5593_v33 = vld [vmem:[%s7423_s8 + $0x500] ss:$8 sps:$4 sm:$0xff]   ;;  %v5620_v35 = vld [vmem:[%s7423_s8 + $0x590] ss:$8 sps:$4 sm:$0xff]  }
 0xaf9   :  { %v3414_v4 = vsel %vm7069_vm13, %v3395_v6, %v3384_v30  ;;  %v3397_v18 = vmax.f32 %v3386_v8, 0.0  ;;  %v7143_v16 = vsel %vm7085_vm2, %v3413_v5, %v6783_v59  ;;  %v5559_v59 = vld [vmem:[%s7422_s6 + $0x3dc] ss:$12 sps:$4 sm:$0xff]  }
 0xafa   :  { %v3415_v9 = vsel %vm7073_vm14, %v3396_v34, %v3385_v1  ;;  %v7133_v13 = vsel %vm7079_vm15, %v3414_v4, %v6773_v57  ;;  %v5598_v6 = vld [vmem:[%s7423_s8 + $0x514] ss:$8 sps:$4 sm:$0xff]   ;;  %v3513_v34 = vmul.f32 %v3502_v39, %v7143_v16  ;;  %v5623_v37 = vld [vmem:[%s7423_s8 + $0x5a0] ss:$8 sps:$4 sm:$0xff]  }
 0xafb   :  { %v7126_v10 = vsel %vm7085_vm2, %v3415_v9, %v6766_v54  ;;  %v3416_v11 = vsel %vm7069_vm13, %v3397_v18, %v3386_v8  ;;  %v3514_v5 = vmul.f32 %v3506_v41, %v7133_v13 }
 0xafc   :  { %v7138_v15 = vsel %vm7079_vm15, %v3416_v11, %v6778_v58  ;;  %v3441_v57 = vpack.c.bf16 %v7126_v10, %v7143_v16  ;;  %v5553_v58 = vld [vmem:[%s7422_s6 + $0x3c0] ss:$12 sps:$4 sm:$0xff]   ;;  %v3515_v18 = vmul.f32 %v3502_v39, %v7126_v10  ;;  %v5628_v39 = vld [vmem:[%s7423_s8 + $0x5b4] ss:$8 sps:$4 sm:$0xff]  }
 0xafd   :  { %v3442_v54 = vpack.c.bf16 %v7138_v15, %v7133_v13  ;;  %v3516_v11 = vmul.f32 %v3506_v41, %v7138_v15  ;;  %v5626_v41 = vld [vmem:[%s7423_s8 + $0x5b0] ss:$8 sps:$4 sm:$0xff]  }
 0xaff   :  { %3445 = vmatprep.subr.bf16.mxu1 %v3442_v54  ;;  %v5596_v54 = vld [vmem:[%s7423_s8 + $0x510] ss:$8 sps:$4 sm:$0xff]  }
 0xb00   :  { %3446 = vmatpush1.bf16.msra.mxu1 %v3441_v57 }
 0xb01   :  { %3754 = vmatprep.subr.bf16.mxu1 %v5555_v12 }
 0xb03   :  { %4906 = vmatmul.mubr.msk.bf16.vlgmr.msra.gmra.mrb[40].mxu1 %vm62_vm0, %v6801_v62  ;;  %v5567_v62 = vld [vmem:[%s7422_s6 + $0x40c] ss:$12 sps:$4 sm:$0xff]  }
 0xb04   :  { %3485 = vmatprep.mubr.bf16.mxu1 %v5663_v2  ;;  %3755 = vmatpush1.bf16.msra.mxu1 %v5553_v58 }
 0xb05   :  { %3756 = vmatprep.subr.bf16.mxu1 %v5559_v59  ;;  %v5601_v59 = vld [vmem:[%s7423_s8 + $0x524] ss:$8 sps:$4 sm:$0xff]  }
 0xb08   :  { %3757 = vmatpush1.bf16.msra.mxu1 %v5557_v14 }
 0xb09   :  { %3758 = vmatprep.subr.bf16.mxu1 %v5563_v17 }
 0xb0b   :  { %4907 = vmatmul.mubr.msk.bf16.gmra.mrb[44].mxu1 %vm62_vm0, %v6821_v7  ;;  %v5575_v7 = vld [vmem:[%s7422_s6 + $0x43c] ss:$12 sps:$4 sm:$0xff]  }
 0xb0c   :  { %3759 = vmatpush1.bf16.msra.mxu1 %v5561_v19 }
 0xb0d   :  { %3760 = vmatprep.subr.bf16.mxu1 %v5567_v62 }
 0xb10   :  { %3761 = vmatpush1.bf16.msra.mxu1 %v5565_v28  ;;  %v5599_v28 = vld [vmem:[%s7423_s8 + $0x520] ss:$8 sps:$4 sm:$0xff]  }
 0xb11   :  { %3762 = vmatprep.subr.bf16.mxu1 %v5571_v20  ;;  %v5604_v20 = vld [vmem:[%s7423_s8 + $0x534] ss:$8 sps:$4 sm:$0xff]  }
 0xb14   :  { %3763 = vmatpush1.bf16.msra.mxu1 %v5569_v21  ;;  %v5602_v21 = vld [vmem:[%s7423_s8 + $0x530] ss:$8 sps:$4 sm:$0xff]  }
 0xb15   :  { %3764 = vmatprep.subr.bf16.mxu1 %v5575_v7  ;;  %v5607_v7 = vld [vmem:[%s7423_s8 + $0x544] ss:$8 sps:$4 sm:$0xff]  }
 0xb18   :  { %3765 = vmatpush1.bf16.msra.mxu1 %v5573_v24  ;;  %v5605_v24 = vld [vmem:[%s7423_s8 + $0x540] ss:$8 sps:$4 sm:$0xff]  }
 0xb19   :  { %3766 = vmatprep.subr.bf16.mxu1 %v5579_v38  ;;  %v5610_v38 = vld [vmem:[%s7423_s8 + $0x554] ss:$8 sps:$4 sm:$0xff]  }
 0xb1c   :  { %3767 = vmatpush1.bf16.msra.mxu1 %v5577_v44  ;;  %v5608_v44 = vld [vmem:[%s7423_s8 + $0x550] ss:$8 sps:$4 sm:$0xff]  }
 0xb1d   :  { %3768 = vmatprep.subr.bf16.mxu1 %v5583_v25  ;;  %v5613_v25 = vld [vmem:[%s7423_s8 + $0x564] ss:$8 sps:$4 sm:$0xff]  }
 0xb20   :  { %3769 = vmatpush1.bf16.msra.mxu1 %v5581_v26  ;;  %v5611_v26 = vld [vmem:[%s7423_s8 + $0x560] ss:$8 sps:$4 sm:$0xff]  }
 0xb21   :  { %3770 = vmatprep.subr.bf16.mxu1 %v5587_v42  ;;  %v5616_v42 = vld [vmem:[%s7423_s8 + $0x574] ss:$8 sps:$4 sm:$0xff]  }
 0xb24   :  { %3771 = vmatpush1.bf16.msra.mxu1 %v5585_v40  ;;  %v5614_v40 = vld [vmem:[%s7423_s8 + $0x570] ss:$8 sps:$4 sm:$0xff]  }
 0xb25   :  { %3772 = vmatprep.subr.bf16.mxu1 %v5591_v45  ;;  %v5617_v45 = vld [vmem:[%s7423_s8 + $0x580] ss:$8 sps:$4 sm:$0xff]  }
 0xb28   :  { %3773 = vmatpush1.bf16.msra.mxu1 %v5589_v32  ;;  %v5622_v32 = vld [vmem:[%s7423_s8 + $0x594] ss:$8 sps:$4 sm:$0xff]  }
 0xb29   :  { %4134 = vmatprep.subr.bf16.mxu1 %v5595_v36  ;;  %v5625_v36 = vld [vmem:[%s7423_s8 + $0x5a4] ss:$8 sps:$4 sm:$0xff]  }
 0xbd6   :  { %v3477_v22 = vpop.f32.mrb[40].mxu1 }
 0xbd7   :  { %v3479_v27 = vpop.f32.mrb[41].mxu1  ;;  %v3517_v55 = vadd.f32 %v3509_v56, %v3477_v22  ;;  %v5631_v22 = vld [vmem:[%s7423_s8 + $0x5c4] ss:$8 sps:$4 sm:$0xff]   ;;  %v5629_v56 = vld [vmem:[%s7423_s8 + $0x5c0] ss:$8 sps:$4 sm:$0xff]  }
 0xbd8   :  { %v3481_v53 = vpop.f32.mrb[42].mxu1  ;;  %v3518_v31 = vadd.f32 %v3510_v23, %v3479_v27  ;;  %v5634_v27 = vld [vmem:[%s7423_s8 + $0x5d4] ss:$8 sps:$4 sm:$0xff]   ;;  %v5637_v23 = vld [vmem:[%s7423_s8 + $0x5e4] ss:$8 sps:$4 sm:$0xff]  }
 0xbd9   :  { %v3519_v47 = vadd.f32 %v3511_v50, %v3481_v53  ;;  %v3483_v30 = vpop.f32.mrb[43].mxu1  ;;  %v5632_v50 = vld [vmem:[%s7423_s8 + $0x5d0] ss:$8 sps:$4 sm:$0xff]   ;;  %v5635_v53 = vld [vmem:[%s7423_s8 + $0x5e0] ss:$8 sps:$4 sm:$0xff]  }
 0xbda   :  { %v3520_v63 = vadd.f32 %v3512_v61, %v3483_v30  ;;  %v5640_v61 = vld [vmem:[%s7423_s8 + $0x5f4] ss:$8 sps:$4 sm:$0xff]   ;;  %v4949_v30 = vld [vmem:[%s7425_s7 + $0xc] sm:$0x7] }
 0xbdb   :  { %v3525_v0 = vpack.c.bf16 %v3519_v47, %v3517_v55  ;;  %v5638_v55 = vld [vmem:[%s7423_s8 + $0x5f0] ss:$8 sps:$4 sm:$0xff]   ;;  %v5643_v47 = vld [vmem:[%s7423_s8 + $0x604] ss:$8 sps:$4 sm:$0xff]  }
 0xbdc   :  { %v3526_v1 = vpack.c.bf16 %v3520_v63, %v3518_v31  ;;  %v3576_v31 = vrot.slane %v4949_v30, %v5875_v51  ;;  %v3584_v63 = vrot.slane %v4949_v30, %v6019_v3 }
 0xbde   :  { %v3487_v8 = vpop.f32.mrb[44].mxu1  ;;  %4980 = vmatprep.mubr.msk.bf16.mxu1 %vm62_vm0, %v3526_v1  ;;  %4982 = vmatprep.mubr.msk.bf16.mxu0 %vm62_vm0, %v3526_v1 }
 0xbdf   :  { %v3489_v4 = vpop.f32.mrb[45].mxu1  ;;  %3787 = vmatmul.mubr.bf16.vlgmr.msra.gmra.mrb[48].mxu1 %v3525_v0  ;;  %3840 = vmatmul.mubr.bf16.vlgmr.msra.gmra.mrb[96].mxu0 %v3525_v0  ;;  %v3521_v12 = vadd.f32 %v3513_v34, %v3487_v8  ;;  %v3580_v0 = vrot.slane %v4949_v30, %v5869_v49 }
 0xbe0   :  { %v3491_v9 = vpop.f32.mrb[46].mxu1  ;;  %4135 = vmatpush1.bf16.msra.mxu1 %v5593_v33  ;;  %v3522_v14 = vadd.f32 %v3514_v5, %v3489_v4 }
 0xbe1   :  { %v3523_v57 = vadd.f32 %v3515_v18, %v3491_v9  ;;  %v3493_v58 = vpop.f32.mrb[47].mxu1  ;;  %4136 = vmatprep.subr.bf16.mxu1 %v5598_v6 }
 0xbe2   :  { %v3524_v17 = vadd.f32 %v3516_v11, %v3493_v58 }
 0xbe3   :  { %v3527_v19 = vpack.c.bf16 %v3523_v57, %v3521_v12 }
 0xbe4   :  { %v3528_v62 = vpack.c.bf16 %v3524_v17, %v3522_v14  ;;  %4137 = vmatpush1.bf16.msra.mxu1 %v5596_v54 }
 0xbe5   :  { %4138 = vmatprep.subr.bf16.mxu1 %v5601_v59 }
 0xbe6   :  { %4981 = vmatprep.mubr.msk.bf16.mxu1 %vm62_vm0, %v3528_v62  ;;  %4983 = vmatprep.mubr.msk.bf16.mxu0 %vm62_vm0, %v3528_v62 }
 0xbe7   :  { %3797 = vmatmul.mubr.bf16.gmra.mrb[52].mxu1 %v3527_v19  ;;  %3848 = vmatmul.mubr.bf16.gmra.mrb[100].mxu0 %v3527_v19 }
 0xbe8   :  { %4139 = vmatpush1.bf16.msra.mxu1 %v5599_v28  ;;  %4310 = vmatprep.mubr.bf16.mxu0 %v5663_v2 }
 0xbe9   :  { %4140 = vmatprep.subr.bf16.mxu1 %v5604_v20 }
 0xbec   :  { %4141 = vmatpush1.bf16.msra.mxu1 %v5602_v21 }
 0xbed   :  { %4142 = vmatprep.subr.bf16.mxu1 %v5607_v7 }
 0xbf0   :  { %4143 = vmatpush1.bf16.msra.mxu1 %v5605_v24 }
 0xbf1   :  { %4144 = vmatprep.subr.bf16.mxu1 %v5610_v38  ;;  %v5641_v38 = vld [vmem:[%s7423_s8 + $0x600] ss:$8 sps:$4 sm:$0xff]  }
 0xbf4   :  { %4145 = vmatpush1.bf16.msra.mxu1 %v5608_v44 }
 0xbf5   :  { %4146 = vmatprep.subr.bf16.mxu1 %v5613_v25 }
 0xbf8   :  { %4147 = vmatpush1.bf16.msra.mxu1 %v5611_v26 }
 0xbf9   :  { %4148 = vmatprep.subr.bf16.mxu1 %v5616_v42 }
 0xbfc   :  { %4149 = vmatpush1.bf16.msra.mxu1 %v5614_v40  ;;  %v5646_v40 = vld [vmem:[%s7423_s8 + $0x614] ss:$8 sps:$4 sm:$0xff]  }
 0xbfd   :  { %4150 = vmatprep.subr.bf16.mxu1 %v5619_v43 }
 0xc00   :  { %4151 = vmatpush1.bf16.msra.mxu1 %v5617_v45 }
 0xc01   :  { %4152 = vmatprep.subr.bf16.mxu1 %v5622_v32 }
 0xc04   :  { %4153 = vmatpush1.bf16.msra.mxu1 %v5620_v35 }
 0xc05   :  { %4154 = vmatprep.subr.bf16.mxu1 %v5625_v36 }
 0xc08   :  { %4155 = vmatpush1.bf16.msra.mxu1 %v5623_v37 }
 0xc09   :  { %4156 = vmatprep.subr.bf16.mxu1 %v5628_v39 }
 0xc0c   :  { %4157 = vmatpush1.bf16.msra.mxu1 %v5626_v41 }
 0xc0d   :  { %4158 = vmatprep.subr.bf16.mxu1 %v5631_v22  ;;  %v5644_v22 = vld [vmem:[%s7423_s8 + $0x610] ss:$8 sps:$4 sm:$0xff]  }
 0xc10   :  { %4159 = vmatpush1.bf16.msra.mxu1 %v5629_v56 }
 0xc11   :  { %4160 = vmatprep.subr.bf16.mxu1 %v5634_v27 }
 0xc14   :  { %4161 = vmatpush1.bf16.msra.mxu1 %v5632_v50 }
 0xc15   :  { %4162 = vmatprep.subr.bf16.mxu1 %v5637_v23 }
 0xc18   :  { %4163 = vmatpush1.bf16.msra.mxu1 %v5635_v53  ;;  %v5649_v53 = vld [vmem:[%s7423_s8 + $0x624] ss:$8 sps:$4 sm:$0xff]  }
 0xc19   :  { %4164 = vmatprep.subr.bf16.mxu1 %v5640_v61 }
 0xc1c   :  { %4165 = vmatpush1.bf16.msra.mxu1 %v5638_v55 }
 0xc1d   :  { %4187 = vmatprep.subr.bf16.mxu1 %v5643_v47 }
 0xcb2   :  { %v3788_v1 = vpop.f32.mrb[48].mxu1  ;;  %v3841_v33 = vpop.f32.mrb[96].mxu0 }
 0xcb3   :  { %v3789_v6 = vadd.f32 %v3788_v1, %v3576_v31  ;;  %v3842_v8 = vadd.f32 %v3841_v33, %v3584_v63  ;;  %v3790_v34 = vpop.f32.mrb[49].mxu1  ;;  %v3843_v4 = vpop.f32.mrb[97].mxu0  ;;  %v5650_v1 = vld [vmem:[%s7423_s8 + $0x630] ss:$8 sps:$4 sm:$0xff]   ;;  %v5067_v33 = vld [vmem:[%s7428_s5 + $0x8] sm:$0x3] }
 0xcb4   :  { %v3791_v18 = vadd.f32 %v3790_v34, %v3580_v0  ;;  %v3792_v5 = vpop.f32.mrb[50].mxu1  ;;  %v3844_v9 = vpop.f32.mrb[98].mxu0  ;;  %vm4250_vm3 = vcmp.gt.f32.partialorder %v5067_v33, 0.0 }
 0xcb5   :  { %v3793_v11 = vadd.f32 %v3792_v5, %v3576_v31  ;;  %v3845_v54 = vadd.f32 %v3844_v9, %v3584_v63  ;;  %v3794_v12 = vpop.f32.mrb[51].mxu1  ;;  %v3846_v57 = vpop.f32.mrb[99].mxu0  ;;  %v3856_v59 = vmax.f32 %v3789_v6, 0.0  ;;  %v3858_v14 = vmax.f32 %v3842_v8, 0.0  ;;  %v5024_v6 = vld [vmem:[%s7426_s9 + $0x8] sm:$0x3] }
 0xcb6   :  { %v3795_v58 = vadd.f32 %v3794_v12, %v3580_v0  ;;  %v3857_v19 = vmax.f32 %v3791_v18, 0.0  ;;  %v3921_v8 = vrot.slane %v5024_v6, %v5875_v51  ;;  %v4251_v34 = vsel %vm4250_vm3, 1, %v5663_v2 }
 0xcb7   :  { %v3859_v17 = vmax.f32 %v3793_v11, 0.0  ;;  %v3861_v3 = vmax.f32 %v3845_v54, 0.0  ;;  %v3925_v4 = vrot.slane %v5024_v6, %v5869_v49  ;;  %v4255_v5 = vrot.slane %v4251_v34, %v5875_v51 }
 0xcb8   :  { %v3860_v62 = vmax.f32 %v3795_v58, 0.0  ;;  %v4259_v54 = vrot.slane %v4251_v34, %v5869_v49 }
 0xcb9   :  { %v3868_v28 = vpack.c.bf16 %v3859_v17, %v3856_v59  ;;  %v3870_v20 = vpack.c.bf16 %v3861_v3, %v3858_v14 }
 0xcba   :  { %v3869_v21 = vpack.c.bf16 %v3860_v62, %v3857_v19  ;;  %v3798_v7 = vpop.f32.mrb[52].mxu1  ;;  %v3849_v24 = vpop.f32.mrb[100].mxu0  ;;  %vm7384_vm4 = vcmp.eq.s32.totalorder %v4259_v54, 1 }
 0xcbb   :  { %v3799_v44 = vadd.f32 %v3798_v7, %v3576_v31  ;;  %v3850_v25 = vadd.f32 %v3849_v24, %v3584_v63  ;;  %v3800_v26 = vpop.f32.mrb[53].mxu1  ;;  %v3851_v42 = vpop.f32.mrb[101].mxu0 }
 0xcbc   :  { %v3801_v43 = vadd.f32 %v3800_v26, %v3580_v0  ;;  %v3802_v45 = vpop.f32.mrb[54].mxu1  ;;  %v3852_v32 = vpop.f32.mrb[102].mxu0  ;;  %4166 = vmatprep.mubr.bf16.mxu1 %v3869_v21 }
 0xcbd   :  { %v3803_v35 = vadd.f32 %v3802_v45, %v3576_v31  ;;  %v3853_v36 = vadd.f32 %v3852_v32, %v3584_v63  ;;  %v3804_v37 = vpop.f32.mrb[55].mxu1  ;;  %v3854_v39 = vpop.f32.mrb[103].mxu0  ;;  %4167 = vmatmul.mubr.bf16.vlgmr.msra.gmra.mrb[56].mxu1 %v3868_v28  ;;  %v3862_v56 = vmax.f32 %v3799_v44, 0.0  ;;  %v3864_v27 = vmax.f32 %v3850_v25, 0.0  ;;  %v5647_v63 = vld [vmem:[%s7423_s8 + $0x620] ss:$8 sps:$4 sm:$0xff]  }
 0xcbe   :  { %v3805_v41 = vadd.f32 %v3804_v37, %v3580_v0  ;;  %4188 = vmatpush1.bf16.msra.mxu1 %v5641_v38  ;;  %v3863_v61 = vmax.f32 %v3801_v43, 0.0  ;;  %v5652_v0 = vld [vmem:[%s7423_s8 + $0x634] ss:$8 sps:$4 sm:$0xff]  }
 0xcbf   :  { %v3865_v50 = vmax.f32 %v3803_v35, 0.0  ;;  %v3867_v23 = vmax.f32 %v3853_v36, 0.0  ;;  %4189 = vmatprep.subr.bf16.mxu1 %v5646_v40 }
 0xcc0   :  { %v3866_v55 = vmax.f32 %v3805_v41, 0.0 }
 0xcc1   :  { %v3871_v47 = vpack.c.bf16 %v3865_v50, %v3862_v56  ;;  %v3873_v30 = vpack.c.bf16 %v3867_v23, %v3864_v27 }
 0xcc2   :  { %v3872_v31 = vpack.c.bf16 %v3866_v55, %v3863_v61  ;;  %4190 = vmatpush1.bf16.msra.mxu1 %v5644_v22  ;;  %v5664_v22 = vmov 1983009808  }
 0xcc3   :  { %4191 = vmatprep.subr.bf16.mxu1 %v5649_v53 }
 0xcc4   :  { %4176 = vmatprep.mubr.bf16.mxu1 %v3872_v31 }
 0xcc5   :  { %4177 = vmatmul.mubr.bf16.gmra.mrb[60].mxu1 %v3871_v47 }
 0xcc6   :  { %4192 = vmatpush1.bf16.msra.mxu1 %v5647_v63  ;;  %4219 = vmatprep.mubr.bf16.mxu1 %v5663_v2 }
 0xcc7   :  { %4193 = vmatprep.subr.bf16.mxu1 %v5652_v0 }
 0xcca   :  { %4194 = vmatpush1.bf16.msra.mxu1 %v5650_v1 }
 0xccd   :  { %5065 = vmatmul.mubr.msk.bf16.vlgmr.msra.gmra.mrb[56].mxu1 %vm749_vm1, %v3870_v20 }
 0xcce   :  { %4229 = vmatprep.mubr.bf16.mxu1 %v5663_v2 }
 0xcd5   :  { %5066 = vmatmul.mubr.msk.bf16.gmra.mrb[60].mxu1 %vm749_vm1, %v3873_v30  ;;  %vm7380_vm1 = vcmp.eq.s32.totalorder %v4255_v5, 1 }
 0xda0   :  { %v4221_v18 = vpop.f32.mrb[56].mxu1 }
 0xda1   :  { %v5109_v9 = vadd.f32 %v4221_v18, %v3921_v8  ;;  %v4223_v11 = vpop.f32.mrb[57].mxu1 }
 0xda2   :  { %v5110_v12 = vadd.f32 %v4223_v11, %v3925_v4  ;;  %v4225_v57 = vpop.f32.mrb[58].mxu1 }
 0xda3   :  { %v4240_v58 = vmul.f32 0.999995, %v5109_v9  ;;  %v5111_v59 = vadd.f32 %v4225_v57, %v3921_v8  ;;  %v4227_v14 = vpop.f32.mrb[59].mxu1 }
 0xda4   :  { %v4241_v3 = vmul.f32 0.999995, %v5110_v12  ;;  %v5112_v2 = vadd.f32 %v4227_v14, %v3925_v4 }
 0xda5   :  { %v4242_v19 = vmul.f32 0.999995, %v5111_v59  ;;  %v4262_v49 = vsel %vm7380_vm1, %v4240_v58, %v7111_v46 }
 0xda6   :  { %v4243_v51 = vmul.f32 0.999995, %v5112_v2  ;;  %v4263_v7 = vsel %vm7384_vm4, %v4241_v3, %v7101_v60 }
 0xda7   :  { %v4264_v28 = vsel %vm7380_vm1, %v4242_v19, %v7094_v52 }
 0xda8   :  { %v4271_v20 = vpack.c.bf16 %v4264_v28, %v4262_v49  ;;  %v4231_v21 = vpop.f32.mrb[60].mxu1  ;;  %v4265_v24 = vsel %vm7384_vm4, %v4243_v51, %v7106_v29 }
 0xda9   :  { %v5113_v38 = vadd.f32 %v4231_v21, %v3921_v8  ;;  %v4233_v44 = vpop.f32.mrb[61].mxu1  ;;  %v4272_v25 = vpack.c.bf16 %v4265_v24, %v4263_v7 }
 0xdaa   :  { %v5114_v26 = vadd.f32 %v4233_v44, %v3925_v4  ;;  %v4235_v42 = vpop.f32.mrb[62].mxu1 }
 0xdab   :  { %v4244_v46 = vmul.f32 0.999995, %v5113_v38  ;;  %v5115_v40 = vadd.f32 %v4235_v42, %v3921_v8  ;;  %v4237_v43 = vpop.f32.mrb[63].mxu1  ;;  %4278 = vmatprep.subr.bf16.mxu0 %v4272_v25 }
 0xdac   :  { %v4245_v52 = vmul.f32 0.999995, %v5114_v26  ;;  %v5116_v45 = vadd.f32 %v4237_v43, %v3925_v4  ;;  %4279 = vmatpush1.bf16.msra.mxu0 %v4271_v20 }
 0xdad   :  { %v4246_v32 = vmul.f32 0.999995, %v5115_v40  ;;  %v4266_v60 = vsel %vm7380_vm1, %v4244_v46, %v7143_v16  ;;  %v4270_v16 = vld [vmem:[%s7429_s2] sm:$0x1] }
 0xdae   :  { %v4247_v35 = vmul.f32 0.999995, %v5116_v45  ;;  %v4267_v37 = vsel %vm7384_vm4, %v4245_v52, %v7133_v13 }
 0xdaf   :  { %v4268_v29 = vsel %vm7380_vm1, %v4246_v32, %v7126_v10  ;;  %v4323_v10 = vunpack.c.l.s4 %v5664_v22 }
 0xdb0   :  { %v4273_v36 = vpack.c.bf16 %v4268_v29, %v4266_v60  ;;  %v4269_v39 = vsel %vm7384_vm4, %v4247_v35, %v7138_v15 }
 0xdb1   :  { %v4274_v41 = vpack.c.bf16 %v4269_v39, %v4267_v37  ;;  %v4324_v56 = vunpack.c.0.s8 %v4323_v10 }
 0xdb3   :  { %4280 = vmatprep.subr.bf16.mxu0 %v4274_v41  ;;  %v4327_v50 = vsub.s32 %v4324_v56, %v5866_v48 }
 0xdb4   :  { %4281 = vmatpush1.bf16.msra.mxu0 %v4273_v36 }
 0xdb7   :  { %5068 = vmatmul.mubr.msk.bf16.vlgmr.msra.gmra.mrb[104].mxu0 %vm62_vm0, %v4270_v16 }
 0xe8a   :  { %v4312_v27 = vpop.f32.mrb[104].mxu0 }
 0xe8b   :  { %v4314_v13 = vpop.f32.mrb[105].mxu0 }
 0xe8c   :  { %v4321_v23 = vcombine.low %v4312_v27, %v4314_v13  ;;  %v4316_v15 = vpop.f32.mrb[106].mxu0 }
 0xe8d   :  { %v4317_v53 = vpop.f32.mrb[107].mxu0 }
 0xe8e   :  { %v4328_v61 = vrot.slane %v4321_v23, %v4327_v50 }
 0xe90   :  { %4333 = vst.msk [vmem:[%s7430_s10] sm:$0xf] %vm4332_vm7, %v4328_v61 }

</bundles_post_ra>
